<compile_context>
chip_gen: v7x
topology: tpu7x:2x2x1
jax: 0.10.0
libtpu: 0.0.40
codegen_flags: <defaults>
</compile_context>

<pallas_src>
import jax
import jax.numpy as jnp
from jax.experimental import pallas as pl
from jax.experimental.pallas import tpu as pltpu

BN_EPS = 1e-5


# ----------------------------- pallas plumbing ------------------------------

def _full_spec(shape):
    n = len(shape)
    return pl.BlockSpec(shape, lambda i, _n=n: (0,) * _n)


def _pallas_call(kernel, out_shape, inputs, scratch_shapes):
    """Single-step pallas_call with whole arrays resident in VMEM."""
    return pl.pallas_call(
        kernel,
        out_shape=jax.ShapeDtypeStruct(out_shape, jnp.float32),
        grid=(1,),
        in_specs=[_full_spec(a.shape) for a in inputs],
        out_specs=_full_spec(out_shape),
        scratch_shapes=scratch_shapes,
    )(*inputs)


# ------------------------------ fused kernels --------------------------------

def make_conv_chain_kernel(stages, N, H, W):
    """One fused kernel for a chain of Conv blocks: relu -> conv -> BN(train).

    Stride 1, 'same' spatial for every stage.  Conv bias is intentionally
    skipped: a per-output-channel constant is exactly cancelled by the
    training-mode BatchNorm mean subtraction (variance is unchanged).

    Ref layout: x, (w, gamma, beta) * n_stages, out, pad_scratch * n_stages
    """
    n = len(stages)

    def kernel(*refs):
        x_ref = refs[0]
        o_ref = refs[1 + 3 * n]
        pad_refs = refs[2 + 3 * n:]
        cur = x_ref[...]
        for s, st in enumerate(stages):
            w_ref, g_ref, b_ref = refs[1 + 3 * s: 4 + 3 * s]
            KH, KW = st['KH'], st['KW']
            ph, pw = st['ph'], st['pw']
            dh, dw = st['dh'], st['dw']
            Cin, Cout = st['Cin'], st['Cout']

            xr = jnp.maximum(cur, 0.0)                      # fused ReLU
            if ph == 0 and pw == 0:
                xp = xr                                     # no halo needed
            else:
                pad_ref = pad_refs[s]
                # zero-pad into VMEM scratch (relu(0) == 0, so relu-then-pad is OK)
                pad_ref[...] = jnp.zeros(pad_ref.shape, jnp.float32)
                pad_ref[:, ph:ph + H, pw:pw + W, :] = xr
                xp = pad_ref

            # conv: static unroll over taps -> MXU dots, f32 accumulate
            acc = jnp.zeros((N * H * W, Cout), jnp.float32)
            w = w_ref[...]
            for kh in range(KH):
                for kw in range(KW):
                    xs = xp[:, kh * dh: kh * dh + H, kw * dw: kw * dw + W, :]
                    acc = acc + jnp.dot(xs.reshape(N * H * W, Cin), w[kh, kw],
                                        preferred_element_type=jnp.float32)

            # training-mode BatchNorm2d: per-channel batch mean / biased var
            mean = jnp.mean(acc, axis=0, keepdims=True)
            var = jnp.mean((acc - mean) ** 2, axis=0, keepdims=True)
            y = (acc - mean) * jax.lax.rsqrt(var + BN_EPS)
            y = y * g_ref[...].reshape(1, Cout) + b_ref[...].reshape(1, Cout)
            cur = y.reshape(N, H, W, Cout)
        o_ref[...] = cur

    return kernel


def make_sepconv_chain_kernel(stages, N, H, W):
    """One fused kernel for a chain of SepConv blocks:
    relu -> depthwise KxK -> pointwise 1x1 -> BN(train).

    Depthwise/pointwise biases skipped (cancelled by BN mean subtraction).
    Ref layout: x, (dw_w, pw_w, gamma, beta) * n_stages, out, pad_scratch * n
    """
    n = len(stages)

    def kernel(*refs):
        x_ref = refs[0]
        o_ref = refs[1 + 4 * n]
        pad_refs = refs[2 + 4 * n:]
        cur = x_ref[...]
        for s, st in enumerate(stages):
            dw_ref, pw_ref, g_ref, b_ref = refs[1 + 4 * s: 5 + 4 * s]
            K, Cin, Cout = st['K'], st['Cin'], st['Cout']
            p = K // 2
            pad_ref = pad_refs[s]

            # fused ReLU + zero-pad into VMEM scratch
            pad_ref[...] = jnp.zeros(pad_ref.shape, jnp.float32)
            pad_ref[:, p:p + H, p:p + W, :] = jnp.maximum(cur, 0.0)

            # depthwise conv (groups == C), VPU multiply-accumulate
            dw = dw_ref[...]
            acc = jnp.zeros((N, H, W, Cin), jnp.float32)
            for kh in range(K):
                for kw in range(K):
                    acc = acc + pad_ref[:, kh:kh + H, kw:kw + W, :] * dw[kh, kw]

            # pointwise 1x1 conv: one MXU dot
            y = jnp.dot(acc.reshape(N * H * W, Cin),
                        pw_ref[...].reshape(Cin, Cout),
                        preferred_element_type=jnp.float32)

            # training-mode BatchNorm2d
            mean = jnp.mean(y, axis=0, keepdims=True)
            var = jnp.mean((y - mean) ** 2, axis=0, keepdims=True)
            y = (y - mean) * jax.lax.rsqrt(var + BN_EPS)
            y = y * g_ref[...].reshape(1, Cout) + b_ref[...].reshape(1, Cout)
            cur = y.reshape(N, H, W, Cout)
        o_ref[...] = cur

    return kernel


def make_pool_kernel(K, N, H, W, C, mode):
    """Max/avg pool, stride 1, padding K//2.  Padding handled in-kernel
    via a VMEM scratch (-inf fill for max, 0 fill + count_include_pad for avg)."""
    pad = K // 2

    def kernel(x_ref, o_ref, pad_ref):
        fill = -jnp.inf if mode == 'max' else 0.0
        pad_ref[...] = jnp.full(pad_ref.shape, fill, jnp.float32)
        pad_ref[:, pad:pad + H, pad:pad + W, :] = x_ref[...]
        if mode == 'max':
            acc = jnp.full((N, H, W, C), -jnp.inf, jnp.float32)
        else:
            acc = jnp.zeros((N, H, W, C), jnp.float32)
        for kh in range(K):
            for kw in range(K):
                xs = pad_ref[:, kh:kh + H, kw:kw + W, :]
                acc = jnp.maximum(acc, xs) if mode == 'max' else acc + xs
        if mode == 'avg':
            acc = acc * (1.0 / (K * K))      # count_include_pad=True (PyTorch default)
        o_ref[...] = acc

    return kernel


# ----------------------------- layer forwards -------------------------------

def _conv_cfg(p, KH, KW, ph, pw, dil=1):
    return dict(KH=KH, KW=KW, ph=ph, pw=pw, dh=dil, dw=dil,
                Cin=p['w'].shape[2], Cout=p['w'].shape[3])


def _sep_cfg(p, K):
    return dict(K=K, Cin=p['dw_w'].shape[2], Cout=p['pw_w'].shape[3])


def conv_chain_forward(x, stage_params, stage_cfgs):
    """Fused chain of Conv(relu->conv->BN) blocks in a single pallas_call."""
    N, H, W, _ = x.shape
    inputs = [x]
    scratch = []
    for p, cfg in zip(stage_params, stage_cfgs):
        inputs += [p['w'], p['gamma'], p['beta']]
        scratch.append(pltpu.VMEM(
            (N, H + 2 * cfg['ph'], W + 2 * cfg['pw'], cfg['Cin']), jnp.float32))
    out_shape = (N, H, W, stage_cfgs[-1]['Cout'])
    kernel = make_conv_chain_kernel(tuple(stage_cfgs), N, H, W)
    return _pallas_call(kernel, out_shape, inputs, scratch)


def sepconv_chain_forward(x, stage_params, stage_cfgs):
    """Fused chain of SepConv blocks in a single pallas_call."""
    N, H, W, _ = x.shape
    inputs = [x]
    scratch = []
    for p, cfg in zip(stage_params, stage_cfgs):
        inputs += [p['dw_w'], p['pw_w'], p['gamma'], p['beta']]
        pad = cfg['K'] // 2
        scratch.append(pltpu.VMEM(
            (N, H + 2 * pad, W + 2 * pad, cfg['Cin']), jnp.float32))
    out_shape = (N, H, W, stage_cfgs[-1]['Cout'])
    kernel = make_sepconv_chain_kernel(tuple(stage_cfgs), N, H, W)
    return _pallas_call(kernel, out_shape, inputs, scratch)


def pool_forward(x, K, mode):
    N, H, W, C = x.shape
    pad = K // 2
    kernel = make_pool_kernel(K, N, H, W, C, mode)
    return _pallas_call(kernel, (N, H, W, C), [x],
                        [pltpu.VMEM((N, H + 2 * pad, W + 2 * pad, C), jnp.float32)])


# ------------------------------ parameter init ------------------------------
# Bias params are kept for parity with nn.Conv2d, but the kernels do not apply
# them: per-channel constants are exactly cancelled by training-mode BN.

def init_conv_params(key, C_in, C_out, KH, KW):
    k1, k2, k3, k4 = jax.random.split(key, 4)
    return {
        'w': 0.1 * jax.random.normal(k1, (KH, KW, C_in, C_out), jnp.float32),
        'b': 0.1 * jax.random.normal(k2, (1, 1, 1, C_out), jnp.float32),
        'gamma': 1.0 + 0.1 * jax.random.normal(k3, (1, 1, 1, C_out), jnp.float32),
        'beta': 0.1 * jax.random.normal(k4, (1, 1, 1, C_out), jnp.float32),
    }


def init_sepconv_params(key, C_in, C_out, K):
    ks = jax.random.split(key, 6)
    return {
        'dw_w': 0.1 * jax.random.normal(ks[0], (K, K, C_in), jnp.float32),
        'dw_b': 0.1 * jax.random.normal(ks[1], (1, 1, 1, C_in), jnp.float32),
        'pw_w': 0.1 * jax.random.normal(ks[2], (1, 1, C_in, C_out), jnp.float32),
        'pw_b': 0.1 * jax.random.normal(ks[3], (1, 1, 1, C_out), jnp.float32),
        'gamma': 1.0 + 0.1 * jax.random.normal(ks[4], (1, 1, 1, C_out), jnp.float32),
        'beta': 0.1 * jax.random.normal(ks[5], (1, 1, 1, C_out), jnp.float32),
    }


def init_operation(key, C_in, C_out, op_type):
    k0, k1 = jax.random.split(key)
    if op_type == '1x3_3x1_conv':
        return [init_conv_params(k0, C_in, C_out, 1, 3),
                init_conv_params(k1, C_out, C_out, 3, 1)]
    if op_type == '1x7_7x1_conv':
        return [init_conv_params(k0, C_in, C_out, 1, 7),
                init_conv_params(k1, C_out, C_out, 7, 1)]
    if op_type == '1x1_conv':
        return [init_conv_params(k0, C_in, C_out, 1, 1)]
    if op_type == '3x3_conv':
        return [init_conv_params(k0, C_in, C_out, 3, 3)]
    if op_type in ('3x3_sepconv', '5x5_sepconv', '7x7_sepconv'):
        K = int(op_type[0])
        return [init_sepconv_params(k0, C_in, C_out, K),
                init_sepconv_params(k1, C_out, C_out, K)]
    if op_type == '3x3_dilconv':
        return [init_conv_params(k0, C_in, C_out, 3, 3)]
    if op_type == '5x5_dilconv':
        return [init_conv_params(k0, C_in, C_out, 5, 5)]
    return []   # pools / identity / zero have no parameters


# --------------------------- Operation.forward ------------------------------

_KNOWN_OPS = {'1x3_3x1_conv', '1x7_7x1_conv', '3x3_avgpool', '3x3_maxpool',
              '5x5_maxpool', '7x7_maxpool', '1x1_conv', '3x3_conv',
              '3x3_sepconv', '5x5_sepconv', '7x7_sepconv',
              '3x3_dilconv', '5x5_dilconv', 'identity'}


def operation_forward(x_nchw, op_type, params):
    if op_type == 'identity':
        return x_nchw                                   # Identity(): no copy / DMA
    if op_type not in _KNOWN_OPS:
        return jnp.zeros_like(x_nchw)                   # Zero()

    x = jnp.transpose(x_nchw, (0, 2, 3, 1)).astype(jnp.float32)   # NCHW -> NHWC
    if op_type == '1x3_3x1_conv':
        x = conv_chain_forward(x, params,
                               [_conv_cfg(params[0], 1, 3, 0, 1),
                                _conv_cfg(params[1], 3, 1, 1, 0)])
    elif op_type == '1x7_7x1_conv':
        x = conv_chain_forward(x, params,
                               [_conv_cfg(params[0], 1, 7, 0, 3),
                                _conv_cfg(params[1], 7, 1, 3, 0)])
    elif op_type == '1x1_conv':
        x = conv_chain_forward(x, params, [_conv_cfg(params[0], 1, 1, 0, 0)])
    elif op_type == '3x3_conv':
        x = conv_chain_forward(x, params, [_conv_cfg(params[0], 3, 3, 1, 1)])
    elif op_type == '3x3_dilconv':
        x = conv_chain_forward(x, params, [_conv_cfg(params[0], 3, 3, 2, 2, dil=2)])
    elif op_type == '5x5_dilconv':
        x = conv_chain_forward(x, params, [_conv_cfg(params[0], 5, 5, 4, 4, dil=2)])
    elif op_type in ('3x3_sepconv', '5x5_sepconv', '7x7_sepconv'):
        K = int(op_type[0])
        x = sepconv_chain_forward(x, params,
                                  [_sep_cfg(params[0], K), _sep_cfg(params[1], K)])
    elif op_type == '3x3_avgpool':
        x = pool_forward(x, 3, 'avg')
    else:  # 3x3 / 5x5 / 7x7 max pool
        K = int(op_type[0])
        x = pool_forward(x, K, 'max')
    return jnp.transpose(x, (0, 3, 1, 2))               # NHWC -> NCHW


# ----------------------------------- main ------------------------------------

if __name__ == "__main__":
    key = jax.random.PRNGKey(0)
    kx, kp = jax.random.split(key)
    N, C_in, C_out, H, W = 2, 4, 8, 16, 16
    x = jax.random.normal(kx, (N, C_in, H, W), jnp.float32)        # NCHW like PyTorch

    param_free = {'3x3_maxpool', '5x5_maxpool', '7x7_maxpool',
                  '3x3_avgpool', 'identity', 'zero'}
    op_types = ['3x3_conv', '1x1_conv', '1x3_3x1_conv', '1x7_7x1_conv',
                '3x3_sepconv', '3x3_dilconv', '5x5_dilconv',
                '3x3_maxpool', '5x5_maxpool', '3x3_avgpool', 'identity', 'zero']

    for i, op in enumerate(op_types):
        params = init_operation(jax.random.fold_in(kp, i), C_in, C_out, op)
        y = jax.block_until_ready(operation_forward(x, op, params))
        exp_c = C_in if op in param_free else C_out
        assert y.shape == (N, exp_c, H, W), (op, y.shape)
        assert bool(jnp.all(jnp.isfinite(y))), op

    print("KERNEL_OK")
</pallas_src>

<mosaic_0001>
module attributes {stable_mosaic.version = 11 : i64} {
  func.func @kernel(%arg0: i32, %arg1: memref<2x16x16x4xf32, #tpu.memory_space<vmem>>, %arg2: memref<3x3x4x8xf32, #tpu.memory_space<vmem>>, %arg3: memref<1x1x1x8xf32, #tpu.memory_space<vmem>>, %arg4: memref<1x1x1x8xf32, #tpu.memory_space<vmem>>, %arg5: memref<2x16x16x8xf32, #tpu.memory_space<vmem>>, %arg6: memref<2x18x18x4xf32, #tpu.memory_space<vmem>>) attributes {dimension_semantics = [#tpu.dimension_semantics<arbitrary>], iteration_bounds = array<i64: 1>, scalar_prefetch = 0 : i64, scratch_operands = 1 : i64, tpu.core_type = #tpu.core_type<tc>, window_params = [{pipeline_mode = #tpu.pipeline_mode<synchronous>, transform_indices = @transform_0, window_bounds = array<i64: 2, 16, 16, 4>}, {pipeline_mode = #tpu.pipeline_mode<synchronous>, transform_indices = @transform_1, window_bounds = array<i64: 3, 3, 4, 8>}, {pipeline_mode = #tpu.pipeline_mode<synchronous>, transform_indices = @transform_2, window_bounds = array<i64: 1, 1, 1, 8>}, {pipeline_mode = #tpu.pipeline_mode<synchronous>, transform_indices = @transform_3, window_bounds = array<i64: 1, 1, 1, 8>}, {pipeline_mode = #tpu.pipeline_mode<synchronous>, transform_indices = @transform_4, window_bounds = array<i64: 2, 16, 16, 8>}]} {
    %c0 = arith.constant 0 : index
    %c0_0 = arith.constant 0 : index
    %c0_1 = arith.constant 0 : index
    %c0_2 = arith.constant 0 : index
    %0 = vector.load %arg1[%c0, %c0_0, %c0_1, %c0_2] : memref<2x16x16x4xf32, #tpu.memory_space<vmem>>, vector<2x16x16x4xf32>
    %cst = arith.constant 0.000000e+00 : f32
    %1 = vector.broadcast %cst : f32 to vector<2x16x16x4xf32>
    %2 = arith.maximumf %0, %1 : vector<2x16x16x4xf32>
    %cst_3 = arith.constant 0.000000e+00 : f32
    %3 = vector.broadcast %cst_3 : f32 to vector<2x18x18x4xf32>
    %c0_4 = arith.constant 0 : index
    %c0_5 = arith.constant 0 : index
    %c0_6 = arith.constant 0 : index
    %c0_7 = arith.constant 0 : index
    %4 = vector.load %arg6[%c0_4, %c0_5, %c0_6, %c0_7] : memref<2x18x18x4xf32, #tpu.memory_space<vmem>>, vector<2x18x18x4xf32>
    tpu.vector_store %arg6[%c0_4, %c0_5, %c0_6, %c0_7], %3 {strides = array<i32>} : memref<2x18x18x4xf32, #tpu.memory_space<vmem>>, vector<2x18x18x4xf32>,
    %c0_8 = arith.constant 0 : index
    %c1 = arith.constant 1 : index
    %c1_9 = arith.constant 1 : index
    %c0_10 = arith.constant 0 : index
    %5 = vector.load %arg6[%c0_8, %c1, %c1_9, %c0_10] : memref<2x18x18x4xf32, #tpu.memory_space<vmem>>, vector<2x16x16x4xf32>
    tpu.vector_store %arg6[%c0_8, %c1, %c1_9, %c0_10], %2 {strides = array<i32>} : memref<2x18x18x4xf32, #tpu.memory_space<vmem>>, vector<2x16x16x4xf32>,
    %cst_11 = arith.constant 0.000000e+00 : f32
    %6 = vector.broadcast %cst_11 : f32 to vector<512x8xf32>
    %c0_12 = arith.constant 0 : index
    %c0_13 = arith.constant 0 : index
    %c0_14 = arith.constant 0 : index
    %c0_15 = arith.constant 0 : index
    %7 = vector.load %arg2[%c0_12, %c0_13, %c0_14, %c0_15] : memref<3x3x4x8xf32, #tpu.memory_space<vmem>>, vector<3x3x4x8xf32>
    %c0_16 = arith.constant 0 : index
    %c0_17 = arith.constant 0 : index
    %c0_18 = arith.constant 0 : index
    %c0_19 = arith.constant 0 : index
    %8 = vector.load %arg6[%c0_16, %c0_17, %c0_18, %c0_19] : memref<2x18x18x4xf32, #tpu.memory_space<vmem>>, vector<2x16x16x4xf32>
    %9 = vector.shape_cast %8 : vector<2x16x16x4xf32> to vector<512x4xf32>
    %10 = vector.extract_strided_slice %7 {offsets = [0, 0, 0, 0], sizes = [1, 1, 4, 8], strides = [1, 1, 1, 1]} : vector<3x3x4x8xf32> to vector<1x1x4x8xf32>
    %11 = vector.shape_cast %10 : vector<1x1x4x8xf32> to vector<4x8xf32>
    %cst_20 = arith.constant dense<0.000000e+00> : vector<512x8xf32>
    %12 = tpu.matmul %9, %11, %cst_20 {dimension_numbers = #tpu.dot_dimension_numbers<[1], [0], [0], [1], [0, 0, 1, 1], [], []>} : vector<512x4xf32>, vector<4x8xf32>, vector<512x8xf32> -> vector<512x8xf32>
    %13 = arith.addf %6, %12 : vector<512x8xf32>
    %c0_21 = arith.constant 0 : index
    %c0_22 = arith.constant 0 : index
    %c1_23 = arith.constant 1 : index
    %c0_24 = arith.constant 0 : index
    %14 = vector.load %arg6[%c0_21, %c0_22, %c1_23, %c0_24] : memref<2x18x18x4xf32, #tpu.memory_space<vmem>>, vector<2x16x16x4xf32>
    %15 = vector.shape_cast %14 : vector<2x16x16x4xf32> to vector<512x4xf32>
    %16 = vector.extract_strided_slice %7 {offsets = [0, 1, 0, 0], sizes = [1, 1, 4, 8], strides = [1, 1, 1, 1]} : vector<3x3x4x8xf32> to vector<1x1x4x8xf32>
    %17 = vector.shape_cast %16 : vector<1x1x4x8xf32> to vector<4x8xf32>
    %cst_25 = arith.constant dense<0.000000e+00> : vector<512x8xf32>
    %18 = tpu.matmul %15, %17, %cst_25 {dimension_numbers = #tpu.dot_dimension_numbers<[1], [0], [0], [1], [0, 0, 1, 1], [], []>} : vector<512x4xf32>, vector<4x8xf32>, vector<512x8xf32> -> vector<512x8xf32>
    %19 = arith.addf %13, %18 : vector<512x8xf32>
    %c0_26 = arith.constant 0 : index
    %c0_27 = arith.constant 0 : index
    %c2 = arith.constant 2 : index
    %c0_28 = arith.constant 0 : index
    %20 = vector.load %arg6[%c0_26, %c0_27, %c2, %c0_28] : memref<2x18x18x4xf32, #tpu.memory_space<vmem>>, vector<2x16x16x4xf32>
    %21 = vector.shape_cast %20 : vector<2x16x16x4xf32> to vector<512x4xf32>
    %22 = vector.extract_strided_slice %7 {offsets = [0, 2, 0, 0], sizes = [1, 1, 4, 8], strides = [1, 1, 1, 1]} : vector<3x3x4x8xf32> to vector<1x1x4x8xf32>
    %23 = vector.shape_cast %22 : vector<1x1x4x8xf32> to vector<4x8xf32>
    %cst_29 = arith.constant dense<0.000000e+00> : vector<512x8xf32>
    %24 = tpu.matmul %21, %23, %cst_29 {dimension_numbers = #tpu.dot_dimension_numbers<[1], [0], [0], [1], [0, 0, 1, 1], [], []>} : vector<512x4xf32>, vector<4x8xf32>, vector<512x8xf32> -> vector<512x8xf32>
    %25 = arith.addf %19, %24 : vector<512x8xf32>
    %c0_30 = arith.constant 0 : index
    %c1_31 = arith.constant 1 : index
    %c0_32 = arith.constant 0 : index
    %c0_33 = arith.constant 0 : index
    %26 = vector.load %arg6[%c0_30, %c1_31, %c0_32, %c0_33] : memref<2x18x18x4xf32, #tpu.memory_space<vmem>>, vector<2x16x16x4xf32>
    %27 = vector.shape_cast %26 : vector<2x16x16x4xf32> to vector<512x4xf32>
    %28 = vector.extract_strided_slice %7 {offsets = [1, 0, 0, 0], sizes = [1, 1, 4, 8], strides = [1, 1, 1, 1]} : vector<3x3x4x8xf32> to vector<1x1x4x8xf32>
    %29 = vector.shape_cast %28 : vector<1x1x4x8xf32> to vector<4x8xf32>
    %cst_34 = arith.constant dense<0.000000e+00> : vector<512x8xf32>
    %30 = tpu.matmul %27, %29, %cst_34 {dimension_numbers = #tpu.dot_dimension_numbers<[1], [0], [0], [1], [0, 0, 1, 1], [], []>} : vector<512x4xf32>, vector<4x8xf32>, vector<512x8xf32> -> vector<512x8xf32>
    %31 = arith.addf %25, %30 : vector<512x8xf32>
    %c0_35 = arith.constant 0 : index
    %c1_36 = arith.constant 1 : index
    %c1_37 = arith.constant 1 : index
    %c0_38 = arith.constant 0 : index
    %32 = vector.load %arg6[%c0_35, %c1_36, %c1_37, %c0_38] : memref<2x18x18x4xf32, #tpu.memory_space<vmem>>, vector<2x16x16x4xf32>
    %33 = vector.shape_cast %32 : vector<2x16x16x4xf32> to vector<512x4xf32>
    %34 = vector.extract_strided_slice %7 {offsets = [1, 1, 0, 0], sizes = [1, 1, 4, 8], strides = [1, 1, 1, 1]} : vector<3x3x4x8xf32> to vector<1x1x4x8xf32>
    %35 = vector.shape_cast %34 : vector<1x1x4x8xf32> to vector<4x8xf32>
    %cst_39 = arith.constant dense<0.000000e+00> : vector<512x8xf32>
    %36 = tpu.matmul %33, %35, %cst_39 {dimension_numbers = #tpu.dot_dimension_numbers<[1], [0], [0], [1], [0, 0, 1, 1], [], []>} : vector<512x4xf32>, vector<4x8xf32>, vector<512x8xf32> -> vector<512x8xf32>
    %37 = arith.addf %31, %36 : vector<512x8xf32>
    %c0_40 = arith.constant 0 : index
    %c1_41 = arith.constant 1 : index
    %c2_42 = arith.constant 2 : index
    %c0_43 = arith.constant 0 : index
    %38 = vector.load %arg6[%c0_40, %c1_41, %c2_42, %c0_43] : memref<2x18x18x4xf32, #tpu.memory_space<vmem>>, vector<2x16x16x4xf32>
    %39 = vector.shape_cast %38 : vector<2x16x16x4xf32> to vector<512x4xf32>
    %40 = vector.extract_strided_slice %7 {offsets = [1, 2, 0, 0], sizes = [1, 1, 4, 8], strides = [1, 1, 1, 1]} : vector<3x3x4x8xf32> to vector<1x1x4x8xf32>
    %41 = vector.shape_cast %40 : vector<1x1x4x8xf32> to vector<4x8xf32>
    %cst_44 = arith.constant dense<0.000000e+00> : vector<512x8xf32>
    %42 = tpu.matmul %39, %41, %cst_44 {dimension_numbers = #tpu.dot_dimension_numbers<[1], [0], [0], [1], [0, 0, 1, 1], [], []>} : vector<512x4xf32>, vector<4x8xf32>, vector<512x8xf32> -> vector<512x8xf32>
    %43 = arith.addf %37, %42 : vector<512x8xf32>
    %c0_45 = arith.constant 0 : index
    %c2_46 = arith.constant 2 : index
    %c0_47 = arith.constant 0 : index
    %c0_48 = arith.constant 0 : index
    %44 = vector.load %arg6[%c0_45, %c2_46, %c0_47, %c0_48] : memref<2x18x18x4xf32, #tpu.memory_space<vmem>>, vector<2x16x16x4xf32>
    %45 = vector.shape_cast %44 : vector<2x16x16x4xf32> to vector<512x4xf32>
    %46 = vector.extract_strided_slice %7 {offsets = [2, 0, 0, 0], sizes = [1, 1, 4, 8], strides = [1, 1, 1, 1]} : vector<3x3x4x8xf32> to vector<1x1x4x8xf32>
    %47 = vector.shape_cast %46 : vector<1x1x4x8xf32> to vector<4x8xf32>
    %cst_49 = arith.constant dense<0.000000e+00> : vector<512x8xf32>
    %48 = tpu.matmul %45, %47, %cst_49 {dimension_numbers = #tpu.dot_dimension_numbers<[1], [0], [0], [1], [0, 0, 1, 1], [], []>} : vector<512x4xf32>, vector<4x8xf32>, vector<512x8xf32> -> vector<512x8xf32>
    %49 = arith.addf %43, %48 : vector<512x8xf32>
    %c0_50 = arith.constant 0 : index
    %c2_51 = arith.constant 2 : index
    %c1_52 = arith.constant 1 : index
    %c0_53 = arith.constant 0 : index
    %50 = vector.load %arg6[%c0_50, %c2_51, %c1_52, %c0_53] : memref<2x18x18x4xf32, #tpu.memory_space<vmem>>, vector<2x16x16x4xf32>
    %51 = vector.shape_cast %50 : vector<2x16x16x4xf32> to vector<512x4xf32>
    %52 = vector.extract_strided_slice %7 {offsets = [2, 1, 0, 0], sizes = [1, 1, 4, 8], strides = [1, 1, 1, 1]} : vector<3x3x4x8xf32> to vector<1x1x4x8xf32>
    %53 = vector.shape_cast %52 : vector<1x1x4x8xf32> to vector<4x8xf32>
    %cst_54 = arith.constant dense<0.000000e+00> : vector<512x8xf32>
    %54 = tpu.matmul %51, %53, %cst_54 {dimension_numbers = #tpu.dot_dimension_numbers<[1], [0], [0], [1], [0, 0, 1, 1], [], []>} : vector<512x4xf32>, vector<4x8xf32>, vector<512x8xf32> -> vector<512x8xf32>
    %55 = arith.addf %49, %54 : vector<512x8xf32>
    %c0_55 = arith.constant 0 : index
    %c2_56 = arith.constant 2 : index
    %c2_57 = arith.constant 2 : index
    %c0_58 = arith.constant 0 : index
    %56 = vector.load %arg6[%c0_55, %c2_56, %c2_57, %c0_58] : memref<2x18x18x4xf32, #tpu.memory_space<vmem>>, vector<2x16x16x4xf32>
    %57 = vector.shape_cast %56 : vector<2x16x16x4xf32> to vector<512x4xf32>
    %58 = vector.extract_strided_slice %7 {offsets = [2, 2, 0, 0], sizes = [1, 1, 4, 8], strides = [1, 1, 1, 1]} : vector<3x3x4x8xf32> to vector<1x1x4x8xf32>
    %59 = vector.shape_cast %58 : vector<1x1x4x8xf32> to vector<4x8xf32>
    %cst_59 = arith.constant dense<0.000000e+00> : vector<512x8xf32>
    %60 = tpu.matmul %57, %59, %cst_59 {dimension_numbers = #tpu.dot_dimension_numbers<[1], [0], [0], [1], [0, 0, 1, 1], [], []>} : vector<512x4xf32>, vector<4x8xf32>, vector<512x8xf32> -> vector<512x8xf32>
    %61 = arith.addf %55, %60 : vector<512x8xf32>
    %cst_60 = arith.constant dense<0.000000e+00> : vector<8xf32>
    %62 = vector.multi_reduction <add>, %61, %cst_60 [0] : vector<512x8xf32> to vector<8xf32>
    %63 = vector.shape_cast %62 : vector<8xf32> to vector<1x8xf32>
    %cst_61 = arith.constant 5.120000e+02 : f32
    %64 = vector.broadcast %cst_61 : f32 to vector<1x8xf32>
    %65 = arith.divf %63, %64 : vector<1x8xf32>
    %66 = vector.broadcast %65 : vector<1x8xf32> to vector<512x8xf32>
    %67 = arith.subf %61, %66 : vector<512x8xf32>
    %68 = arith.mulf %67, %67 : vector<512x8xf32>
    %cst_62 = arith.constant dense<0.000000e+00> : vector<8xf32>
    %69 = vector.multi_reduction <add>, %68, %cst_62 [0] : vector<512x8xf32> to vector<8xf32>
    %70 = vector.shape_cast %69 : vector<8xf32> to vector<1x8xf32>
    %cst_63 = arith.constant 5.120000e+02 : f32
    %71 = vector.broadcast %cst_63 : f32 to vector<1x8xf32>
    %72 = arith.divf %70, %71 : vector<1x8xf32>
    %73 = vector.broadcast %65 : vector<1x8xf32> to vector<512x8xf32>
    %74 = arith.subf %61, %73 : vector<512x8xf32>
    %cst_64 = arith.constant 9.99999974E-6 : f32
    %75 = vector.broadcast %cst_64 : f32 to vector<1x8xf32>
    %76 = arith.addf %72, %75 : vector<1x8xf32>
    %77 = math.rsqrt %76 : vector<1x8xf32>
    %78 = vector.broadcast %77 : vector<1x8xf32> to vector<512x8xf32>
    %79 = arith.mulf %74, %78 : vector<512x8xf32>
    %c0_65 = arith.constant 0 : index
    %c0_66 = arith.constant 0 : index
    %c0_67 = arith.constant 0 : index
    %c0_68 = arith.constant 0 : index
    %80 = vector.load %arg3[%c0_65, %c0_66, %c0_67, %c0_68] : memref<1x1x1x8xf32, #tpu.memory_space<vmem>>, vector<1x1x1x8xf32>
    %81 = vector.shape_cast %80 : vector<1x1x1x8xf32> to vector<1x8xf32>
    %82 = vector.broadcast %81 : vector<1x8xf32> to vector<512x8xf32>
    %83 = arith.mulf %79, %82 : vector<512x8xf32>
    %c0_69 = arith.constant 0 : index
    %c0_70 = arith.constant 0 : index
    %c0_71 = arith.constant 0 : index
    %c0_72 = arith.constant 0 : index
    %84 = vector.load %arg4[%c0_69, %c0_70, %c0_71, %c0_72] : memref<1x1x1x8xf32, #tpu.memory_space<vmem>>, vector<1x1x1x8xf32>
    %85 = vector.shape_cast %84 : vector<1x1x1x8xf32> to vector<1x8xf32>
    %86 = vector.broadcast %85 : vector<1x8xf32> to vector<512x8xf32>
    %87 = arith.addf %83, %86 : vector<512x8xf32>
    %88 = vector.shape_cast %87 : vector<512x8xf32> to vector<2x16x16x8xf32>
    %c0_73 = arith.constant 0 : index
    %c0_74 = arith.constant 0 : index
    %c0_75 = arith.constant 0 : index
    %c0_76 = arith.constant 0 : index
    %89 = vector.load %arg5[%c0_73, %c0_74, %c0_75, %c0_76] : memref<2x16x16x8xf32, #tpu.memory_space<vmem>>, vector<2x16x16x8xf32>
    tpu.vector_store %arg5[%c0_73, %c0_74, %c0_75, %c0_76], %88 {strides = array<i32>} : memref<2x16x16x8xf32, #tpu.memory_space<vmem>>, vector<2x16x16x8xf32>,
    return
  }
  func.func @transform_0(%arg0: i32) -> (i32, i32, i32, i32) {
    %c0_i32 = arith.constant 0 : i32
    %c0_i32_0 = arith.constant 0 : i32
    %c0_i32_1 = arith.constant 0 : i32
    %c0_i32_2 = arith.constant 0 : i32
    %c0_i32_3 = arith.constant 0 : i32
    return %c0_i32, %c0_i32_0, %c0_i32_1, %c0_i32_2 : i32, i32, i32, i32
  }
  func.func @transform_1(%arg0: i32) -> (i32, i32, i32, i32) {
    %c0_i32 = arith.constant 0 : i32
    %c0_i32_0 = arith.constant 0 : i32
    %c0_i32_1 = arith.constant 0 : i32
    %c0_i32_2 = arith.constant 0 : i32
    %c0_i32_3 = arith.constant 0 : i32
    return %c0_i32, %c0_i32_0, %c0_i32_1, %c0_i32_2 : i32, i32, i32, i32
  }
  func.func @transform_2(%arg0: i32) -> (i32, i32, i32, i32) {
    %c0_i32 = arith.constant 0 : i32
    %c0_i32_0 = arith.constant 0 : i32
    %c0_i32_1 = arith.constant 0 : i32
    %c0_i32_2 = arith.constant 0 : i32
    %c0_i32_3 = arith.constant 0 : i32
    return %c0_i32, %c0_i32_0, %c0_i32_1, %c0_i32_2 : i32, i32, i32, i32
  }
  func.func @transform_3(%arg0: i32) -> (i32, i32, i32, i32) {
    %c0_i32 = arith.constant 0 : i32
    %c0_i32_0 = arith.constant 0 : i32
    %c0_i32_1 = arith.constant 0 : i32
    %c0_i32_2 = arith.constant 0 : i32
    %c0_i32_3 = arith.constant 0 : i32
    return %c0_i32, %c0_i32_0, %c0_i32_1, %c0_i32_2 : i32, i32, i32, i32
  }
  func.func @transform_4(%arg0: i32) -> (i32, i32, i32, i32) {
    %c0_i32 = arith.constant 0 : i32
    %c0_i32_0 = arith.constant 0 : i32
    %c0_i32_1 = arith.constant 0 : i32
    %c0_i32_2 = arith.constant 0 : i32
    %c0_i32_3 = arith.constant 0 : i32
    return %c0_i32, %c0_i32_0, %c0_i32_1, %c0_i32_2 : i32, i32, i32, i32
  }
}

</mosaic_0001>

<bundles_post_ra>
// kernel: tpu_custom_call.1
= control target key start
LH: loop header
LB: loop body
LE: loop exit
PB: predicated region body
PF: predicated region fallthrough
CT: control target
= control target key end

     0   :  { %vm649_vm0 = vcmask 1043456   ;;  %vm145_vm1 = vcmask 31744   ;;  %vm148_vm2 = vcmask 25600   ;;  %v9821_v1 = vmov 0.0   ;;  %s13254_s1 = inlined_call_operand.vmem [shape: f32[3,3,4,8], index: 1, kind: input, shape index: {}]   ;;  %s13255_s0 = inlined_call_operand.vmem [shape: f32[2,16,16,4], index: 0, kind: input, shape index: {}]   ;;  %s13256_s2 = inlined_call_operand.vmem [shape: f32[1,1,1,8], index: 2, kind: input, shape index: {}]   ;;  %s13257_s3 = inlined_call_operand.vmem [shape: f32[1,1,1,8], index: 3, kind: input, shape index: {}]   ;;  %s13258_s4 = inlined_call_operand.vmem [shape: f32[2,16,16,8], index: 4, kind: output, shape index: {}]  }
   0x1   :  { %v9850_v0 = vld [vmem:[%s13254_s1 + $0x4] sm:$0xf]  ;;  %146 = vst.msk [vmem:[#allocation2] sm:$0xff] %vm145_vm1, %v9821_v1  ;;  %147 = vst.msk [vmem:[#allocation2 + $0x8] sm:$0xff] %vm145_vm1, %v9821_v1  ;;  %v324_v2 = vld [vmem:[%s13254_s1 + $0x10] sm:$0xf] }
   0x2   :  { %150 = vst.msk [vmem:[#allocation2 + $0x18] sm:$0xff] %vm145_vm1, %v9821_v1  ;;  %151 = vst.msk [vmem:[#allocation2 + $0x20] sm:$0xff] %vm145_vm1, %v9821_v1  ;;  %v10074_v3 = vld [vmem:[%s13254_s1] sm:$0xf]  ;;  %8421 = vmatprep.subr.msk.mxu1 %vm649_vm0, %v9850_v0  ;;  %8813 = vmatprep.subr.msk.mxu0 %vm649_vm0, %v324_v2  ;;  %v10085_v5 = vld [vmem:[%s13254_s1 + $0x14] sm:$0xf] }
   0x3   :  { %153 = vst.msk [vmem:[#allocation2 + $0x30] sm:$0xff] %vm145_vm1, %v9821_v1  ;;  %154 = vst.msk [vmem:[#allocation2 + $0x38] sm:$0xff] %vm145_vm1, %v9821_v1  ;;  %v17_v4 = vld [vmem:[%s13255_s0] sm:$0xff]  ;;  %v18_v6 = vld [vmem:[%s13255_s0 + $0x8] sm:$0xff]  ;;  %8422 = vmatpush3.msk.msra.mxu1 %vm649_vm0, %v9850_v0  ;;  %8814 = vmatpush3.msk.msra.mxu0 %vm649_vm0, %v324_v2  ;;  %vm6575_vm3 = vcmask 64512  }
   0x4   :  { %156 = vst.msk [vmem:[#allocation2 + $0x48] sm:$0xff] %vm145_vm1, %v9821_v1  ;;  %157 = vst.msk [vmem:[#allocation2 + $0x50] sm:$0xff] %vm145_vm1, %v9821_v1  ;;  %v81_v7 = vmax.f32 %v17_v4, 0.0  ;;  %v82_v8 = vmax.f32 %v18_v6, 0.0  ;;  %v19_v9 = vld [vmem:[%s13255_s0 + $0x10] sm:$0xff]  ;;  %v20_v10 = vld [vmem:[%s13255_s0 + $0x18] sm:$0xff]  ;;  %8519 = vmatprep.subr.msk.mxu1 %vm649_vm0, %v10074_v3  ;;  %8911 = vmatprep.subr.msk.mxu0 %vm649_vm0, %v10085_v5 }
   0x5   :  { %159 = vst.msk [vmem:[#allocation2 + $0x60] sm:$0xff] %vm145_vm1, %v9821_v1  ;;  %160 = vst.msk [vmem:[#allocation2 + $0x68] sm:$0xff] %vm145_vm1, %v9821_v1  ;;  %v21_v11 = vld [vmem:[%s13255_s0 + $0x20] sm:$0xff]  ;;  %v83_v12 = vmax.f32 %v19_v9, 0.0  ;;  %v84_v13 = vmax.f32 %v20_v10, 0.0  ;;  %v22_v15 = vld [vmem:[%s13255_s0 + $0x28] sm:$0xff] }
   0x6   :  { %162 = vst.msk [vmem:[#allocation2 + $0x78] sm:$0xff] %vm145_vm1, %v9821_v1  ;;  %163 = vst.msk [vmem:[#allocation2 + $0x80] sm:$0xff] %vm145_vm1, %v9821_v1  ;;  %v85_v14 = vmax.f32 %v21_v11, 0.0  ;;  %v23_v16 = vld [vmem:[%s13255_s0 + $0x30] sm:$0xff]  ;;  %v24_v17 = vld [vmem:[%s13255_s0 + $0x38] sm:$0xff]  ;;  %v86_v18 = vmax.f32 %v22_v15, 0.0 }
   0x7   :  { %165 = vst.msk [vmem:[#allocation2 + $0x90] sm:$0xff] %vm145_vm1, %v9821_v1  ;;  %166 = vst.msk [vmem:[#allocation2 + $0x98] sm:$0xff] %vm145_vm1, %v9821_v1  ;;  %v87_v19 = vmax.f32 %v23_v16, 0.0  ;;  %v88_v20 = vmax.f32 %v24_v17, 0.0  ;;  %v25_v21 = vld [vmem:[%s13255_s0 + $0x40] sm:$0xff]  ;;  %v26_v22 = vld [vmem:[%s13255_s0 + $0x48] sm:$0xff] }
   0x8   :  { %168 = vst.msk [vmem:[#allocation2 + $0xa8] sm:$0xff] %vm145_vm1, %v9821_v1  ;;  %169 = vst.msk [vmem:[#allocation2 + $0xb0] sm:$0xff] %vm145_vm1, %v9821_v1  ;;  %v27_v23 = vld [vmem:[%s13255_s0 + $0x50] sm:$0xff]  ;;  %v89_v24 = vmax.f32 %v25_v21, 0.0  ;;  %v90_v25 = vmax.f32 %v26_v22, 0.0  ;;  %v28_v27 = vld [vmem:[%s13255_s0 + $0x58] sm:$0xff] }
   0x9   :  { %171 = vst.msk [vmem:[#allocation2 + $0xc0] sm:$0xff] %vm145_vm1, %v9821_v1  ;;  %172 = vst.msk [vmem:[#allocation2 + $0xc8] sm:$0xff] %vm145_vm1, %v9821_v1  ;;  %v91_v26 = vmax.f32 %v27_v23, 0.0  ;;  %v29_v28 = vld [vmem:[%s13255_s0 + $0x60] sm:$0xff]  ;;  %v30_v29 = vld [vmem:[%s13255_s0 + $0x68] sm:$0xff]  ;;  %v92_v30 = vmax.f32 %v28_v27, 0.0 }
   0xa   :  { %174 = vst.msk [vmem:[#allocation2 + $0xd8] sm:$0xff] %vm145_vm1, %v9821_v1  ;;  %175 = vst.msk [vmem:[#allocation2 + $0xe0] sm:$0xff] %vm145_vm1, %v9821_v1  ;;  %v93_v31 = vmax.f32 %v29_v28, 0.0  ;;  %v94_v32 = vmax.f32 %v30_v29, 0.0  ;;  %v31_v33 = vld [vmem:[%s13255_s0 + $0x70] sm:$0xff]  ;;  %v32_v34 = vld [vmem:[%s13255_s0 + $0x78] sm:$0xff] }
   0xb   :  { %177 = vst.msk [vmem:[#allocation2 + $0xf0] sm:$0xff] %vm145_vm1, %v9821_v1  ;;  %178 = vst.msk [vmem:[#allocation2 + $0xf8] sm:$0xff] %vm145_vm1, %v9821_v1  ;;  %v33_v35 = vld [vmem:[%s13255_s0 + $0x80] sm:$0xff]  ;;  %v95_v38 = vmax.f32 %v31_v33, 0.0  ;;  %v96_v39 = vmax.f32 %v32_v34, 0.0  ;;  %v34_v41 = vld [vmem:[%s13255_s0 + $0x88] sm:$0xff] }
   0xc   :  { %180 = vst.msk [vmem:[#allocation2 + $0x108] sm:$0xff] %vm145_vm1, %v9821_v1  ;;  %181 = vst.msk [vmem:[#allocation2 + $0x110] sm:$0xff] %vm145_vm1, %v9821_v1  ;;  %v393_v36 = vld [vmem:[#allocation2 + $0x1] sm:$0xff]  ;;  %v97_v40 = vmax.f32 %v33_v35, 0.0  ;;  %v98_v42 = vmax.f32 %v34_v41, 0.0  ;;  %v35_v43 = vld [vmem:[%s13255_s0 + $0x90] sm:$0xff] }
   0xd   :  { %183 = vst.msk [vmem:[#allocation2 + $0x120] sm:$0xff] %vm145_vm1, %v9821_v1  ;;  %184 = vst.msk [vmem:[#allocation2 + $0x128] sm:$0xff] %vm145_vm1, %v9821_v1  ;;  %8423 = vmatprep.mubr.msk.f32.mxu1 %vm145_vm1, %v393_v36  ;;  %v36_v44 = vld [vmem:[%s13255_s0 + $0x98] sm:$0xff]  ;;  %v37_v45 = vld [vmem:[%s13255_s0 + $0xa0] sm:$0xff]  ;;  %v99_v46 = vmax.f32 %v35_v43, 0.0 }
   0xe   :  { %186 = vst.msk [vmem:[#allocation2 + $0x138] sm:$0xff] %vm145_vm1, %v9821_v1  ;;  %187 = vst.msk [vmem:[#allocation2 + $0x140] sm:$0xff] %vm145_vm1, %v9821_v1  ;;  %v100_v47 = vmax.f32 %v36_v44, 0.0  ;;  %v101_v48 = vmax.f32 %v37_v45, 0.0  ;;  %v38_v49 = vld [vmem:[%s13255_s0 + $0xa8] sm:$0xff]  ;;  %v39_v50 = vld [vmem:[%s13255_s0 + $0xb0] sm:$0xff] }
   0xf   :  { %189 = vst.msk [vmem:[#allocation2 + $0x150] sm:$0xff] %vm145_vm1, %v9821_v1  ;;  %190 = vst.msk [vmem:[#allocation2 + $0x158] sm:$0xff] %vm145_vm1, %v9821_v1  ;;  %v40_v51 = vld [vmem:[%s13255_s0 + $0xb8] sm:$0xff]  ;;  %v102_v52 = vmax.f32 %v38_v49, 0.0  ;;  %v103_v53 = vmax.f32 %v39_v50, 0.0  ;;  %v41_v55 = vld [vmem:[%s13255_s0 + $0xc0] sm:$0xff] }
  0x10   :  { %192 = vst.msk [vmem:[#allocation2 + $0x168] sm:$0xff] %vm145_vm1, %v9821_v1  ;;  %193 = vst.msk [vmem:[#allocation2 + $0x170] sm:$0xff] %vm145_vm1, %v9821_v1  ;;  %v104_v54 = vmax.f32 %v40_v51, 0.0  ;;  %v42_v56 = vld [vmem:[%s13255_s0 + $0xc8] sm:$0xff]  ;;  %v43_v57 = vld [vmem:[%s13255_s0 + $0xd0] sm:$0xff]  ;;  %v105_v60 = vmax.f32 %v41_v55, 0.0 }
  0x11   :  { %195 = vst.msk [vmem:[#allocation2 + $0x180] sm:$0xff] %vm145_vm1, %v9821_v1  ;;  %196 = vst.msk [vmem:[#allocation2 + $0x188] sm:$0xff] %vm145_vm1, %v9821_v1  ;;  %v106_v61 = vmax.f32 %v42_v56, 0.0  ;;  %v107_v62 = vmax.f32 %v43_v57, 0.0  ;;  %v44_v63 = vld [vmem:[%s13255_s0 + $0xd8] sm:$0xff]  ;;  %v45_v4 = vld [vmem:[%s13255_s0 + $0xe0] sm:$0xff] }
  0x12   :  { %198 = vst.msk [vmem:[#allocation2 + $0x198] sm:$0xff] %vm145_vm1, %v9821_v1  ;;  %199 = vst.msk [vmem:[#allocation2 + $0x1a0] sm:$0xff] %vm145_vm1, %v9821_v1  ;;  %v47_v10 = vld [vmem:[%s13255_s0 + $0xf0] sm:$0xff]  ;;  %v10240_v16 = vld [vmem:[%s13254_s1 + $0x18] sm:$0xf] }
  0x13   :  { %201 = vst.msk [vmem:[#allocation2 + $0x1b0] sm:$0xff] %vm145_vm1, %v9821_v1  ;;  %202 = vst.msk [vmem:[#allocation2 + $0x1b8] sm:$0xff] %vm145_vm1, %v9821_v1  ;;  %v49_v17 = vld [vmem:[%s13255_s0 + $0x100] sm:$0xff]  ;;  %v52_v23 = vld [vmem:[%s13255_s0 + $0x118] sm:$0xff] }
  0x14   :  { %204 = vst.msk [vmem:[#allocation2 + $0x1c8] sm:$0xff] %vm145_vm1, %v9821_v1  ;;  %205 = vst.msk [vmem:[#allocation2 + $0x1d0] sm:$0xff] %vm145_vm1, %v9821_v1  ;;  %v54_v27 = vld [vmem:[%s13255_s0 + $0x128] sm:$0xff]  ;;  %v57_v35 = vld [vmem:[%s13255_s0 + $0x140] sm:$0xff] }
  0x15   :  { %207 = vst.msk [vmem:[#allocation2 + $0x1e0] sm:$0xff] %vm145_vm1, %v9821_v1  ;;  %208 = vst.msk [vmem:[#allocation2 + $0x1e8] sm:$0xff] %vm145_vm1, %v9821_v1  ;;  %v60_v43 = vld [vmem:[%s13255_s0 + $0x158] sm:$0xff]  ;;  %v61_v45 = vld [vmem:[%s13255_s0 + $0x160] sm:$0xff] }
  0x16   :  { %210 = vst.msk [vmem:[#allocation2 + $0x1f8] sm:$0xff] %vm145_vm1, %v9821_v1  ;;  %211 = vst.msk [vmem:[#allocation2 + $0x200] sm:$0xff] %vm145_vm1, %v9821_v1  ;;  %v124_v44 = vmax.f32 %v60_v43, 0.0  ;;  %v63_v51 = vld [vmem:[%s13255_s0 + $0x170] sm:$0xff]  ;;  %v65_v55 = vld [vmem:[%s13255_s0 + $0x180] sm:$0xff] }
  0x17   :  { %213 = vst.msk [vmem:[#allocation2 + $0x210] sm:$0xff] %vm145_vm1, %v9821_v1  ;;  %214 = vst.msk [vmem:[#allocation2 + $0x218] sm:$0xff] %vm145_vm1, %v9821_v1  ;;  %v129_v57 = vmax.f32 %v65_v55, 0.0 }
  0x18   :  { %216 = vst.msk [vmem:[#allocation2 + $0x228] sm:$0xff] %vm145_vm1, %v9821_v1  ;;  %217 = vst.msk [vmem:[#allocation2 + $0x230] sm:$0xff] %vm145_vm1, %v9821_v1 }
  0x19   :  { %219 = vst.msk [vmem:[#allocation2 + $0x240] sm:$0xff] %vm145_vm1, %v9821_v1  ;;  %220 = vst.msk [vmem:[#allocation2 + $0x248] sm:$0xff] %vm145_vm1, %v9821_v1 }
  0x1a   :  { %222 = vst.msk [vmem:[#allocation2 + $0x258] sm:$0xff] %vm145_vm1, %v9821_v1  ;;  %223 = vst.msk [vmem:[#allocation2 + $0x260] sm:$0xff] %vm145_vm1, %v9821_v1 }
  0x1b   :  { %225 = vst.msk [vmem:[#allocation2 + $0x270] sm:$0xff] %vm145_vm1, %v9821_v1  ;;  %226 = vst.msk [vmem:[#allocation2 + $0x278] sm:$0xff] %vm145_vm1, %v9821_v1 }
  0x1c   :  { %228 = vst.msk [vmem:[#allocation2 + $0x288] sm:$0xff] %vm145_vm1, %v9821_v1  ;;  %229 = vst.msk [vmem:[#allocation2 + $0x290] sm:$0xff] %vm145_vm1, %v9821_v1 }
  0x1d   :  { %231 = vst.msk [vmem:[#allocation2 + $0x2a0] sm:$0xff] %vm145_vm1, %v9821_v1  ;;  %232 = vst.msk [vmem:[#allocation2 + $0x2a8] sm:$0xff] %vm145_vm1, %v9821_v1 }
  0x1e   :  { %234 = vst.msk [vmem:[#allocation2 + $0x2b8] sm:$0xff] %vm145_vm1, %v9821_v1  ;;  %235 = vst.msk [vmem:[#allocation2 + $0x2c0] sm:$0xff] %vm145_vm1, %v9821_v1 }
  0x1f   :  { %237 = vst.msk [vmem:[#allocation2 + $0x2d0] sm:$0xff] %vm145_vm1, %v9821_v1  ;;  %238 = vst.msk [vmem:[#allocation2 + $0x2d8] sm:$0xff] %vm145_vm1, %v9821_v1 }
  0x20   :  { %240 = vst.msk [vmem:[#allocation2 + $0x2e8] sm:$0xff] %vm145_vm1, %v9821_v1  ;;  %241 = vst.msk [vmem:[#allocation2 + $0x2f0] sm:$0xff] %vm145_vm1, %v9821_v1 }
  0x21   :  { %243 = vst.msk [vmem:[#allocation2 + $0x300] sm:$0xff] %vm145_vm1, %v9821_v1  ;;  %244 = vst.msk [vmem:[#allocation2 + $0x308] sm:$0xff] %vm145_vm1, %v9821_v1 }
  0x22   :  { %246 = vst.msk [vmem:[#allocation2 + $0x318] sm:$0xff] %vm145_vm1, %v9821_v1  ;;  %247 = vst.msk [vmem:[#allocation2 + $0x320] sm:$0xff] %vm145_vm1, %v9821_v1 }
  0x23   :  { %249 = vst.msk [vmem:[#allocation2 + $0x330] sm:$0xff] %vm145_vm1, %v9821_v1  ;;  %250 = vst.msk [vmem:[#allocation2 + $0x338] sm:$0xff] %vm145_vm1, %v9821_v1 }
  0x24   :  { %252 = vst.msk [vmem:[#allocation2 + $0x348] sm:$0xff] %vm145_vm1, %v9821_v1  ;;  %253 = vst.msk [vmem:[#allocation2 + $0x350] sm:$0xff] %vm145_vm1, %v9821_v1 }
  0x25   :  { %149 = vst.msk [vmem:[#allocation2 + $0x10] sm:$0x3] %vm148_vm2, %v9821_v1  ;;  %152 = vst.msk [vmem:[#allocation2 + $0x28] sm:$0x3] %vm148_vm2, %v9821_v1 }
  0x26   :  { %155 = vst.msk [vmem:[#allocation2 + $0x40] sm:$0x3] %vm148_vm2, %v9821_v1  ;;  %158 = vst.msk [vmem:[#allocation2 + $0x58] sm:$0x3] %vm148_vm2, %v9821_v1 }
  0x27   :  { %161 = vst.msk [vmem:[#allocation2 + $0x70] sm:$0x3] %vm148_vm2, %v9821_v1  ;;  %164 = vst.msk [vmem:[#allocation2 + $0x88] sm:$0x3] %vm148_vm2, %v9821_v1 }
  0x28   :  { %167 = vst.msk [vmem:[#allocation2 + $0xa0] sm:$0x3] %vm148_vm2, %v9821_v1  ;;  %170 = vst.msk [vmem:[#allocation2 + $0xb8] sm:$0x3] %vm148_vm2, %v9821_v1 }
  0x29   :  { %173 = vst.msk [vmem:[#allocation2 + $0xd0] sm:$0x3] %vm148_vm2, %v9821_v1  ;;  %176 = vst.msk [vmem:[#allocation2 + $0xe8] sm:$0x3] %vm148_vm2, %v9821_v1 }
  0x2a   :  { %179 = vst.msk [vmem:[#allocation2 + $0x100] sm:$0x3] %vm148_vm2, %v9821_v1  ;;  %182 = vst.msk [vmem:[#allocation2 + $0x118] sm:$0x3] %vm148_vm2, %v9821_v1 }
  0x2b   :  { %185 = vst.msk [vmem:[#allocation2 + $0x130] sm:$0x3] %vm148_vm2, %v9821_v1  ;;  %188 = vst.msk [vmem:[#allocation2 + $0x148] sm:$0x3] %vm148_vm2, %v9821_v1 }
  0x2c   :  { %191 = vst.msk [vmem:[#allocation2 + $0x160] sm:$0x3] %vm148_vm2, %v9821_v1  ;;  %194 = vst.msk [vmem:[#allocation2 + $0x178] sm:$0x3] %vm148_vm2, %v9821_v1  ;;  %v394_v37 = vld [vmem:[#allocation2 + $0x9] sm:$0xff] }
  0x2d   :  { %197 = vst.msk [vmem:[#allocation2 + $0x190] sm:$0x3] %vm148_vm2, %v9821_v1  ;;  %200 = vst.msk [vmem:[#allocation2 + $0x1a8] sm:$0x3] %vm148_vm2, %v9821_v1  ;;  %8424 = vmatmul.mubr.msk.f32.vlgmr.msra.gmra.mrb[0].mxu1 %vm145_vm1, %v394_v37  ;;  %v121_v37 = vmax.f32 %v57_v35, 0.0 }
  0x2e   :  { %203 = vst.msk [vmem:[#allocation2 + $0x1c0] sm:$0x3] %vm148_vm2, %v9821_v1  ;;  %206 = vst.msk [vmem:[#allocation2 + $0x1d8] sm:$0x3] %vm148_vm2, %v9821_v1  ;;  %8520 = vmatpush3.msk.msra.mxu1 %vm649_vm0, %v10074_v3 }
  0x2f   :  { %209 = vst.msk [vmem:[#allocation2 + $0x1f0] sm:$0x3] %vm148_vm2, %v9821_v1  ;;  %212 = vst.msk [vmem:[#allocation2 + $0x208] sm:$0x3] %vm148_vm2, %v9821_v1 }
  0x30   :  { %215 = vst.msk [vmem:[#allocation2 + $0x220] sm:$0x3] %vm148_vm2, %v9821_v1  ;;  %218 = vst.msk [vmem:[#allocation2 + $0x238] sm:$0x3] %vm148_vm2, %v9821_v1 }
  0x31   :  { %221 = vst.msk [vmem:[#allocation2 + $0x250] sm:$0x3] %vm148_vm2, %v9821_v1  ;;  %224 = vst.msk [vmem:[#allocation2 + $0x268] sm:$0x3] %vm148_vm2, %v9821_v1 }
  0x32   :  { %227 = vst.msk [vmem:[#allocation2 + $0x280] sm:$0x3] %vm148_vm2, %v9821_v1  ;;  %230 = vst.msk [vmem:[#allocation2 + $0x298] sm:$0x3] %vm148_vm2, %v9821_v1 }
  0x33   :  { %233 = vst.msk [vmem:[#allocation2 + $0x2b0] sm:$0x3] %vm148_vm2, %v9821_v1  ;;  %236 = vst.msk [vmem:[#allocation2 + $0x2c8] sm:$0x3] %vm148_vm2, %v9821_v1 }
  0x34   :  { %239 = vst.msk [vmem:[#allocation2 + $0x2e0] sm:$0x3] %vm148_vm2, %v9821_v1  ;;  %242 = vst.msk [vmem:[#allocation2 + $0x2f8] sm:$0x3] %vm148_vm2, %v9821_v1 }
  0x35   :  { %245 = vst.msk [vmem:[#allocation2 + $0x310] sm:$0x3] %vm148_vm2, %v9821_v1  ;;  %248 = vst.msk [vmem:[#allocation2 + $0x328] sm:$0x3] %vm148_vm2, %v9821_v1 }
  0x36   :  { %251 = vst.msk [vmem:[#allocation2 + $0x340] sm:$0x3] %vm148_vm2, %v9821_v1  ;;  %254 = vst.msk [vmem:[#allocation2 + $0x358] sm:$0x3] %vm148_vm2, %v9821_v1  ;;  %v108_v1 = vmax.f32 %v44_v63, 0.0  ;;  %v68_v63 = vld [vmem:[%s13255_s0 + $0x198] sm:$0xff] }
  0x37   :  { %256 = vst.msk [vmem:[#allocation2 + $0x19] sm:$0xff] %vm145_vm1, %v81_v7  ;;  %257 = vst.msk [vmem:[#allocation2 + $0x21] sm:$0xff] %vm145_vm1, %v82_v8  ;;  %v109_v7 = vmax.f32 %v45_v4, 0.0 }
  0x38   :  { %258 = vst.msk [vmem:[#allocation2 + $0x31] sm:$0xff] %vm145_vm1, %v83_v12  ;;  %259 = vst.msk [vmem:[#allocation2 + $0x39] sm:$0xff] %vm145_vm1, %v84_v13  ;;  %v111_v12 = vmax.f32 %v47_v10, 0.0  ;;  %v48_v13 = vld [vmem:[%s13255_s0 + $0xf8] sm:$0xff] }
  0x39   :  { %260 = vst.msk [vmem:[#allocation2 + $0x49] sm:$0xff] %vm145_vm1, %v85_v14  ;;  %261 = vst.msk [vmem:[#allocation2 + $0x51] sm:$0xff] %vm145_vm1, %v86_v18  ;;  %v112_v15 = vmax.f32 %v48_v13, 0.0  ;;  %v113_v18 = vmax.f32 %v49_v17, 0.0 }
  0x3a   :  { %262 = vst.msk [vmem:[#allocation2 + $0x61] sm:$0xff] %vm145_vm1, %v87_v19  ;;  %263 = vst.msk [vmem:[#allocation2 + $0x69] sm:$0xff] %vm145_vm1, %v88_v20  ;;  %v50_v19 = vld [vmem:[%s13255_s0 + $0x108] sm:$0xff]  ;;  %v51_v20 = vld [vmem:[%s13255_s0 + $0x110] sm:$0xff] }
  0x3b   :  { %264 = vst.msk [vmem:[#allocation2 + $0x79] sm:$0xff] %vm145_vm1, %v89_v24  ;;  %265 = vst.msk [vmem:[#allocation2 + $0x81] sm:$0xff] %vm145_vm1, %v90_v25  ;;  %v114_v21 = vmax.f32 %v50_v19, 0.0  ;;  %v115_v22 = vmax.f32 %v51_v20, 0.0  ;;  %v116_v25 = vmax.f32 %v52_v23, 0.0  ;;  %v76_v20 = vld [vmem:[%s13255_s0 + $0x1d8] sm:$0xff] }
  0x3c   :  { %266 = vst.msk [vmem:[#allocation2 + $0x91] sm:$0xff] %vm145_vm1, %v91_v26  ;;  %267 = vst.msk [vmem:[#allocation2 + $0x99] sm:$0xff] %vm145_vm1, %v92_v30  ;;  %v53_v26 = vld [vmem:[%s13255_s0 + $0x120] sm:$0xff]  ;;  %v118_v30 = vmax.f32 %v54_v27, 0.0 }
  0x3d   :  { %268 = vst.msk [vmem:[#allocation2 + $0xa9] sm:$0xff] %vm145_vm1, %v93_v31  ;;  %269 = vst.msk [vmem:[#allocation2 + $0xb1] sm:$0xff] %vm145_vm1, %v94_v32  ;;  %v117_v29 = vmax.f32 %v53_v26, 0.0  ;;  %v55_v31 = vld [vmem:[%s13255_s0 + $0x130] sm:$0xff]  ;;  %v56_v32 = vld [vmem:[%s13255_s0 + $0x138] sm:$0xff] }
  0x3e   :  { %270 = vst.msk [vmem:[#allocation2 + $0xc1] sm:$0xff] %vm145_vm1, %v95_v38  ;;  %271 = vst.msk [vmem:[#allocation2 + $0xc9] sm:$0xff] %vm145_vm1, %v96_v39  ;;  %v3034_v58 = vld [vmem:[#allocation2 + $0x19] sm:$0xff]  ;;  %v3035_v59 = vld [vmem:[#allocation2 + $0x21] sm:$0xff]  ;;  %v119_v33 = vmax.f32 %v55_v31, 0.0  ;;  %v120_v34 = vmax.f32 %v56_v32, 0.0 }
  0x3f   :  { %272 = vst.msk [vmem:[#allocation2 + $0xd9] sm:$0xff] %vm145_vm1, %v97_v40  ;;  %273 = vst.msk [vmem:[#allocation2 + $0xe1] sm:$0xff] %vm145_vm1, %v98_v42  ;;  %8815 = vmatprep.mubr.msk.f32.mxu0 %vm145_vm1, %v3034_v58  ;;  %8426 = vmatprep.mubr.msk.f32.mxu1 %vm145_vm1, %v3034_v58  ;;  %v3036_v0 = vld [vmem:[#allocation2 + $0x31] sm:$0xff]  ;;  %v3037_v2 = vld [vmem:[#allocation2 + $0x39] sm:$0xff] }
  0x40   :  { %274 = vst.msk [vmem:[#allocation2 + $0xf1] sm:$0xff] %vm145_vm1, %v99_v46  ;;  %275 = vst.msk [vmem:[#allocation2 + $0xf9] sm:$0xff] %vm145_vm1, %v100_v47  ;;  %8816 = vmatmul.mubr.msk.f32.vlgmr.msra.gmra.mrb[0].mxu0 %vm145_vm1, %v3035_v59  ;;  %8427 = vmatmul.mubr.msk.f32.gmra.mrb[2].mxu1 %vm145_vm1, %v3035_v59  ;;  %v3038_v3 = vld [vmem:[#allocation2 + $0x49] sm:$0xff]  ;;  %v3039_v6 = vld [vmem:[#allocation2 + $0x51] sm:$0xff]  ;;  %v125_v46 = vmax.f32 %v61_v45, 0.0 }
  0x41   :  { %276 = vst.msk [vmem:[#allocation2 + $0x109] sm:$0xff] %vm145_vm1, %v101_v48  ;;  %277 = vst.msk [vmem:[#allocation2 + $0x111] sm:$0xff] %vm145_vm1, %v102_v52  ;;  %8912 = vmatpush3.msk.msra.mxu0 %vm649_vm0, %v10085_v5  ;;  %8818 = vmatprep.mubr.msk.f32.mxu0 %vm145_vm1, %v3036_v0  ;;  %v46_v5 = vld [vmem:[%s13255_s0 + $0xe8] sm:$0xff]  ;;  %v59_v39 = vld [vmem:[%s13255_s0 + $0x150] sm:$0xff]  ;;  %v127_v52 = vmax.f32 %v63_v51, 0.0 }
  0x42   :  { %278 = vst.msk [vmem:[#allocation2 + $0x121] sm:$0xff] %vm145_vm1, %v103_v53  ;;  %279 = vst.msk [vmem:[#allocation2 + $0x129] sm:$0xff] %vm145_vm1, %v104_v54  ;;  %8429 = vmatprep.mubr.msk.f32.mxu1 %vm145_vm1, %v3036_v0  ;;  %v110_v8 = vmax.f32 %v46_v5, 0.0  ;;  %v3040_v9 = vld [vmem:[#allocation2 + $0x61] sm:$0xff]  ;;  %v3041_v11 = vld [vmem:[#allocation2 + $0x69] sm:$0xff]  ;;  %9009 = vmatprep.subr.msk.mxu0 %vm649_vm0, %v10240_v16  ;;  %v123_v42 = vmax.f32 %v59_v39, 0.0 }
  0x43   :  { %280 = vst.msk [vmem:[#allocation2 + $0x139] sm:$0xff] %vm145_vm1, %v105_v60  ;;  %281 = vst.msk [vmem:[#allocation2 + $0x141] sm:$0xff] %vm145_vm1, %v106_v61  ;;  %v3042_v14 = vld [vmem:[#allocation2 + $0x79] sm:$0xff]  ;;  %v3043_v24 = vld [vmem:[#allocation2 + $0x81] sm:$0xff] }
  0x44   :  { %282 = vst.msk [vmem:[#allocation2 + $0x151] sm:$0xff] %vm145_vm1, %v107_v62  ;;  %283 = vst.msk [vmem:[#allocation2 + $0x159] sm:$0xff] %vm145_vm1, %v108_v1  ;;  %8819 = vmatmul.mubr.msk.f32.gmra.mrb[2].mxu0 %vm145_vm1, %v3037_v2  ;;  %8430 = vmatmul.mubr.msk.f32.gmra.mrb[4].mxu1 %vm145_vm1, %v3037_v2  ;;  %v3044_v28 = vld [vmem:[#allocation2 + $0x91] sm:$0xff]  ;;  %v3045_v36 = vld [vmem:[#allocation2 + $0x99] sm:$0xff]  ;;  %v132_v1 = vmax.f32 %v68_v63, 0.0 }
  0x45   :  { %8821 = vmatprep.mubr.msk.f32.mxu0 %vm145_vm1, %v3038_v3  ;;  %8432 = vmatprep.mubr.msk.f32.mxu1 %vm145_vm1, %v3038_v3  ;;  %284 = vst.msk [vmem:[#allocation2 + $0x169] sm:$0xff] %vm145_vm1, %v109_v7  ;;  %285 = vst.msk [vmem:[#allocation2 + $0x171] sm:$0xff] %vm145_vm1, %v110_v8  ;;  %v58_v38 = vld [vmem:[%s13255_s0 + $0x148] sm:$0xff]  ;;  %v3047_v48 = vld [vmem:[#allocation2 + $0xb1] sm:$0xff] }
  0x46   :  { %286 = vst.msk [vmem:[#allocation2 + $0x181] sm:$0xff] %vm145_vm1, %v111_v12  ;;  %287 = vst.msk [vmem:[#allocation2 + $0x189] sm:$0xff] %vm145_vm1, %v112_v15  ;;  %v3046_v40 = vld [vmem:[#allocation2 + $0xa9] sm:$0xff]  ;;  %v122_v41 = vmax.f32 %v58_v38, 0.0  ;;  %v3048_v50 = vld [vmem:[#allocation2 + $0xc1] sm:$0xff] }
  0x47   :  { %288 = vst.msk [vmem:[#allocation2 + $0x1c9] sm:$0xff] %vm145_vm1, %v113_v18  ;;  %289 = vst.msk [vmem:[#allocation2 + $0x1d1] sm:$0xff] %vm145_vm1, %v114_v21  ;;  %v62_v47 = vld [vmem:[%s13255_s0 + $0x168] sm:$0xff]  ;;  %v64_v53 = vld [vmem:[%s13255_s0 + $0x178] sm:$0xff]  ;;  %v140_v21 = vmax.f32 %v76_v20, 0.0 }
  0x48   :  { %8822 = vmatmul.mubr.msk.f32.gmra.mrb[4].mxu0 %vm145_vm1, %v3039_v6  ;;  %8433 = vmatmul.mubr.msk.f32.gmra.mrb[6].mxu1 %vm145_vm1, %v3039_v6  ;;  %290 = vst.msk [vmem:[#allocation2 + $0x1e1] sm:$0xff] %vm145_vm1, %v115_v22  ;;  %291 = vst.msk [vmem:[#allocation2 + $0x1e9] sm:$0xff] %vm145_vm1, %v116_v25  ;;  %v126_v49 = vmax.f32 %v62_v47, 0.0  ;;  %v128_v54 = vmax.f32 %v64_v53, 0.0  ;;  %v3049_v56 = vld [vmem:[#allocation2 + $0xc9] sm:$0xff]  ;;  %v3050_v59 = vld [vmem:[#allocation2 + $0xd9] sm:$0xff] }
  0x49   :  { %8824 = vmatprep.mubr.msk.f32.mxu0 %vm145_vm1, %v3040_v9  ;;  %8435 = vmatprep.mubr.msk.f32.mxu1 %vm145_vm1, %v3040_v9  ;;  %292 = vst.msk [vmem:[#allocation2 + $0x1f9] sm:$0xff] %vm145_vm1, %v117_v29  ;;  %293 = vst.msk [vmem:[#allocation2 + $0x201] sm:$0xff] %vm145_vm1, %v118_v30  ;;  %v66_v58 = vld [vmem:[%s13255_s0 + $0x188] sm:$0xff]  ;;  %v67_v61 = vld [vmem:[%s13255_s0 + $0x190] sm:$0xff] }
  0x4a   :  { %294 = vst.msk [vmem:[#allocation2 + $0x211] sm:$0xff] %vm145_vm1, %v119_v33  ;;  %295 = vst.msk [vmem:[#allocation2 + $0x219] sm:$0xff] %vm145_vm1, %v120_v34  ;;  %v130_v60 = vmax.f32 %v66_v58, 0.0  ;;  %v131_v62 = vmax.f32 %v67_v61, 0.0  ;;  %v3051_v0 = vld [vmem:[#allocation2 + $0xe1] sm:$0xff]  ;;  %v3052_v3 = vld [vmem:[#allocation2 + $0xf1] sm:$0xff] }
  0x4b   :  { %296 = vst.msk [vmem:[#allocation2 + $0x229] sm:$0xff] %vm145_vm1, %v121_v37  ;;  %297 = vst.msk [vmem:[#allocation2 + $0x231] sm:$0xff] %vm145_vm1, %v122_v41  ;;  %v69_v2 = vld [vmem:[%s13255_s0 + $0x1a0] sm:$0xff]  ;;  %v70_v5 = vld [vmem:[%s13255_s0 + $0x1a8] sm:$0xff] }
  0x4c   :  { %8825 = vmatmul.mubr.msk.f32.gmra.mrb[6].mxu0 %vm145_vm1, %v3041_v11  ;;  %8436 = vmatmul.mubr.msk.f32.gmra.mrb[8].mxu1 %vm145_vm1, %v3041_v11  ;;  %298 = vst.msk [vmem:[#allocation2 + $0x241] sm:$0xff] %vm145_vm1, %v123_v42  ;;  %299 = vst.msk [vmem:[#allocation2 + $0x249] sm:$0xff] %vm145_vm1, %v124_v44  ;;  %v133_v4 = vmax.f32 %v69_v2, 0.0  ;;  %v134_v6 = vmax.f32 %v70_v5, 0.0  ;;  %v71_v7 = vld [vmem:[%s13255_s0 + $0x1b0] sm:$0xff]  ;;  %v72_v8 = vld [vmem:[%s13255_s0 + $0x1b8] sm:$0xff] }
  0x4d   :  { %8827 = vmatprep.mubr.msk.f32.mxu0 %vm145_vm1, %v3042_v14  ;;  %8438 = vmatprep.mubr.msk.f32.mxu1 %vm145_vm1, %v3042_v14  ;;  %300 = vst.msk [vmem:[#allocation2 + $0x259] sm:$0xff] %vm145_vm1, %v125_v46  ;;  %301 = vst.msk [vmem:[#allocation2 + $0x261] sm:$0xff] %vm145_vm1, %v126_v49  ;;  %v135_v9 = vmax.f32 %v71_v7, 0.0  ;;  %v136_v10 = vmax.f32 %v72_v8, 0.0  ;;  %v73_v11 = vld [vmem:[%s13255_s0 + $0x1c0] sm:$0xff]  ;;  %v74_v14 = vld [vmem:[%s13255_s0 + $0x1c8] sm:$0xff] }
  0x4e   :  { %302 = vst.msk [vmem:[#allocation2 + $0x271] sm:$0xff] %vm145_vm1, %v127_v52  ;;  %303 = vst.msk [vmem:[#allocation2 + $0x279] sm:$0xff] %vm145_vm1, %v128_v54  ;;  %v3053_v12 = vld [vmem:[#allocation2 + $0xf9] sm:$0xff]  ;;  %v137_v13 = vmax.f32 %v73_v11, 0.0  ;;  %v3054_v15 = vld [vmem:[#allocation2 + $0x109] sm:$0xff]  ;;  %v138_v17 = vmax.f32 %v74_v14, 0.0 }
  0x4f   :  { %304 = vst.msk [vmem:[#allocation2 + $0x289] sm:$0xff] %vm145_vm1, %v129_v57  ;;  %305 = vst.msk [vmem:[#allocation2 + $0x291] sm:$0xff] %vm145_vm1, %v130_v60  ;;  %v75_v18 = vld [vmem:[%s13255_s0 + $0x1d0] sm:$0xff]  ;;  %v77_v22 = vld [vmem:[%s13255_s0 + $0x1e0] sm:$0xff] }
  0x50   :  { %8828 = vmatmul.mubr.msk.f32.gmra.mrb[8].mxu0 %vm145_vm1, %v3043_v24  ;;  %8439 = vmatmul.mubr.msk.f32.gmra.mrb[10].mxu1 %vm145_vm1, %v3043_v24  ;;  %306 = vst.msk [vmem:[#allocation2 + $0x2a1] sm:$0xff] %vm145_vm1, %v131_v62  ;;  %307 = vst.msk [vmem:[#allocation2 + $0x2a9] sm:$0xff] %vm145_vm1, %v132_v1  ;;  %v139_v19 = vmax.f32 %v75_v18, 0.0  ;;  %v3055_v23 = vld [vmem:[#allocation2 + $0x111] sm:$0xff]  ;;  %v141_v24 = vmax.f32 %v77_v22, 0.0  ;;  %v78_v25 = vld [vmem:[%s13255_s0 + $0x1e8] sm:$0xff] }
  0x51   :  { %8830 = vmatprep.mubr.msk.f32.mxu0 %vm145_vm1, %v3044_v28  ;;  %8441 = vmatprep.mubr.msk.f32.mxu1 %vm145_vm1, %v3044_v28  ;;  %308 = vst.msk [vmem:[#allocation2 + $0x2b9] sm:$0xff] %vm145_vm1, %v133_v4  ;;  %309 = vst.msk [vmem:[#allocation2 + $0x2c1] sm:$0xff] %vm145_vm1, %v134_v6  ;;  %v3056_v26 = vld [vmem:[#allocation2 + $0x121] sm:$0xff]  ;;  %v142_v27 = vmax.f32 %v78_v25, 0.0  ;;  %v3057_v29 = vld [vmem:[#allocation2 + $0x129] sm:$0xff] }
  0x52   :  { %310 = vst.msk [vmem:[#allocation2 + $0x2d1] sm:$0xff] %vm145_vm1, %v135_v9  ;;  %311 = vst.msk [vmem:[#allocation2 + $0x2d9] sm:$0xff] %vm145_vm1, %v136_v10  ;;  %v10396_v28 = vld [vmem:[%s13254_s1 + $0x8] sm:$0xf]  ;;  %v3058_v30 = vld [vmem:[#allocation2 + $0x139] sm:$0xff] }
  0x53   :  { %312 = vst.msk [vmem:[#allocation2 + $0x2e9] sm:$0xff] %vm145_vm1, %v137_v13  ;;  %313 = vst.msk [vmem:[#allocation2 + $0x2f1] sm:$0xff] %vm145_vm1, %v138_v17  ;;  %8617 = vmatprep.subr.msk.mxu1 %vm649_vm0, %v10396_v28  ;;  %v3059_v31 = vld [vmem:[#allocation2 + $0x141] sm:$0xff]  ;;  %v3060_v32 = vld [vmem:[#allocation2 + $0x151] sm:$0xff] }
  0x54   :  { %8831 = vmatmul.mubr.msk.f32.gmra.mrb[10].mxu0 %vm145_vm1, %v3045_v36  ;;  %8442 = vmatmul.mubr.msk.f32.gmra.mrb[12].mxu1 %vm145_vm1, %v3045_v36  ;;  %314 = vst.msk [vmem:[#allocation2 + $0x301] sm:$0xff] %vm145_vm1, %v139_v19  ;;  %315 = vst.msk [vmem:[#allocation2 + $0x309] sm:$0xff] %vm145_vm1, %v140_v21  ;;  %v3061_v33 = vld [vmem:[#allocation2 + $0x159] sm:$0xff]  ;;  %v3062_v34 = vld [vmem:[#allocation2 + $0x169] sm:$0xff] }
  0x55   :  { %8833 = vmatprep.mubr.msk.f32.mxu0 %vm145_vm1, %v3046_v40  ;;  %8444 = vmatprep.mubr.msk.f32.mxu1 %vm145_vm1, %v3046_v40  ;;  %316 = vst.msk [vmem:[#allocation2 + $0x319] sm:$0xff] %vm145_vm1, %v141_v24  ;;  %317 = vst.msk [vmem:[#allocation2 + $0x321] sm:$0xff] %vm145_vm1, %v142_v27  ;;  %v3063_v35 = vld [vmem:[#allocation2 + $0x171] sm:$0xff]  ;;  %v3064_v36 = vld [vmem:[#allocation2 + $0x181] sm:$0xff] }
  0x56   :  { %v425_v37 = vld [vmem:[#allocation2 + $0x1b1] sm:$0xff]  ;;  %v3065_v38 = vld [vmem:[#allocation2 + $0x189] sm:$0xff]  ;;  %v426_v39 = vld [vmem:[#allocation2 + $0x1b9] sm:$0xff] }
  0x57   :  { %v10421_v40 = vld [vmem:[#allocation2 + $0x1a] sm:$0xff]  ;;  %v427_v41 = vld [vmem:[#allocation2 + $0x1c9] sm:$0xff]  ;;  %v428_v43 = vld [vmem:[#allocation2 + $0x1d1] sm:$0xff] }
  0x58   :  { %8834 = vmatmul.mubr.msk.f32.gmra.mrb[12].mxu0 %vm145_vm1, %v3047_v48  ;;  %8445 = vmatmul.mubr.msk.f32.gmra.mrb[14].mxu1 %vm145_vm1, %v3047_v48  ;;  %v10428_v42 = vld [vmem:[#allocation2 + $0x22] sm:$0xff]  ;;  %v10430_v44 = vld [vmem:[#allocation2 + $0x32] sm:$0xff]  ;;  %v10450_v51 = vld [vmem:[#allocation2 + $0x3a] sm:$0xff] }
  0x59   :  { %8836 = vmatprep.mubr.msk.f32.mxu0 %vm145_vm1, %v3048_v50  ;;  %8447 = vmatprep.mubr.msk.f32.mxu1 %vm145_vm1, %v3048_v50  ;;  %v429_v45 = vld [vmem:[#allocation2 + $0x1e1] sm:$0xff]  ;;  %v79_v46 = vld [vmem:[%s13255_s0 + $0x1f0] sm:$0xff]  ;;  %v80_v47 = vld [vmem:[%s13255_s0 + $0x1f8] sm:$0xff] }
  0x5a   :  { %v143_v48 = vmax.f32 %v79_v46, 0.0  ;;  %v144_v49 = vmax.f32 %v80_v47, 0.0  ;;  %v10444_v50 = vld [vmem:[%s13254_s1 + $0x1c] sm:$0xf]  ;;  %v430_v52 = vld [vmem:[#allocation2 + $0x1e9] sm:$0xff]  ;;  %v432_v55 = vld [vmem:[#allocation2 + $0x201] sm:$0xff] }
  0x5b   :  { %v10453_v53 = vld [vmem:[#allocation2 + $0x4a] sm:$0xff]  ;;  %v431_v54 = vld [vmem:[#allocation2 + $0x1f9] sm:$0xff]  ;;  %v10485_v62 = vld [vmem:[#allocation2 + $0x82] sm:$0xff] }
  0x5c   :  { %8837 = vmatmul.mubr.msk.f32.gmra.mrb[14].mxu0 %vm145_vm1, %v3049_v56  ;;  %8448 = vmatmul.mubr.msk.f32.gmra.mrb[16].mxu1 %vm145_vm1, %v3049_v56  ;;  %318 = vst.msk [vmem:[#allocation2 + $0x331] sm:$0xff] %vm145_vm1, %v143_v48  ;;  %319 = vst.msk [vmem:[#allocation2 + $0x339] sm:$0xff] %vm145_vm1, %v144_v49  ;;  %v10467_v56 = vld [vmem:[#allocation2 + $0x62] sm:$0xff]  ;;  %v433_v57 = vld [vmem:[#allocation2 + $0x211] sm:$0xff] }
  0x5d   :  { %8839 = vmatprep.mubr.msk.f32.mxu0 %vm145_vm1, %v3050_v59  ;;  %8450 = vmatprep.mubr.msk.f32.mxu1 %vm145_vm1, %v3050_v59  ;;  %v10475_v58 = vld [vmem:[#allocation2 + $0x6a] sm:$0xff]  ;;  %v434_v59 = vld [vmem:[#allocation2 + $0x219] sm:$0xff]  ;;  %v437_v1 = vld [vmem:[#allocation2 + $0x241] sm:$0xff] }
  0x5e   :  { %v10477_v60 = vld [vmem:[#allocation2 + $0x7a] sm:$0xff]  ;;  %v435_v61 = vld [vmem:[#allocation2 + $0x229] sm:$0xff]  ;;  %v436_v63 = vld [vmem:[#allocation2 + $0x231] sm:$0xff] }
  0x5f   :  { %v10495_v2 = vld [vmem:[#allocation2 + $0x9a] sm:$0xff]  ;;  %v10497_v4 = vld [vmem:[#allocation2 + $0xaa] sm:$0xff]  ;;  %v10505_v6 = vld [vmem:[#allocation2 + $0xb2] sm:$0xff] }
  0x60   :  { %8840 = vmatmul.mubr.msk.f32.gmra.mrb[16].mxu0 %vm145_vm1, %v3051_v0  ;;  %8451 = vmatmul.mubr.msk.f32.gmra.mrb[18].mxu1 %vm145_vm1, %v3051_v0  ;;  %v10487_v0 = vld [vmem:[#allocation2 + $0x92] sm:$0xff]  ;;  %v440_v7 = vld [vmem:[#allocation2 + $0x261] sm:$0xff]  ;;  %v10515_v10 = vld [vmem:[#allocation2 + $0xca] sm:$0xff] }
  0x61   :  { %8842 = vmatprep.mubr.msk.f32.mxu0 %vm145_vm1, %v3052_v3  ;;  %8453 = vmatprep.mubr.msk.f32.mxu1 %vm145_vm1, %v3052_v3  ;;  %v438_v3 = vld [vmem:[#allocation2 + $0x249] sm:$0xff]  ;;  %v439_v5 = vld [vmem:[#allocation2 + $0x259] sm:$0xff]  ;;  %v441_v9 = vld [vmem:[#allocation2 + $0x271] sm:$0xff] }
  0x62   :  { %v10507_v8 = vld [vmem:[#allocation2 + $0xc2] sm:$0xff]  ;;  %v442_v11 = vld [vmem:[#allocation2 + $0x279] sm:$0xff]  ;;  %v10537_v21 = vld [vmem:[#allocation2 + $0x10a] sm:$0xff] }
  0x63   :  { %v443_v13 = vld [vmem:[#allocation2 + $0x289] sm:$0xff]  ;;  %v10527_v17 = vld [vmem:[#allocation2 + $0xf2] sm:$0xff]  ;;  %v445_v18 = vld [vmem:[#allocation2 + $0x2a1] sm:$0xff] }
  0x64   :  { %8843 = vmatmul.mubr.msk.f32.gmra.mrb[18].mxu0 %vm145_vm1, %v3053_v12  ;;  %8454 = vmatmul.mubr.msk.f32.gmra.mrb[20].mxu1 %vm145_vm1, %v3053_v12  ;;  %v10517_v12 = vld [vmem:[#allocation2 + $0xda] sm:$0xff]  ;;  %v10525_v14 = vld [vmem:[#allocation2 + $0xe2] sm:$0xff]  ;;  %v10555_v27 = vld [vmem:[#allocation2 + $0x12a] sm:$0xff] }
  0x65   :  { %8845 = vmatprep.mubr.msk.f32.mxu0 %vm145_vm1, %v3054_v15  ;;  %8456 = vmatprep.mubr.msk.f32.mxu1 %vm145_vm1, %v3054_v15  ;;  %v444_v15 = vld [vmem:[#allocation2 + $0x291] sm:$0xff]  ;;  %v10535_v19 = vld [vmem:[#allocation2 + $0xfa] sm:$0xff]  ;;  %v446_v20 = vld [vmem:[#allocation2 + $0x2a9] sm:$0xff] }
  0x66   :  { %v447_v22 = vld [vmem:[#allocation2 + $0x2b9] sm:$0xff]  ;;  %v448_v24 = vld [vmem:[#allocation2 + $0x2c1] sm:$0xff]  ;;  %v3773_v47 = vld [vmem:[#allocation2 + $0x18a] sm:$0xff] }
  0x67   :  { %v10547_v25 = vld [vmem:[#allocation2 + $0x122] sm:$0xff]  ;;  %v10592_v49 = vld [vmem:[#allocation2 + $0x1ca] sm:$0xff] }
  0x68   :  { %8846 = vmatmul.mubr.msk.f32.gmra.mrb[20].mxu0 %vm145_vm1, %v3055_v23  ;;  %8457 = vmatmul.mubr.msk.f32.gmra.mrb[22].mxu1 %vm145_vm1, %v3055_v23  ;;  %v10545_v23 = vld [vmem:[#allocation2 + $0x112] sm:$0xff]  ;;  %v329_v46 = vld [vmem:[#allocation2] sm:$0xff]  ;;  %v330_v48 = vld [vmem:[#allocation2 + $0x8] sm:$0xff]  ;;  %13338 = vst [vmem:[#allocation6_spill] sm:$0xff] %v10592_v49 }
  0x69   :  { %8848 = vmatprep.mubr.msk.f32.mxu0 %vm145_vm1, %v3056_v26  ;;  %8459 = vmatprep.mubr.msk.f32.mxu1 %vm145_vm1, %v3056_v26  ;;  %v449_v26 = vld [vmem:[#allocation2 + $0x2d1] sm:$0xff] }
  0x6c   :  { %8849 = vmatmul.mubr.msk.f32.gmra.mrb[22].mxu0 %vm145_vm1, %v3057_v29  ;;  %8460 = vmatmul.mubr.msk.f32.gmra.mrb[24].mxu1 %vm145_vm1, %v3057_v29  ;;  %v450_v29 = vld [vmem:[#allocation2 + $0x2d9] sm:$0xff] }
  0x6d   :  { %8851 = vmatprep.mubr.msk.f32.mxu0 %vm145_vm1, %v3058_v30  ;;  %8462 = vmatprep.mubr.msk.f32.mxu1 %vm145_vm1, %v3058_v30  ;;  %v10557_v30 = vld [vmem:[#allocation2 + $0x13a] sm:$0xff] }
  0x70   :  { %8852 = vmatmul.mubr.msk.f32.gmra.mrb[24].mxu0 %vm145_vm1, %v3059_v31  ;;  %8463 = vmatmul.mubr.msk.f32.gmra.mrb[26].mxu1 %vm145_vm1, %v3059_v31  ;;  %v451_v31 = vld [vmem:[#allocation2 + $0x2e9] sm:$0xff] }
  0x71   :  { %8854 = vmatprep.mubr.msk.f32.mxu0 %vm145_vm1, %v3060_v32  ;;  %8465 = vmatprep.mubr.msk.f32.mxu1 %vm145_vm1, %v3060_v32  ;;  %v10565_v32 = vld [vmem:[#allocation2 + $0x142] sm:$0xff] }
  0x74   :  { %8855 = vmatmul.mubr.msk.f32.gmra.mrb[26].mxu0 %vm145_vm1, %v3061_v33  ;;  %8466 = vmatmul.mubr.msk.f32.gmra.mrb[28].mxu1 %vm145_vm1, %v3061_v33  ;;  %v452_v33 = vld [vmem:[#allocation2 + $0x2f1] sm:$0xff] }
  0x75   :  { %8857 = vmatprep.mubr.msk.f32.mxu0 %vm145_vm1, %v3062_v34  ;;  %8468 = vmatprep.mubr.msk.f32.mxu1 %vm145_vm1, %v3062_v34  ;;  %v10567_v34 = vld [vmem:[#allocation2 + $0x152] sm:$0xff] }
  0x78   :  { %8858 = vmatmul.mubr.msk.f32.gmra.mrb[28].mxu0 %vm145_vm1, %v3063_v35  ;;  %8469 = vmatmul.mubr.msk.f32.gmra.mrb[30].mxu1 %vm145_vm1, %v3063_v35  ;;  %v453_v35 = vld [vmem:[#allocation2 + $0x301] sm:$0xff] }
  0x79   :  { %8860 = vmatprep.mubr.msk.f32.mxu0 %vm145_vm1, %v3064_v36  ;;  %8471 = vmatprep.mubr.msk.f32.mxu1 %vm145_vm1, %v425_v37  ;;  %v10575_v36 = vld [vmem:[#allocation2 + $0x15a] sm:$0xff]  ;;  %v454_v37 = vld [vmem:[#allocation2 + $0x309] sm:$0xff] }
  0x7a   :  { %13335 = vst [vmem:[#allocation3_spill] sm:$0xff] %v10575_v36 }
  0x7c   :  { %8861 = vmatmul.mubr.msk.f32.gmra.mrb[30].mxu0 %vm145_vm1, %v3065_v38  ;;  %8472 = vmatmul.mubr.msk.f32.gmra.mrb[32].mxu1 %vm145_vm1, %v426_v39  ;;  %v10577_v38 = vld [vmem:[#allocation2 + $0x16a] sm:$0xff]  ;;  %v455_v39 = vld [vmem:[#allocation2 + $0x319] sm:$0xff] }
  0x7d   :  { %8913 = vmatprep.mubr.msk.f32.mxu0 %vm145_vm1, %v10421_v40  ;;  %8474 = vmatprep.mubr.msk.f32.mxu1 %vm145_vm1, %v427_v41  ;;  %13336 = vst [vmem:[#allocation4_spill] sm:$0xff] %v10577_v38  ;;  %v10585_v41 = vld [vmem:[#allocation2 + $0x172] sm:$0xff] }
  0x7e   :  { %13337 = vst [vmem:[#allocation5_spill] sm:$0xff] %v10585_v41 }
  0x80   :  { %8914 = vmatmul.mubr.msk.f32.vlgmr.msra.gmra.mrb[0].mxu0 %vm145_vm1, %v10428_v42  ;;  %8475 = vmatmul.mubr.msk.f32.gmra.mrb[34].mxu1 %vm145_vm1, %v428_v43  ;;  %v456_v43 = vld [vmem:[#allocation2 + $0x321] sm:$0xff] }
  0x81   :  { %9010 = vmatpush3.msk.msra.mxu0 %vm649_vm0, %v10240_v16  ;;  %8916 = vmatprep.mubr.msk.f32.mxu0 %vm145_vm1, %v10430_v44  ;;  %v10465_v16 = vld [vmem:[#allocation2 + $0x52] sm:$0xff] }
  0x82   :  { %8477 = vmatprep.mubr.msk.f32.mxu1 %vm145_vm1, %v429_v45  ;;  %9107 = vmatprep.subr.msk.mxu0 %vm649_vm0, %v10444_v50  ;;  %v3772_v45 = vld [vmem:[#allocation2 + $0x182] sm:$0xff] }
  0x84   :  { %8917 = vmatmul.mubr.msk.f32.gmra.mrb[2].mxu0 %vm145_vm1, %v10450_v51  ;;  %8478 = vmatmul.mubr.msk.f32.gmra.mrb[36].mxu1 %vm145_vm1, %v430_v52  ;;  %v331_v52 = vld [vmem:[#allocation2 + $0x18] sm:$0xff] }
  0x85   :  { %8919 = vmatprep.mubr.msk.f32.mxu0 %vm145_vm1, %v10453_v53  ;;  %8480 = vmatprep.mubr.msk.f32.mxu1 %vm145_vm1, %v431_v54  ;;  %v10599_v54 = vld [vmem:[%s13254_s1 + $0xc] sm:$0xf] }
  0x88   :  { %8920 = vmatmul.mubr.msk.f32.gmra.mrb[4].mxu0 %vm145_vm1, %v10465_v16  ;;  %8481 = vmatmul.mubr.msk.f32.gmra.mrb[38].mxu1 %vm145_vm1, %v432_v55  ;;  %v10604_v55 = vld [vmem:[#allocation2 + $0x1d2] sm:$0xff] }
  0x89   :  { %8922 = vmatprep.mubr.msk.f32.mxu0 %vm145_vm1, %v10467_v56  ;;  %8483 = vmatprep.mubr.msk.f32.mxu1 %vm145_vm1, %v433_v57  ;;  %13339 = vst [vmem:[#allocation7_spill] sm:$0xff] %v10604_v55  ;;  %v332_v57 = vld [vmem:[#allocation2 + $0x20] sm:$0xff] }
  0x8c   :  { %8923 = vmatmul.mubr.msk.f32.gmra.mrb[6].mxu0 %vm145_vm1, %v10475_v58  ;;  %8484 = vmatmul.mubr.msk.f32.gmra.mrb[40].mxu1 %vm145_vm1, %v434_v59  ;;  %v10608_v59 = vld [vmem:[#allocation2 + $0x1e2] sm:$0xff] }
  0x8d   :  { %8925 = vmatprep.mubr.msk.f32.mxu0 %vm145_vm1, %v10477_v60  ;;  %8486 = vmatprep.mubr.msk.f32.mxu1 %vm145_vm1, %v435_v61  ;;  %13340 = vst [vmem:[#allocation8_spill] sm:$0xff] %v10608_v59  ;;  %v10610_v61 = vld [vmem:[#allocation2 + $0x30] sm:$0xff] }
  0x90   :  { %8926 = vmatmul.mubr.msk.f32.gmra.mrb[8].mxu0 %vm145_vm1, %v10485_v62  ;;  %8487 = vmatmul.mubr.msk.f32.gmra.mrb[42].mxu1 %vm145_vm1, %v436_v63  ;;  %v10621_v63 = vld [vmem:[#allocation2 + $0x1ea] sm:$0xff] }
  0x91   :  { %8928 = vmatprep.mubr.msk.f32.mxu0 %vm145_vm1, %v10487_v0  ;;  %8489 = vmatprep.mubr.msk.f32.mxu1 %vm145_vm1, %v437_v1  ;;  %13341 = vst [vmem:[#allocation9_spill] sm:$0xff] %v10621_v63  ;;  %v10625_v1 = vld [vmem:[#allocation2 + $0x1fa] sm:$0xff] }
  0x92   :  { %13342 = vst [vmem:[#allocation10_spill] sm:$0xff] %v10625_v1 }
  0x94   :  { %8929 = vmatmul.mubr.msk.f32.gmra.mrb[10].mxu0 %vm145_vm1, %v10495_v2  ;;  %8490 = vmatmul.mubr.msk.f32.gmra.mrb[44].mxu1 %vm145_vm1, %v438_v3  ;;  %v10627_v3 = vld [vmem:[#allocation2 + $0x48] sm:$0xff] }
  0x95   :  { %8931 = vmatprep.mubr.msk.f32.mxu0 %vm145_vm1, %v10497_v4  ;;  %8492 = vmatprep.mubr.msk.f32.mxu1 %vm145_vm1, %v439_v5  ;;  %v10637_v5 = vld [vmem:[#allocation2 + $0x202] sm:$0xff] }
  0x96   :  { %13343 = vst [vmem:[#allocation11_spill] sm:$0xff] %v10637_v5 }
  0x98   :  { %8932 = vmatmul.mubr.msk.f32.gmra.mrb[12].mxu0 %vm145_vm1, %v10505_v6  ;;  %8493 = vmatmul.mubr.msk.f32.gmra.mrb[46].mxu1 %vm145_vm1, %v440_v7  ;;  %v10639_v7 = vld [vmem:[#allocation2 + $0x50] sm:$0xff] }
  0x99   :  { %8934 = vmatprep.mubr.msk.f32.mxu0 %vm145_vm1, %v10507_v8  ;;  %8495 = vmatprep.mubr.msk.f32.mxu1 %vm145_vm1, %v441_v9  ;;  %v10641_v9 = vld [vmem:[#allocation2 + $0x212] sm:$0xff] }
  0x9a   :  { %13344 = vst [vmem:[#allocation12_spill] sm:$0xff] %v10641_v9 }
  0x9c   :  { %8935 = vmatmul.mubr.msk.f32.gmra.mrb[14].mxu0 %vm145_vm1, %v10515_v10  ;;  %8496 = vmatmul.mubr.msk.f32.gmra.mrb[48].mxu1 %vm145_vm1, %v442_v11  ;;  %v10643_v11 = vld [vmem:[#allocation2 + $0x60] sm:$0xff] }
  0x9d   :  { %8937 = vmatprep.mubr.msk.f32.mxu0 %vm145_vm1, %v10517_v12  ;;  %8498 = vmatprep.mubr.msk.f32.mxu1 %vm145_vm1, %v443_v13  ;;  %v10653_v13 = vld [vmem:[#allocation2 + $0x21a] sm:$0xff] }
  0x9e   :  { %13345 = vst [vmem:[#allocation13_spill] sm:$0xff] %v10653_v13 }
  0xa0   :  { %8938 = vmatmul.mubr.msk.f32.gmra.mrb[16].mxu0 %vm145_vm1, %v10525_v14  ;;  %8499 = vmatmul.mubr.msk.f32.gmra.mrb[50].mxu1 %vm145_vm1, %v444_v15  ;;  %v10655_v15 = vld [vmem:[#allocation2 + $0x68] sm:$0xff] }
  0xa1   :  { %8940 = vmatprep.mubr.msk.f32.mxu0 %vm145_vm1, %v10527_v17  ;;  %8501 = vmatprep.mubr.msk.f32.mxu1 %vm145_vm1, %v445_v18  ;;  %v10657_v18 = vld [vmem:[#allocation2 + $0x22a] sm:$0xff] }
  0xa2   :  { %13346 = vst [vmem:[#allocation14_spill] sm:$0xff] %v10657_v18 }
  0xa4   :  { %8941 = vmatmul.mubr.msk.f32.gmra.mrb[18].mxu0 %vm145_vm1, %v10535_v19  ;;  %8502 = vmatmul.mubr.msk.f32.gmra.mrb[52].mxu1 %vm145_vm1, %v446_v20  ;;  %v10659_v20 = vld [vmem:[#allocation2 + $0x78] sm:$0xff] }
  0xa5   :  { %8943 = vmatprep.mubr.msk.f32.mxu0 %vm145_vm1, %v10537_v21  ;;  %8504 = vmatprep.mubr.msk.f32.mxu1 %vm145_vm1, %v447_v22  ;;  %v10669_v22 = vld [vmem:[#allocation2 + $0x232] sm:$0xff] }
  0xa6   :  { %13347 = vst [vmem:[#allocation15_spill] sm:$0xff] %v10669_v22 }
  0xa8   :  { %8944 = vmatmul.mubr.msk.f32.gmra.mrb[20].mxu0 %vm145_vm1, %v10545_v23  ;;  %8505 = vmatmul.mubr.msk.f32.gmra.mrb[54].mxu1 %vm145_vm1, %v448_v24  ;;  %v10671_v24 = vld [vmem:[#allocation2 + $0x80] sm:$0xff] }
  0xa9   :  { %8946 = vmatprep.mubr.msk.f32.mxu0 %vm145_vm1, %v10547_v25  ;;  %8507 = vmatprep.mubr.msk.f32.mxu1 %vm145_vm1, %v449_v26  ;;  %v10673_v26 = vld [vmem:[#allocation2 + $0x242] sm:$0xff] }
  0xaa   :  { %13348 = vst [vmem:[#allocation16_spill] sm:$0xff] %v10673_v26 }
  0xac   :  { %8947 = vmatmul.mubr.msk.f32.gmra.mrb[22].mxu0 %vm145_vm1, %v10555_v27  ;;  %8508 = vmatmul.mubr.msk.f32.gmra.mrb[56].mxu1 %vm145_vm1, %v450_v29  ;;  %v10675_v29 = vld [vmem:[#allocation2 + $0x90] sm:$0xff] }
  0xad   :  { %8949 = vmatprep.mubr.msk.f32.mxu0 %vm145_vm1, %v10557_v30  ;;  %8510 = vmatprep.mubr.msk.f32.mxu1 %vm145_vm1, %v451_v31  ;;  %v10685_v31 = vld [vmem:[#allocation2 + $0x24a] sm:$0xff] }
  0xae   :  { %13349 = vst [vmem:[#allocation17_spill] sm:$0xff] %v10685_v31 }
  0xb0   :  { %8950 = vmatmul.mubr.msk.f32.gmra.mrb[24].mxu0 %vm145_vm1, %v10565_v32  ;;  %8511 = vmatmul.mubr.msk.f32.gmra.mrb[58].mxu1 %vm145_vm1, %v452_v33  ;;  %v10687_v33 = vld [vmem:[#allocation2 + $0x98] sm:$0xff] }
  0xb1   :  { %8952 = vmatprep.mubr.msk.f32.mxu0 %vm145_vm1, %v10567_v34  ;;  %8513 = vmatprep.mubr.msk.f32.mxu1 %vm145_vm1, %v453_v35  ;;  %v10689_v35 = vld [vmem:[#allocation2 + $0x25a] sm:$0xff] }
  0xb2   :  { %13350 = vst [vmem:[#allocation18_spill] sm:$0xff] %v10689_v35 }
  0xb4   :  { %8953 = vmatmul.mubr.msk.f32.gmra.mrb[26].mxu0 %vm145_vm1, %v10575_v36  ;;  %8514 = vmatmul.mubr.msk.f32.gmra.mrb[60].mxu1 %vm145_vm1, %v454_v37  ;;  %v10691_v37 = vld [vmem:[#allocation2 + $0xa8] sm:$0xff]  ;;  %v10846_v36 = vld [vmem:[#allocation2 + $0x1e0] sm:$0xff] }
  0xb5   :  { %8955 = vmatprep.mubr.msk.f32.mxu0 %vm145_vm1, %v10577_v38  ;;  %8516 = vmatprep.mubr.msk.f32.mxu1 %vm145_vm1, %v455_v39  ;;  %v10701_v39 = vld [vmem:[#allocation2 + $0x262] sm:$0xff] }
  0xb6   :  { %13351 = vst [vmem:[#allocation19_spill] sm:$0xff] %v10701_v39  ;;  %v363_v38 = vld [vmem:[#allocation2 + $0x1c8] sm:$0xff] }
  0xb8   :  { %8956 = vmatmul.mubr.msk.f32.gmra.mrb[28].mxu0 %vm145_vm1, %v10585_v41  ;;  %8517 = vmatmul.mubr.msk.f32.gmra.mrb[62].mxu1 %vm145_vm1, %v456_v43  ;;  %v10703_v43 = vld [vmem:[#allocation2 + $0xb0] sm:$0xff] }
  0xb9   :  { %8958 = vmatprep.mubr.msk.f32.mxu0 %vm145_vm1, %v3772_v45  ;;  %8521 = vmatprep.mubr.msk.f32.mxu1 %vm145_vm1, %v329_v46  ;;  %v10705_v45 = vld [vmem:[#allocation2 + $0x272] sm:$0xff]  ;;  %v10707_v46 = vld [vmem:[#allocation2 + $0xc0] sm:$0xff] }
  0xba   :  { %13352 = vst [vmem:[#allocation20_spill] sm:$0xff] %v10705_v45  ;;  %v361_v41 = vld [vmem:[#allocation2 + $0x1b0] sm:$0xff] }
  0xbc   :  { %8959 = vmatmul.mubr.msk.f32.gmra.mrb[30].mxu0 %vm145_vm1, %v3773_v47  ;;  %8522 = vmatmul.mubr.msk.f32.vlgmr.msra.gmra.mrb[0].mxu1 %vm145_vm1, %v330_v48  ;;  %v10717_v47 = vld [vmem:[#allocation2 + $0x27a] sm:$0xff]  ;;  %v10719_v48 = vld [vmem:[#allocation2 + $0xc8] sm:$0xff] }
  0xbd   :  { %8961 = vmatprep.mubr.msk.f32.mxu0 %vm145_vm1, %v10592_v49  ;;  %8524 = vmatprep.mubr.msk.f32.mxu1 %vm145_vm1, %v331_v52  ;;  %13353 = vst [vmem:[#allocation21_spill] sm:$0xff] %v10717_v47  ;;  %v10721_v52 = vld [vmem:[#allocation2 + $0x28a] sm:$0xff]  ;;  %v3804_v49 = vld [vmem:[#allocation2 + $0x332] sm:$0xff] }
  0xbe   :  { %8618 = vmatpush3.msk.msra.mxu1 %vm649_vm0, %v10396_v28  ;;  %v10623_v28 = vld [vmem:[#allocation2 + $0x38] sm:$0xff]  ;;  %13354 = vst [vmem:[#allocation22_spill] sm:$0xff] %v10721_v52 }
  0xbf   :  { %8715 = vmatprep.subr.msk.mxu1 %vm649_vm0, %v10599_v54 }
  0xc0   :  { %8962 = vmatmul.mubr.msk.f32.gmra.mrb[32].mxu0 %vm145_vm1, %v10604_v55  ;;  %8525 = vmatmul.mubr.msk.f32.gmra.mrb[2].mxu1 %vm145_vm1, %v332_v57  ;;  %v10723_v57 = vld [vmem:[#allocation2 + $0xd8] sm:$0xff]  ;;  %v10819_v55 = vld [vmem:[#allocation2 + $0x168] sm:$0xff] }
  0xc1   :  { %8964 = vmatprep.mubr.msk.f32.mxu0 %vm145_vm1, %v10608_v59  ;;  %8527 = vmatprep.mubr.msk.f32.mxu1 %vm145_vm1, %v10610_v61  ;;  %v10817_v59 = vld [vmem:[#allocation2 + $0x31a] sm:$0xff] }
  0xc2   :  { %13366 = vst [vmem:[#allocation34_spill] sm:$0xff] %v10817_v59 }
  0xc4   :  { %8965 = vmatmul.mubr.msk.f32.gmra.mrb[34].mxu0 %vm145_vm1, %v10621_v63  ;;  %8528 = vmatmul.mubr.msk.f32.gmra.mrb[4].mxu1 %vm145_vm1, %v10623_v28  ;;  %v10803_v63 = vld [vmem:[#allocation2 + $0x150] sm:$0xff] }
  0xc5   :  { %8967 = vmatprep.mubr.msk.f32.mxu0 %vm145_vm1, %v10625_v1  ;;  %8530 = vmatprep.mubr.msk.f32.mxu1 %vm145_vm1, %v10627_v3  ;;  %v10801_v1 = vld [vmem:[#allocation2 + $0x302] sm:$0xff] }
  0xc6   :  { %13364 = vst [vmem:[#allocation32_spill] sm:$0xff] %v10801_v1 }
  0xc8   :  { %8968 = vmatmul.mubr.msk.f32.gmra.mrb[36].mxu0 %vm145_vm1, %v10637_v5  ;;  %8531 = vmatmul.mubr.msk.f32.gmra.mrb[6].mxu1 %vm145_vm1, %v10639_v7  ;;  %v10787_v5 = vld [vmem:[#allocation2 + $0x138] sm:$0xff] }
  0xc9   :  { %8970 = vmatprep.mubr.msk.f32.mxu0 %vm145_vm1, %v10641_v9  ;;  %8533 = vmatprep.mubr.msk.f32.mxu1 %vm145_vm1, %v10643_v11  ;;  %v10785_v9 = vld [vmem:[#allocation2 + $0x2ea] sm:$0xff] }
  0xca   :  { %13362 = vst [vmem:[#allocation30_spill] sm:$0xff] %v10785_v9 }
  0xcc   :  { %8971 = vmatmul.mubr.msk.f32.gmra.mrb[38].mxu0 %vm145_vm1, %v10653_v13  ;;  %8534 = vmatmul.mubr.msk.f32.gmra.mrb[8].mxu1 %vm145_vm1, %v10655_v15  ;;  %v10771_v13 = vld [vmem:[#allocation2 + $0x120] sm:$0xff] }
  0xcd   :  { %8973 = vmatprep.mubr.msk.f32.mxu0 %vm145_vm1, %v10657_v18  ;;  %8536 = vmatprep.mubr.msk.f32.mxu1 %vm145_vm1, %v10659_v20  ;;  %v10769_v18 = vld [vmem:[#allocation2 + $0x2d2] sm:$0xff] }
  0xce   :  { %13360 = vst [vmem:[#allocation28_spill] sm:$0xff] %v10769_v18 }
  0xd0   :  { %8974 = vmatmul.mubr.msk.f32.gmra.mrb[40].mxu0 %vm145_vm1, %v10669_v22  ;;  %8537 = vmatmul.mubr.msk.f32.gmra.mrb[10].mxu1 %vm145_vm1, %v10671_v24  ;;  %v10755_v22 = vld [vmem:[#allocation2 + $0x108] sm:$0xff] }
  0xd1   :  { %8976 = vmatprep.mubr.msk.f32.mxu0 %vm145_vm1, %v10673_v26  ;;  %8539 = vmatprep.mubr.msk.f32.mxu1 %vm145_vm1, %v10675_v29  ;;  %v10753_v26 = vld [vmem:[#allocation2 + $0x2ba] sm:$0xff] }
  0xd2   :  { %13358 = vst [vmem:[#allocation26_spill] sm:$0xff] %v10753_v26 }
  0xd4   :  { %8977 = vmatmul.mubr.msk.f32.gmra.mrb[42].mxu0 %vm145_vm1, %v10685_v31  ;;  %8540 = vmatmul.mubr.msk.f32.gmra.mrb[12].mxu1 %vm145_vm1, %v10687_v33  ;;  %v10739_v31 = vld [vmem:[#allocation2 + $0xf0] sm:$0xff] }
  0xd5   :  { %8979 = vmatprep.mubr.msk.f32.mxu0 %vm145_vm1, %v10689_v35  ;;  %8542 = vmatprep.mubr.msk.f32.mxu1 %vm145_vm1, %v10691_v37  ;;  %v10737_v35 = vld [vmem:[#allocation2 + $0x2a2] sm:$0xff] }
  0xd6   :  { %13356 = vst [vmem:[#allocation24_spill] sm:$0xff] %v10737_v35 }
  0xd8   :  { %8980 = vmatmul.mubr.msk.f32.gmra.mrb[44].mxu0 %vm145_vm1, %v10701_v39  ;;  %8543 = vmatmul.mubr.msk.f32.gmra.mrb[14].mxu1 %vm145_vm1, %v10703_v43  ;;  %v10735_v39 = vld [vmem:[#allocation2 + $0xe0] sm:$0xff] }
  0xd9   :  { %8982 = vmatprep.mubr.msk.f32.mxu0 %vm145_vm1, %v10705_v45  ;;  %8545 = vmatprep.mubr.msk.f32.mxu1 %vm145_vm1, %v10707_v46  ;;  %v10733_v45 = vld [vmem:[#allocation2 + $0x292] sm:$0xff] }
  0xda   :  { %13355 = vst [vmem:[#allocation23_spill] sm:$0xff] %v10733_v45 }
  0xdc   :  { %8983 = vmatmul.mubr.msk.f32.gmra.mrb[46].mxu0 %vm145_vm1, %v10717_v47  ;;  %8546 = vmatmul.mubr.msk.f32.gmra.mrb[16].mxu1 %vm145_vm1, %v10719_v48  ;;  %v10751_v47 = vld [vmem:[#allocation2 + $0xf8] sm:$0xff] }
  0xdd   :  { %8985 = vmatprep.mubr.msk.f32.mxu0 %vm145_vm1, %v10721_v52  ;;  %8548 = vmatprep.mubr.msk.f32.mxu1 %vm145_vm1, %v10723_v57  ;;  %v10749_v52 = vld [vmem:[#allocation2 + $0x2aa] sm:$0xff] }
  0xde   :  { %13357 = vst [vmem:[#allocation25_spill] sm:$0xff] %v10749_v52 }
  0xe0   :  { %8986 = vmatmul.mubr.msk.f32.gmra.mrb[48].mxu0 %vm145_vm1, %v10733_v45  ;;  %8549 = vmatmul.mubr.msk.f32.gmra.mrb[18].mxu1 %vm145_vm1, %v10735_v39  ;;  %v10767_v45 = vld [vmem:[#allocation2 + $0x110] sm:$0xff] }
  0xe1   :  { %8988 = vmatprep.mubr.msk.f32.mxu0 %vm145_vm1, %v10737_v35  ;;  %8551 = vmatprep.mubr.msk.f32.mxu1 %vm145_vm1, %v10739_v31  ;;  %v10765_v35 = vld [vmem:[#allocation2 + $0x2c2] sm:$0xff] }
  0xe2   :  { %13359 = vst [vmem:[#allocation27_spill] sm:$0xff] %v10765_v35 }
  0xe4   :  { %8989 = vmatmul.mubr.msk.f32.gmra.mrb[50].mxu0 %vm145_vm1, %v10749_v52  ;;  %8552 = vmatmul.mubr.msk.f32.gmra.mrb[20].mxu1 %vm145_vm1, %v10751_v47  ;;  %v10783_v52 = vld [vmem:[#allocation2 + $0x128] sm:$0xff] }
  0xe5   :  { %8991 = vmatprep.mubr.msk.f32.mxu0 %vm145_vm1, %v10753_v26  ;;  %8554 = vmatprep.mubr.msk.f32.mxu1 %vm145_vm1, %v10755_v22  ;;  %v10781_v26 = vld [vmem:[#allocation2 + $0x2da] sm:$0xff] }
  0xe6   :  { %13361 = vst [vmem:[#allocation29_spill] sm:$0xff] %v10781_v26 }
  0xe8   :  { %8992 = vmatmul.mubr.msk.f32.gmra.mrb[52].mxu0 %vm145_vm1, %v10765_v35  ;;  %8555 = vmatmul.mubr.msk.f32.gmra.mrb[22].mxu1 %vm145_vm1, %v10767_v45  ;;  %v10799_v35 = vld [vmem:[#allocation2 + $0x140] sm:$0xff] }
  0xe9   :  { %8994 = vmatprep.mubr.msk.f32.mxu0 %vm145_vm1, %v10769_v18  ;;  %8557 = vmatprep.mubr.msk.f32.mxu1 %vm145_vm1, %v10771_v13  ;;  %v10797_v18 = vld [vmem:[#allocation2 + $0x2f2] sm:$0xff] }
  0xea   :  { %13363 = vst [vmem:[#allocation31_spill] sm:$0xff] %v10797_v18 }
  0xec   :  { %8995 = vmatmul.mubr.msk.f32.gmra.mrb[54].mxu0 %vm145_vm1, %v10781_v26  ;;  %8558 = vmatmul.mubr.msk.f32.gmra.mrb[24].mxu1 %vm145_vm1, %v10783_v52  ;;  %v10815_v26 = vld [vmem:[#allocation2 + $0x158] sm:$0xff] }
  0xed   :  { %8997 = vmatprep.mubr.msk.f32.mxu0 %vm145_vm1, %v10785_v9  ;;  %8560 = vmatprep.mubr.msk.f32.mxu1 %vm145_vm1, %v10787_v5  ;;  %v10813_v9 = vld [vmem:[#allocation2 + $0x30a] sm:$0xff] }
  0xee   :  { %13365 = vst [vmem:[#allocation33_spill] sm:$0xff] %v10813_v9 }
  0xf0   :  { %8998 = vmatmul.mubr.msk.f32.gmra.mrb[56].mxu0 %vm145_vm1, %v10797_v18  ;;  %8561 = vmatmul.mubr.msk.f32.gmra.mrb[26].mxu1 %vm145_vm1, %v10799_v35  ;;  %v10831_v18 = vld [vmem:[#allocation2 + $0x170] sm:$0xff] }
  0xf1   :  { %9000 = vmatprep.mubr.msk.f32.mxu0 %vm145_vm1, %v10801_v1  ;;  %8563 = vmatprep.mubr.msk.f32.mxu1 %vm145_vm1, %v10803_v63  ;;  %v10829_v1 = vld [vmem:[#allocation2 + $0x322] sm:$0xff] }
  0xf2   :  { %13367 = vst [vmem:[#allocation35_spill] sm:$0xff] %v10829_v1 }
  0xf4   :  { %9001 = vmatmul.mubr.msk.f32.gmra.mrb[58].mxu0 %vm145_vm1, %v10813_v9  ;;  %8564 = vmatmul.mubr.msk.f32.gmra.mrb[28].mxu1 %vm145_vm1, %v10815_v26  ;;  %v362_v9 = vld [vmem:[#allocation2 + $0x1b8] sm:$0xff] }
  0xf5   :  { %9003 = vmatprep.mubr.msk.f32.mxu0 %vm145_vm1, %v10817_v59  ;;  %8566 = vmatprep.mubr.msk.f32.mxu1 %vm145_vm1, %v10819_v55  ;;  %v3805_v59 = vld [vmem:[#allocation2 + $0x33a] sm:$0xff] }
  0xf8   :  { %9004 = vmatmul.mubr.msk.f32.gmra.mrb[60].mxu0 %vm145_vm1, %v10829_v1  ;;  %8567 = vmatmul.mubr.msk.f32.gmra.mrb[30].mxu1 %vm145_vm1, %v10831_v18  ;;  %v10844_v1 = vld [vmem:[#allocation2 + $0x1d0] sm:$0xff] }
  0xf9   :  { %9006 = vmatprep.mubr.msk.f32.mxu0 %vm145_vm1, %v3804_v49  ;;  %8569 = vmatprep.mubr.msk.f32.mxu1 %vm145_vm1, %v361_v41  ;;  %v10851_v41 = vld [vmem:[%s13254_s1 + $0x20] sm:$0xf]  ;;  %v10865_v49 = vld [vmem:[#allocation2 + $0x1f8] sm:$0xff] }
  0xfc   :  { %9007 = vmatmul.mubr.msk.f32.gmra.mrb[62].mxu0 %vm145_vm1, %v3805_v59  ;;  %8570 = vmatmul.mubr.msk.f32.gmra.mrb[32].mxu1 %vm145_vm1, %v362_v9  ;;  %v10879_v59 = vld [vmem:[#allocation2 + $0x210] sm:$0xff]  ;;  %v10913_v9 = vld [vmem:[#allocation2 + $0x248] sm:$0xff] }
  0xfd   :  { %9011 = vmatprep.mubr.msk.f32.mxu0 %vm145_vm1, %v10610_v61  ;;  %8572 = vmatprep.mubr.msk.f32.mxu1 %vm145_vm1, %v363_v38  ;;  %v10861_v38 = vld [vmem:[#allocation2 + $0x1e8] sm:$0xff]  ;;  %v10889_v61 = vld [vmem:[#allocation2 + $0x218] sm:$0xff] }
 0x100   :  { %9012 = vmatmul.mubr.msk.f32.vlgmr.msra.gmra.mrb[0].mxu0 %vm145_vm1, %v10623_v28  ;;  %8573 = vmatmul.mubr.msk.f32.gmra.mrb[34].mxu1 %vm145_vm1, %v10844_v1  ;;  %v10891_v28 = vld [vmem:[#allocation2 + $0x228] sm:$0xff] }
 0x101   :  { %9108 = vmatpush3.msk.msra.mxu0 %vm649_vm0, %v10444_v50  ;;  %9014 = vmatprep.mubr.msk.f32.mxu0 %vm145_vm1, %v10627_v3  ;;  %v10877_v50 = vld [vmem:[#allocation2 + $0x200] sm:$0xff]  ;;  %v10901_v3 = vld [vmem:[#allocation2 + $0x230] sm:$0xff] }
 0x102   :  { %8575 = vmatprep.mubr.msk.f32.mxu1 %vm145_vm1, %v10846_v36  ;;  %9205 = vmatprep.subr.msk.mxu0 %vm649_vm0, %v10851_v41 }
 0x104   :  { %9015 = vmatmul.mubr.msk.f32.gmra.mrb[2].mxu0 %vm145_vm1, %v10639_v7  ;;  %8576 = vmatmul.mubr.msk.f32.gmra.mrb[36].mxu1 %vm145_vm1, %v10861_v38  ;;  %v10903_v7 = vld [vmem:[#allocation2 + $0x240] sm:$0xff] }
 0x105   :  { %9017 = vmatprep.mubr.msk.f32.mxu0 %vm145_vm1, %v10643_v11  ;;  %8578 = vmatprep.mubr.msk.f32.mxu1 %vm145_vm1, %v10865_v49  ;;  %v10915_v11 = vld [vmem:[#allocation2 + $0x258] sm:$0xff] }
 0x108   :  { %9018 = vmatmul.mubr.msk.f32.gmra.mrb[4].mxu0 %vm145_vm1, %v10655_v15  ;;  %8579 = vmatmul.mubr.msk.f32.gmra.mrb[38].mxu1 %vm145_vm1, %v10877_v50  ;;  %v10925_v15 = vld [vmem:[#allocation2 + $0x260] sm:$0xff] }
 0x109   :  { %9020 = vmatprep.mubr.msk.f32.mxu0 %vm145_vm1, %v10659_v20  ;;  %8581 = vmatprep.mubr.msk.f32.mxu1 %vm145_vm1, %v10879_v59  ;;  %v10927_v20 = vld [vmem:[#allocation2 + $0x270] sm:$0xff] }
 0x10c   :  { %9021 = vmatmul.mubr.msk.f32.gmra.mrb[6].mxu0 %vm145_vm1, %v10671_v24  ;;  %8582 = vmatmul.mubr.msk.f32.gmra.mrb[40].mxu1 %vm145_vm1, %v10889_v61  ;;  %v10937_v24 = vld [vmem:[#allocation2 + $0x278] sm:$0xff] }
 0x10d   :  { %9023 = vmatprep.mubr.msk.f32.mxu0 %vm145_vm1, %v10675_v29  ;;  %8584 = vmatprep.mubr.msk.f32.mxu1 %vm145_vm1, %v10891_v28  ;;  %v10939_v29 = vld [vmem:[#allocation2 + $0x288] sm:$0xff] }
 0x110   :  { %9024 = vmatmul.mubr.msk.f32.gmra.mrb[8].mxu0 %vm145_vm1, %v10687_v33  ;;  %8585 = vmatmul.mubr.msk.f32.gmra.mrb[42].mxu1 %vm145_vm1, %v10901_v3  ;;  %v10949_v33 = vld [vmem:[#allocation2 + $0x290] sm:$0xff] }
 0x111   :  { %9026 = vmatprep.mubr.msk.f32.mxu0 %vm145_vm1, %v10691_v37  ;;  %8587 = vmatprep.mubr.msk.f32.mxu1 %vm145_vm1, %v10903_v7  ;;  %v10951_v37 = vld [vmem:[#allocation2 + $0x2a0] sm:$0xff] }
 0x114   :  { %9027 = vmatmul.mubr.msk.f32.gmra.mrb[10].mxu0 %vm145_vm1, %v10703_v43  ;;  %8588 = vmatmul.mubr.msk.f32.gmra.mrb[44].mxu1 %vm145_vm1, %v10913_v9  ;;  %v10975_v43 = vld [vmem:[#allocation2 + $0x2d0] sm:$0xff] }
 0x115   :  { %9029 = vmatprep.mubr.msk.f32.mxu0 %vm145_vm1, %v10707_v46  ;;  %8590 = vmatprep.mubr.msk.f32.mxu1 %vm145_vm1, %v10915_v11  ;;  %v10999_v46 = vld [vmem:[#allocation2 + $0x300] sm:$0xff] }
 0x118   :  { %9030 = vmatmul.mubr.msk.f32.gmra.mrb[12].mxu0 %vm145_vm1, %v10719_v48  ;;  %8591 = vmatmul.mubr.msk.f32.gmra.mrb[46].mxu1 %vm145_vm1, %v10925_v15  ;;  %v4481_v48 = vld [vmem:[#allocation2 + $0x198] sm:$0xff] }
 0x119   :  { %9032 = vmatprep.mubr.msk.f32.mxu0 %vm145_vm1, %v10723_v57  ;;  %8593 = vmatprep.mubr.msk.f32.mxu1 %vm145_vm1, %v10927_v20  ;;  %v1619_v57 = vld [vmem:[#allocation2 + $0xa] sm:$0xff] }
 0x11c   :  { %9033 = vmatmul.mubr.msk.f32.gmra.mrb[14].mxu0 %vm145_vm1, %v10735_v39  ;;  %8594 = vmatmul.mubr.msk.f32.gmra.mrb[48].mxu1 %vm145_vm1, %v10937_v24  ;;  %v10963_v39 = vld [vmem:[#allocation2 + $0x2b8] sm:$0xff] }
 0x11d   :  { %9035 = vmatprep.mubr.msk.f32.mxu0 %vm145_vm1, %v10739_v31  ;;  %8596 = vmatprep.mubr.msk.f32.mxu1 %vm145_vm1, %v10939_v29  ;;  %v10961_v31 = vld [vmem:[#allocation2 + $0x2a8] sm:$0xff] }
 0x120   :  { %9036 = vmatmul.mubr.msk.f32.gmra.mrb[16].mxu0 %vm145_vm1, %v10751_v47  ;;  %8597 = vmatmul.mubr.msk.f32.gmra.mrb[50].mxu1 %vm145_vm1, %v10949_v33  ;;  %v11013_v47 = vld [vmem:[#allocation2 + $0x318] sm:$0xff] }
 0x121   :  { %9038 = vmatprep.mubr.msk.f32.mxu0 %vm145_vm1, %v10755_v22  ;;  %8599 = vmatprep.mubr.msk.f32.mxu1 %vm145_vm1, %v10951_v37  ;;  %v10973_v22 = vld [vmem:[#allocation2 + $0x2c0] sm:$0xff] }
 0x124   :  { %9039 = vmatmul.mubr.msk.f32.gmra.mrb[18].mxu0 %vm145_vm1, %v10767_v45  ;;  %8600 = vmatmul.mubr.msk.f32.gmra.mrb[52].mxu1 %vm145_vm1, %v10961_v31  ;;  %v10987_v45 = vld [vmem:[#allocation2 + $0x2e8] sm:$0xff] }
 0x125   :  { %9041 = vmatprep.mubr.msk.f32.mxu0 %vm145_vm1, %v10771_v13  ;;  %8602 = vmatprep.mubr.msk.f32.mxu1 %vm145_vm1, %v10963_v39  ;;  %v10985_v13 = vld [vmem:[#allocation2 + $0x2d8] sm:$0xff] }
 0x128   :  { %9042 = vmatmul.mubr.msk.f32.gmra.mrb[20].mxu0 %vm145_vm1, %v10783_v52  ;;  %8603 = vmatmul.mubr.msk.f32.gmra.mrb[54].mxu1 %vm145_vm1, %v10973_v22  ;;  %v1618_v52 = vld [vmem:[#allocation2 + $0x2] sm:$0xff] }
 0x129   :  { %9044 = vmatprep.mubr.msk.f32.mxu0 %vm145_vm1, %v10787_v5  ;;  %8605 = vmatprep.mubr.msk.f32.mxu1 %vm145_vm1, %v10975_v43  ;;  %v10997_v5 = vld [vmem:[#allocation2 + $0x2f0] sm:$0xff] }
 0x12c   :  { %9045 = vmatmul.mubr.msk.f32.gmra.mrb[22].mxu0 %vm145_vm1, %v10799_v35  ;;  %8606 = vmatmul.mubr.msk.f32.gmra.mrb[56].mxu1 %vm145_vm1, %v10985_v13  ;;  %v11011_v35 = vld [vmem:[#allocation2 + $0x180] sm:$0xff] }
 0x12d   :  { %9047 = vmatprep.mubr.msk.f32.mxu0 %vm145_vm1, %v10803_v63  ;;  %8608 = vmatprep.mubr.msk.f32.mxu1 %vm145_vm1, %v10987_v45  ;;  %v11009_v63 = vld [vmem:[#allocation2 + $0x308] sm:$0xff] }
 0x130   :  { %9048 = vmatmul.mubr.msk.f32.gmra.mrb[24].mxu0 %vm145_vm1, %v10815_v26  ;;  %8609 = vmatmul.mubr.msk.f32.gmra.mrb[58].mxu1 %vm145_vm1, %v10997_v5  ;;  %v11025_v26 = vld [vmem:[#allocation2 + $0x320] sm:$0xff] }
 0x131   :  { %9050 = vmatprep.mubr.msk.f32.mxu0 %vm145_vm1, %v10819_v55  ;;  %8611 = vmatprep.mubr.msk.f32.mxu1 %vm145_vm1, %v10999_v46  ;;  %v11023_v55 = vld [vmem:[#allocation2 + $0x188] sm:$0xff] }
 0x134   :  { %9051 = vmatmul.mubr.msk.f32.gmra.mrb[26].mxu0 %vm145_vm1, %v10831_v18  ;;  %8612 = vmatmul.mubr.msk.f32.gmra.mrb[60].mxu1 %vm145_vm1, %v11009_v63  ;;  %v4482_v18 = vld [vmem:[#allocation2 + $0x1a0] sm:$0xff] }
 0x135   :  { %9053 = vmatprep.mubr.msk.f32.mxu0 %vm145_vm1, %v11011_v35  ;;  %8614 = vmatprep.mubr.msk.f32.mxu1 %vm145_vm1, %v11013_v47 }
 0x138   :  { %9054 = vmatmul.mubr.msk.f32.gmra.mrb[28].mxu0 %vm145_vm1, %v11023_v55  ;;  %8615 = vmatmul.mubr.msk.f32.gmra.mrb[62].mxu1 %vm145_vm1, %v11025_v26 }
 0x139   :  { %9056 = vmatprep.mubr.msk.f32.mxu0 %vm145_vm1, %v4481_v48  ;;  %8619 = vmatprep.mubr.msk.f32.mxu1 %vm145_vm1, %v1618_v52  ;;  %v11044_v48 = vld [vmem:[%s13254_s1 + $0x10] sm:$0xf]  ;;  %v13380_v52 = vld [vmem:[#allocation15_spill] sm:$0xff] }
 0x13c   :  { %9057 = vmatmul.mubr.msk.f32.gmra.mrb[30].mxu0 %vm145_vm1, %v4482_v18  ;;  %8620 = vmatmul.mubr.msk.f32.vlgmr.msra.gmra.mrb[0].mxu1 %vm145_vm1, %v1619_v57  ;;  %v13381_v18 = vld [vmem:[#allocation16_spill] sm:$0xff]  ;;  %v5170_v57 = vld [vmem:[#allocation2 + $0xb1] sm:$0xff] }
 0x13d   :  { %9059 = vmatprep.mubr.msk.f32.mxu0 %vm145_vm1, %v10846_v36  ;;  %8622 = vmatprep.mubr.msk.f32.mxu1 %vm145_vm1, %v10421_v40  ;;  %v11152_v40 = vld [vmem:[#allocation2 + $0x330] sm:$0xff] }
 0x13e   :  { %8716 = vmatpush3.msk.msra.mxu1 %vm649_vm0, %v10599_v54  ;;  %v5168_v54 = vld [vmem:[#allocation2 + $0x99] sm:$0xff] }
 0x13f   :  { %9303 = vmatprep.subr.msk.mxu1 %vm649_vm0, %v11044_v48 }
 0x140   :  { %9060 = vmatmul.mubr.msk.f32.gmra.mrb[32].mxu0 %vm145_vm1, %v10861_v38  ;;  %8623 = vmatmul.mubr.msk.f32.gmra.mrb[2].mxu1 %vm145_vm1, %v10428_v42  ;;  %v13368_v42 = vld [vmem:[#allocation3_spill] sm:$0xff] }
 0x141   :  { %9062 = vmatprep.mubr.msk.f32.mxu0 %vm145_vm1, %v10865_v49  ;;  %8625 = vmatprep.mubr.msk.f32.mxu1 %vm145_vm1, %v10430_v44  ;;  %v13369_v44 = vld [vmem:[#allocation4_spill] sm:$0xff] }
 0x144   :  { %9063 = vmatmul.mubr.msk.f32.gmra.mrb[34].mxu0 %vm145_vm1, %v10877_v50  ;;  %8626 = vmatmul.mubr.msk.f32.gmra.mrb[4].mxu1 %vm145_vm1, %v10450_v51  ;;  %v11162_v51 = vld [vmem:[#allocation2 + $0x338] sm:$0xff] }
 0x145   :  { %9065 = vmatprep.mubr.msk.f32.mxu0 %vm145_vm1, %v10879_v59  ;;  %8628 = vmatprep.mubr.msk.f32.mxu1 %vm145_vm1, %v10453_v53  ;;  %v4513_v53 = vld [vmem:[#allocation2 + $0x348] sm:$0xff] }
 0x148   :  { %9066 = vmatmul.mubr.msk.f32.gmra.mrb[36].mxu0 %vm145_vm1, %v10889_v61  ;;  %8629 = vmatmul.mubr.msk.f32.gmra.mrb[6].mxu1 %vm145_vm1, %v10465_v16  ;;  %v1650_v16 = vld [vmem:[#allocation2 + $0x1b2] sm:$0xff] }
 0x149   :  { %9068 = vmatprep.mubr.msk.f32.mxu0 %vm145_vm1, %v10891_v28  ;;  %8631 = vmatprep.mubr.msk.f32.mxu1 %vm145_vm1, %v10467_v56  ;;  %v13370_v56 = vld [vmem:[#allocation5_spill] sm:$0xff] }
 0x14c   :  { %9069 = vmatmul.mubr.msk.f32.gmra.mrb[38].mxu0 %vm145_vm1, %v10901_v3  ;;  %8632 = vmatmul.mubr.msk.f32.gmra.mrb[8].mxu1 %vm145_vm1, %v10475_v58  ;;  %v4514_v58 = vld [vmem:[#allocation2 + $0x350] sm:$0xff] }
 0x14d   :  { %9071 = vmatprep.mubr.msk.f32.mxu0 %vm145_vm1, %v10903_v7  ;;  %8634 = vmatprep.mubr.msk.f32.mxu1 %vm145_vm1, %v10477_v60  ;;  %v1651_v60 = vld [vmem:[#allocation2 + $0x1ba] sm:$0xff] }
 0x150   :  { %9072 = vmatmul.mubr.msk.f32.gmra.mrb[40].mxu0 %vm145_vm1, %v10913_v9  ;;  %8635 = vmatmul.mubr.msk.f32.gmra.mrb[10].mxu1 %vm145_vm1, %v10485_v62  ;;  %v5159_v62 = vld [vmem:[#allocation2 + $0x31] sm:$0xff] }
 0x151   :  { %9074 = vmatprep.mubr.msk.f32.mxu0 %vm145_vm1, %v10915_v11  ;;  %8637 = vmatprep.mubr.msk.f32.mxu1 %vm145_vm1, %v10487_v0  ;;  %v13371_v0 = vld [vmem:[#allocation6_spill] sm:$0xff] }
 0x154   :  { %9075 = vmatmul.mubr.msk.f32.gmra.mrb[42].mxu0 %vm145_vm1, %v10925_v15  ;;  %8638 = vmatmul.mubr.msk.f32.gmra.mrb[12].mxu1 %vm145_vm1, %v10495_v2  ;;  %v5160_v2 = vld [vmem:[#allocation2 + $0x39] sm:$0xff] }
 0x155   :  { %9077 = vmatprep.mubr.msk.f32.mxu0 %vm145_vm1, %v10927_v20  ;;  %8640 = vmatprep.mubr.msk.f32.mxu1 %vm145_vm1, %v10497_v4  ;;  %v5161_v4 = vld [vmem:[#allocation2 + $0x49] sm:$0xff] }
 0x158   :  { %9078 = vmatmul.mubr.msk.f32.gmra.mrb[44].mxu0 %vm145_vm1, %v10937_v24  ;;  %8641 = vmatmul.mubr.msk.f32.gmra.mrb[14].mxu1 %vm145_vm1, %v10505_v6  ;;  %v13372_v6 = vld [vmem:[#allocation7_spill] sm:$0xff] }
 0x159   :  { %9080 = vmatprep.mubr.msk.f32.mxu0 %vm145_vm1, %v10939_v29  ;;  %8643 = vmatprep.mubr.msk.f32.mxu1 %vm145_vm1, %v10507_v8  ;;  %v5162_v8 = vld [vmem:[#allocation2 + $0x51] sm:$0xff] }
 0x15c   :  { %9081 = vmatmul.mubr.msk.f32.gmra.mrb[46].mxu0 %vm145_vm1, %v10949_v33  ;;  %8644 = vmatmul.mubr.msk.f32.gmra.mrb[16].mxu1 %vm145_vm1, %v10515_v10  ;;  %v13373_v10 = vld [vmem:[#allocation8_spill] sm:$0xff] }
 0x15d   :  { %9083 = vmatprep.mubr.msk.f32.mxu0 %vm145_vm1, %v10951_v37  ;;  %8646 = vmatprep.mubr.msk.f32.mxu1 %vm145_vm1, %v10517_v12  ;;  %v5163_v12 = vld [vmem:[#allocation2 + $0x61] sm:$0xff] }
 0x160   :  { %9084 = vmatmul.mubr.msk.f32.gmra.mrb[48].mxu0 %vm145_vm1, %v10961_v31  ;;  %8647 = vmatmul.mubr.msk.f32.gmra.mrb[18].mxu1 %vm145_vm1, %v10525_v14  ;;  %v13374_v14 = vld [vmem:[#allocation9_spill] sm:$0xff] }
 0x161   :  { %9086 = vmatprep.mubr.msk.f32.mxu0 %vm145_vm1, %v10963_v39  ;;  %8649 = vmatprep.mubr.msk.f32.mxu1 %vm145_vm1, %v10527_v17  ;;  %v13375_v17 = vld [vmem:[#allocation10_spill] sm:$0xff] }
 0x164   :  { %9087 = vmatmul.mubr.msk.f32.gmra.mrb[50].mxu0 %vm145_vm1, %v10973_v22  ;;  %8650 = vmatmul.mubr.msk.f32.gmra.mrb[20].mxu1 %vm145_vm1, %v10535_v19  ;;  %v5164_v19 = vld [vmem:[#allocation2 + $0x69] sm:$0xff] }
 0x165   :  { %9089 = vmatprep.mubr.msk.f32.mxu0 %vm145_vm1, %v10975_v43  ;;  %8652 = vmatprep.mubr.msk.f32.mxu1 %vm145_vm1, %v10537_v21  ;;  %v5165_v21 = vld [vmem:[#allocation2 + $0x79] sm:$0xff] }
 0x168   :  { %9090 = vmatmul.mubr.msk.f32.gmra.mrb[52].mxu0 %vm145_vm1, %v10985_v13  ;;  %8653 = vmatmul.mubr.msk.f32.gmra.mrb[22].mxu1 %vm145_vm1, %v10545_v23  ;;  %v13376_v23 = vld [vmem:[#allocation11_spill] sm:$0xff] }
 0x169   :  { %9092 = vmatprep.mubr.msk.f32.mxu0 %vm145_vm1, %v10987_v45  ;;  %8655 = vmatprep.mubr.msk.f32.mxu1 %vm145_vm1, %v10547_v25  ;;  %v13377_v25 = vld [vmem:[#allocation12_spill] sm:$0xff] }
 0x16c   :  { %9093 = vmatmul.mubr.msk.f32.gmra.mrb[54].mxu0 %vm145_vm1, %v10997_v5  ;;  %8656 = vmatmul.mubr.msk.f32.gmra.mrb[24].mxu1 %vm145_vm1, %v10555_v27  ;;  %v5166_v27 = vld [vmem:[#allocation2 + $0x81] sm:$0xff] }
 0x16d   :  { %9095 = vmatprep.mubr.msk.f32.mxu0 %vm145_vm1, %v10999_v46  ;;  %8658 = vmatprep.mubr.msk.f32.mxu1 %vm145_vm1, %v10557_v30  ;;  %v5167_v30 = vld [vmem:[#allocation2 + $0x91] sm:$0xff] }
 0x170   :  { %9096 = vmatmul.mubr.msk.f32.gmra.mrb[56].mxu0 %vm145_vm1, %v11009_v63  ;;  %8659 = vmatmul.mubr.msk.f32.gmra.mrb[26].mxu1 %vm145_vm1, %v10565_v32  ;;  %v13378_v32 = vld [vmem:[#allocation13_spill] sm:$0xff] }
 0x171   :  { %9098 = vmatprep.mubr.msk.f32.mxu0 %vm145_vm1, %v11013_v47  ;;  %8661 = vmatprep.mubr.msk.f32.mxu1 %vm145_vm1, %v10567_v34  ;;  %v13379_v34 = vld [vmem:[#allocation14_spill] sm:$0xff] }
 0x174   :  { %9099 = vmatmul.mubr.msk.f32.gmra.mrb[58].mxu0 %vm145_vm1, %v11025_v26  ;;  %8662 = vmatmul.mubr.msk.f32.gmra.mrb[28].mxu1 %vm145_vm1, %v13368_v42  ;;  %v5171_v42 = vld [vmem:[#allocation2 + $0xc1] sm:$0xff] }
 0x175   :  { %9101 = vmatprep.mubr.msk.f32.mxu0 %vm145_vm1, %v11152_v40  ;;  %8664 = vmatprep.mubr.msk.f32.mxu1 %vm145_vm1, %v13369_v44  ;;  %v13382_v44 = vld [vmem:[#allocation17_spill] sm:$0xff] }
 0x178   :  { %9102 = vmatmul.mubr.msk.f32.gmra.mrb[60].mxu0 %vm145_vm1, %v11162_v51  ;;  %8665 = vmatmul.mubr.msk.f32.gmra.mrb[30].mxu1 %vm145_vm1, %v13370_v56  ;;  %v5173_v56 = vld [vmem:[#allocation2 + $0xd9] sm:$0xff] }
 0x179   :  { %9104 = vmatprep.mubr.msk.f32.mxu0 %vm145_vm1, %v4513_v53  ;;  %8667 = vmatprep.mubr.msk.f32.mxu1 %vm145_vm1, %v1650_v16  ;;  %v13383_v53 = vld [vmem:[#allocation18_spill] sm:$0xff]  ;;  %v5172_v16 = vld [vmem:[#allocation2 + $0xc9] sm:$0xff] }
 0x17c   :  { %9105 = vmatmul.mubr.msk.f32.gmra.mrb[62].mxu0 %vm145_vm1, %v4514_v58  ;;  %8668 = vmatmul.mubr.msk.f32.gmra.mrb[32].mxu1 %vm145_vm1, %v1651_v60  ;;  %v13384_v58 = vld [vmem:[#allocation19_spill] sm:$0xff]  ;;  %v13385_v60 = vld [vmem:[#allocation20_spill] sm:$0xff] }
 0x17d   :  { %9109 = vmatprep.mubr.msk.f32.mxu0 %vm145_vm1, %v5159_v62  ;;  %8670 = vmatprep.mubr.msk.f32.mxu1 %vm145_vm1, %v13371_v0  ;;  %v5174_v62 = vld [vmem:[#allocation2 + $0xe1] sm:$0xff]  ;;  %v5175_v0 = vld [vmem:[#allocation2 + $0xf1] sm:$0xff] }
 0x180   :  { %9110 = vmatmul.mubr.msk.f32.vlgmr.msra.gmra.mrb[0].mxu0 %vm145_vm1, %v5160_v2  ;;  %8671 = vmatmul.mubr.msk.f32.gmra.mrb[34].mxu1 %vm145_vm1, %v13372_v6  ;;  %v13386_v2 = vld [vmem:[#allocation21_spill] sm:$0xff]  ;;  %v5176_v6 = vld [vmem:[#allocation2 + $0xf9] sm:$0xff] }
 0x181   :  { %9206 = vmatpush3.msk.msra.mxu0 %vm649_vm0, %v10851_v41  ;;  %9112 = vmatprep.mubr.msk.f32.mxu0 %vm145_vm1, %v5161_v4  ;;  %v5169_v41 = vld [vmem:[#allocation2 + $0xa9] sm:$0xff]  ;;  %v13387_v4 = vld [vmem:[#allocation22_spill] sm:$0xff] }
 0x182   :  { %8673 = vmatprep.mubr.msk.f32.mxu1 %vm145_vm1, %v13373_v10  ;;  %v13388_v10 = vld [vmem:[#allocation23_spill] sm:$0xff] }
 0x184   :  { %9113 = vmatmul.mubr.msk.f32.gmra.mrb[2].mxu0 %vm145_vm1, %v5162_v8  ;;  %8674 = vmatmul.mubr.msk.f32.gmra.mrb[36].mxu1 %vm145_vm1, %v13374_v14  ;;  %v5177_v8 = vld [vmem:[#allocation2 + $0x109] sm:$0xff]  ;;  %v5178_v14 = vld [vmem:[#allocation2 + $0x111] sm:$0xff] }
 0x185   :  { %9115 = vmatprep.mubr.msk.f32.mxu0 %vm145_vm1, %v5163_v12  ;;  %8676 = vmatprep.mubr.msk.f32.mxu1 %vm145_vm1, %v13375_v17  ;;  %v13389_v12 = vld [vmem:[#allocation24_spill] sm:$0xff] }
 0x186   :  { %v5179_v17 = vld [vmem:[#allocation2 + $0x121] sm:$0xff] }
 0x188   :  { %9116 = vmatmul.mubr.msk.f32.gmra.mrb[4].mxu0 %vm145_vm1, %v5164_v19  ;;  %8677 = vmatmul.mubr.msk.f32.gmra.mrb[38].mxu1 %vm145_vm1, %v13376_v23  ;;  %v13390_v19 = vld [vmem:[#allocation25_spill] sm:$0xff] }
 0x189   :  { %9118 = vmatprep.mubr.msk.f32.mxu0 %vm145_vm1, %v5165_v21  ;;  %8679 = vmatprep.mubr.msk.f32.mxu1 %vm145_vm1, %v13377_v25  ;;  %v13391_v21 = vld [vmem:[#allocation26_spill] sm:$0xff]  ;;  %v5180_v23 = vld [vmem:[#allocation2 + $0x129] sm:$0xff] }
 0x18a   :  { %v5181_v25 = vld [vmem:[#allocation2 + $0x139] sm:$0xff] }
 0x18c   :  { %9119 = vmatmul.mubr.msk.f32.gmra.mrb[6].mxu0 %vm145_vm1, %v5166_v27  ;;  %8680 = vmatmul.mubr.msk.f32.gmra.mrb[40].mxu1 %vm145_vm1, %v13378_v32  ;;  %v13392_v27 = vld [vmem:[#allocation27_spill] sm:$0xff] }
 0x18d   :  { %9121 = vmatprep.mubr.msk.f32.mxu0 %vm145_vm1, %v5167_v30  ;;  %8682 = vmatprep.mubr.msk.f32.mxu1 %vm145_vm1, %v13379_v34  ;;  %v13393_v30 = vld [vmem:[#allocation28_spill] sm:$0xff]  ;;  %v5183_v34 = vld [vmem:[#allocation2 + $0x151] sm:$0xff] }
 0x18e   :  { %v5182_v32 = vld [vmem:[#allocation2 + $0x141] sm:$0xff] }
 0x190   :  { %9122 = vmatmul.mubr.msk.f32.gmra.mrb[8].mxu0 %vm145_vm1, %v5168_v54  ;;  %8683 = vmatmul.mubr.msk.f32.gmra.mrb[42].mxu1 %vm145_vm1, %v13380_v52  ;;  %v13394_v54 = vld [vmem:[#allocation29_spill] sm:$0xff]  ;;  %v5184_v52 = vld [vmem:[#allocation2 + $0x159] sm:$0xff] }
 0x191   :  { %9124 = vmatprep.mubr.msk.f32.mxu0 %vm145_vm1, %v5169_v41  ;;  %8685 = vmatprep.mubr.msk.f32.mxu1 %vm145_vm1, %v13381_v18  ;;  %v13395_v41 = vld [vmem:[#allocation30_spill] sm:$0xff]  ;;  %v5185_v18 = vld [vmem:[#allocation2 + $0x169] sm:$0xff] }
 0x194   :  { %9125 = vmatmul.mubr.msk.f32.gmra.mrb[10].mxu0 %vm145_vm1, %v5170_v57  ;;  %8686 = vmatmul.mubr.msk.f32.gmra.mrb[44].mxu1 %vm145_vm1, %v13382_v44  ;;  %v13396_v57 = vld [vmem:[#allocation31_spill] sm:$0xff]  ;;  %v5186_v44 = vld [vmem:[#allocation2 + $0x171] sm:$0xff] }
 0x195   :  { %9127 = vmatprep.mubr.msk.f32.mxu0 %vm145_vm1, %v5171_v42  ;;  %8688 = vmatprep.mubr.msk.f32.mxu1 %vm145_vm1, %v13383_v53  ;;  %v13397_v42 = vld [vmem:[#allocation32_spill] sm:$0xff] }
 0x196   :  { %v5187_v53 = vld [vmem:[#allocation2 + $0x181] sm:$0xff] }
 0x198   :  { %9128 = vmatmul.mubr.msk.f32.gmra.mrb[12].mxu0 %vm145_vm1, %v5172_v16  ;;  %8689 = vmatmul.mubr.msk.f32.gmra.mrb[46].mxu1 %vm145_vm1, %v13384_v58  ;;  %v13398_v16 = vld [vmem:[#allocation33_spill] sm:$0xff] }
 0x199   :  { %9130 = vmatprep.mubr.msk.f32.mxu0 %vm145_vm1, %v5173_v56  ;;  %8691 = vmatprep.mubr.msk.f32.mxu1 %vm145_vm1, %v13385_v60  ;;  %v13399_v56 = vld [vmem:[#allocation34_spill] sm:$0xff]  ;;  %v5188_v58 = vld [vmem:[#allocation2 + $0x189] sm:$0xff] }
 0x19a   :  { %v5189_v60 = vld [vmem:[#allocation2 + $0x199] sm:$0xff] }
 0x19c   :  { %9131 = vmatmul.mubr.msk.f32.gmra.mrb[14].mxu0 %vm145_vm1, %v5174_v62  ;;  %8692 = vmatmul.mubr.msk.f32.gmra.mrb[48].mxu1 %vm145_vm1, %v13386_v2  ;;  %v2326_v62 = vld [vmem:[#allocation2 + $0x18] sm:$0xff]  ;;  %v5190_v2 = vld [vmem:[#allocation2 + $0x1a1] sm:$0xff] }
 0x19d   :  { %9133 = vmatprep.mubr.msk.f32.mxu0 %vm145_vm1, %v5175_v0  ;;  %8694 = vmatprep.mubr.msk.f32.mxu1 %vm145_vm1, %v13387_v4  ;;  %v13400_v0 = vld [vmem:[#allocation35_spill] sm:$0xff] }
 0x19e   :  { %v2327_v4 = vld [vmem:[#allocation2 + $0x20] sm:$0xff] }
 0x1a0   :  { %9134 = vmatmul.mubr.msk.f32.gmra.mrb[16].mxu0 %vm145_vm1, %v5176_v6  ;;  %8695 = vmatmul.mubr.msk.f32.gmra.mrb[50].mxu1 %vm145_vm1, %v13388_v10  ;;  %v11266_v6 = vld [vmem:[#allocation2 + $0x1e1] sm:$0xff]  ;;  %v11273_v10 = vld [vmem:[#allocation2 + $0x1e9] sm:$0xff] }
 0x1a1   :  { %9136 = vmatprep.mubr.msk.f32.mxu0 %vm145_vm1, %v5177_v8  ;;  %8697 = vmatprep.mubr.msk.f32.mxu1 %vm145_vm1, %v13389_v12  ;;  %v2328_v8 = vld [vmem:[#allocation2 + $0x30] sm:$0xff]  ;;  %v2329_v12 = vld [vmem:[#allocation2 + $0x38] sm:$0xff] }
 0x1a4   :  { %9137 = vmatmul.mubr.msk.f32.gmra.mrb[18].mxu0 %vm145_vm1, %v5178_v14  ;;  %8698 = vmatmul.mubr.msk.f32.gmra.mrb[52].mxu1 %vm145_vm1, %v13390_v19  ;;  %v11277_v14 = vld [vmem:[#allocation2 + $0x1f9] sm:$0xff]  ;;  %v11285_v19 = vld [vmem:[#allocation2 + $0x201] sm:$0xff] }
 0x1a5   :  { %9139 = vmatprep.mubr.msk.f32.mxu0 %vm145_vm1, %v5179_v17  ;;  %8700 = vmatprep.mubr.msk.f32.mxu1 %vm145_vm1, %v13391_v21  ;;  %v2330_v17 = vld [vmem:[#allocation2 + $0x48] sm:$0xff]  ;;  %v2331_v21 = vld [vmem:[#allocation2 + $0x50] sm:$0xff] }
 0x1a8   :  { %9140 = vmatmul.mubr.msk.f32.gmra.mrb[20].mxu0 %vm145_vm1, %v5180_v23  ;;  %8701 = vmatmul.mubr.msk.f32.gmra.mrb[54].mxu1 %vm145_vm1, %v13392_v27  ;;  %v11287_v23 = vld [vmem:[#allocation2 + $0x211] sm:$0xff]  ;;  %v2333_v27 = vld [vmem:[#allocation2 + $0x68] sm:$0xff] }
 0x1a9   :  { %9142 = vmatprep.mubr.msk.f32.mxu0 %vm145_vm1, %v5181_v25  ;;  %8703 = vmatprep.mubr.msk.f32.mxu1 %vm145_vm1, %v13393_v30  ;;  %v2332_v25 = vld [vmem:[#allocation2 + $0x60] sm:$0xff]  ;;  %v11297_v30 = vld [vmem:[#allocation2 + $0x229] sm:$0xff] }
 0x1ac   :  { %9143 = vmatmul.mubr.msk.f32.gmra.mrb[22].mxu0 %vm145_vm1, %v5182_v32  ;;  %8704 = vmatmul.mubr.msk.f32.gmra.mrb[56].mxu1 %vm145_vm1, %v13394_v54  ;;  %v2334_v32 = vld [vmem:[#allocation2 + $0x78] sm:$0xff]  ;;  %v2335_v54 = vld [vmem:[#allocation2 + $0x80] sm:$0xff] }
 0x1ad   :  { %9145 = vmatprep.mubr.msk.f32.mxu0 %vm145_vm1, %v5183_v34  ;;  %8706 = vmatprep.mubr.msk.f32.mxu1 %vm145_vm1, %v13395_v41  ;;  %v11305_v34 = vld [vmem:[#allocation2 + $0x231] sm:$0xff]  ;;  %v11307_v41 = vld [vmem:[#allocation2 + $0x241] sm:$0xff] }
 0x1b0   :  { %9146 = vmatmul.mubr.msk.f32.gmra.mrb[24].mxu0 %vm145_vm1, %v5184_v52  ;;  %8707 = vmatmul.mubr.msk.f32.gmra.mrb[58].mxu1 %vm145_vm1, %v13396_v57  ;;  %v2336_v52 = vld [vmem:[#allocation2 + $0x90] sm:$0xff]  ;;  %v2337_v57 = vld [vmem:[#allocation2 + $0x98] sm:$0xff] }
 0x1b1   :  { %9148 = vmatprep.mubr.msk.f32.mxu0 %vm145_vm1, %v5185_v18  ;;  %8709 = vmatprep.mubr.msk.f32.mxu1 %vm145_vm1, %v13397_v42  ;;  %v11315_v18 = vld [vmem:[#allocation2 + $0x249] sm:$0xff]  ;;  %v11317_v42 = vld [vmem:[#allocation2 + $0x259] sm:$0xff] }
 0x1b4   :  { %9149 = vmatmul.mubr.msk.f32.gmra.mrb[26].mxu0 %vm145_vm1, %v5186_v44  ;;  %8710 = vmatmul.mubr.msk.f32.gmra.mrb[60].mxu1 %vm145_vm1, %v13398_v16  ;;  %v2338_v44 = vld [vmem:[#allocation2 + $0xa8] sm:$0xff]  ;;  %v2339_v16 = vld [vmem:[#allocation2 + $0xb0] sm:$0xff] }
 0x1b5   :  { %9151 = vmatprep.mubr.msk.f32.mxu0 %vm145_vm1, %v5187_v53  ;;  %8712 = vmatprep.mubr.msk.f32.mxu1 %vm145_vm1, %v13399_v56  ;;  %v11325_v53 = vld [vmem:[#allocation2 + $0x261] sm:$0xff]  ;;  %v11327_v56 = vld [vmem:[#allocation2 + $0x271] sm:$0xff] }
 0x1b8   :  { %9152 = vmatmul.mubr.msk.f32.gmra.mrb[28].mxu0 %vm145_vm1, %v5188_v58  ;;  %8713 = vmatmul.mubr.msk.f32.gmra.mrb[62].mxu1 %vm145_vm1, %v13400_v0  ;;  %v2340_v58 = vld [vmem:[#allocation2 + $0xc0] sm:$0xff]  ;;  %v11337_v0 = vld [vmem:[#allocation2 + $0x289] sm:$0xff] }
 0x1b9   :  { %9154 = vmatprep.mubr.msk.f32.mxu0 %vm145_vm1, %v5189_v60  ;;  %8717 = vmatprep.mubr.msk.f32.mxu1 %vm145_vm1, %v2326_v62  ;;  %v11335_v60 = vld [vmem:[#allocation2 + $0x279] sm:$0xff]  ;;  %v2341_v62 = vld [vmem:[#allocation2 + $0xc8] sm:$0xff] }
 0x1bc   :  { %9155 = vmatmul.mubr.msk.f32.gmra.mrb[30].mxu0 %vm145_vm1, %v5190_v2  ;;  %8718 = vmatmul.mubr.msk.f32.vlgmr.msra.gmra.mrb[0].mxu1 %vm145_vm1, %v2327_v4  ;;  %v2342_v2 = vld [vmem:[#allocation2 + $0xd8] sm:$0xff] }
 0x1bd   :  { %9157 = vmatprep.mubr.msk.f32.mxu0 %vm145_vm1, %v11266_v6  ;;  %8720 = vmatprep.mubr.msk.f32.mxu1 %vm145_vm1, %v2328_v8  ;;  %v11345_v4 = vld [vmem:[#allocation2 + $0x291] sm:$0xff]  ;;  %v2343_v8 = vld [vmem:[#allocation2 + $0xe0] sm:$0xff] }
 0x1be   :  { %9304 = vmatpush3.msk.msra.mxu1 %vm649_vm0, %v11044_v48  ;;  %v11295_v48 = vld [vmem:[#allocation2 + $0x219] sm:$0xff] }
 0x1c0   :  { %9158 = vmatmul.mubr.msk.f32.gmra.mrb[32].mxu0 %vm145_vm1, %v11273_v10  ;;  %8721 = vmatmul.mubr.msk.f32.gmra.mrb[2].mxu1 %vm145_vm1, %v2329_v12  ;;  %v11347_v12 = vld [vmem:[#allocation2 + $0x2a1] sm:$0xff] }
 0x1c1   :  { %9160 = vmatprep.mubr.msk.f32.mxu0 %vm145_vm1, %v11277_v14  ;;  %8723 = vmatprep.mubr.msk.f32.mxu1 %vm145_vm1, %v2330_v17  ;;  %v2344_v17 = vld [vmem:[#allocation2 + $0xf0] sm:$0xff] }
 0x1c4   :  { %9161 = vmatmul.mubr.msk.f32.gmra.mrb[34].mxu0 %vm145_vm1, %v11285_v19  ;;  %8724 = vmatmul.mubr.msk.f32.gmra.mrb[4].mxu1 %vm145_vm1, %v2331_v21  ;;  %v11355_v21 = vld [vmem:[#allocation2 + $0x2a9] sm:$0xff] }
 0x1c5   :  { %9163 = vmatprep.mubr.msk.f32.mxu0 %vm145_vm1, %v11287_v23  ;;  %8726 = vmatprep.mubr.msk.f32.mxu1 %vm145_vm1, %v2332_v25  ;;  %v2345_v25 = vld [vmem:[#allocation2 + $0xf8] sm:$0xff] }
 0x1c8   :  { %9164 = vmatmul.mubr.msk.f32.gmra.mrb[36].mxu0 %vm145_vm1, %v11295_v48  ;;  %8727 = vmatmul.mubr.msk.f32.gmra.mrb[6].mxu1 %vm145_vm1, %v2333_v27  ;;  %v11357_v27 = vld [vmem:[#allocation2 + $0x2b9] sm:$0xff] }
 0x1c9   :  { %9166 = vmatprep.mubr.msk.f32.mxu0 %vm145_vm1, %v11297_v30  ;;  %8729 = vmatprep.mubr.msk.f32.mxu1 %vm145_vm1, %v2334_v32  ;;  %v2346_v32 = vld [vmem:[#allocation2 + $0x108] sm:$0xff] }
 0x1cc   :  { %9167 = vmatmul.mubr.msk.f32.gmra.mrb[38].mxu0 %vm145_vm1, %v11305_v34  ;;  %8730 = vmatmul.mubr.msk.f32.gmra.mrb[8].mxu1 %vm145_vm1, %v2335_v54  ;;  %v11365_v54 = vld [vmem:[#allocation2 + $0x2c1] sm:$0xff] }
 0x1cd   :  { %9169 = vmatprep.mubr.msk.f32.mxu0 %vm145_vm1, %v11307_v41  ;;  %8732 = vmatprep.mubr.msk.f32.mxu1 %vm145_vm1, %v2336_v52  ;;  %v2347_v52 = vld [vmem:[#allocation2 + $0x110] sm:$0xff] }
 0x1d0   :  { %9170 = vmatmul.mubr.msk.f32.gmra.mrb[40].mxu0 %vm145_vm1, %v11315_v18  ;;  %8733 = vmatmul.mubr.msk.f32.gmra.mrb[10].mxu1 %vm145_vm1, %v2337_v57  ;;  %v11367_v57 = vld [vmem:[#allocation2 + $0x2d1] sm:$0xff] }
 0x1d1   :  { %9172 = vmatprep.mubr.msk.f32.mxu0 %vm145_vm1, %v11317_v42  ;;  %8735 = vmatprep.mubr.msk.f32.mxu1 %vm145_vm1, %v2338_v44  ;;  %v2348_v44 = vld [vmem:[#allocation2 + $0x120] sm:$0xff] }
 0x1d4   :  { %9173 = vmatmul.mubr.msk.f32.gmra.mrb[42].mxu0 %vm145_vm1, %v11325_v53  ;;  %8736 = vmatmul.mubr.msk.f32.gmra.mrb[12].mxu1 %vm145_vm1, %v2339_v16  ;;  %v11375_v16 = vld [vmem:[#allocation2 + $0x2d9] sm:$0xff] }
 0x1d5   :  { %9175 = vmatprep.mubr.msk.f32.mxu0 %vm145_vm1, %v11327_v56  ;;  %8738 = vmatprep.mubr.msk.f32.mxu1 %vm145_vm1, %v2340_v58  ;;  %v2349_v58 = vld [vmem:[#allocation2 + $0x128] sm:$0xff] }
 0x1d8   :  { %9176 = vmatmul.mubr.msk.f32.gmra.mrb[44].mxu0 %vm145_vm1, %v11335_v60  ;;  %8739 = vmatmul.mubr.msk.f32.gmra.mrb[14].mxu1 %vm145_vm1, %v2341_v62  ;;  %v11377_v62 = vld [vmem:[#allocation2 + $0x2e9] sm:$0xff] }
 0x1d9   :  { %9178 = vmatprep.mubr.msk.f32.mxu0 %vm145_vm1, %v11337_v0  ;;  %8741 = vmatprep.mubr.msk.f32.mxu1 %vm145_vm1, %v2342_v2  ;;  %v2350_v2 = vld [vmem:[#allocation2 + $0x138] sm:$0xff] }
 0x1dc   :  { %9179 = vmatmul.mubr.msk.f32.gmra.mrb[46].mxu0 %vm145_vm1, %v11345_v4  ;;  %8742 = vmatmul.mubr.msk.f32.gmra.mrb[16].mxu1 %vm145_vm1, %v2343_v8  ;;  %v11385_v8 = vld [vmem:[#allocation2 + $0x2f1] sm:$0xff] }
 0x1dd   :  { %9181 = vmatprep.mubr.msk.f32.mxu0 %vm145_vm1, %v11347_v12  ;;  %8744 = vmatprep.mubr.msk.f32.mxu1 %vm145_vm1, %v2344_v17  ;;  %v2351_v17 = vld [vmem:[#allocation2 + $0x140] sm:$0xff] }
 0x1e0   :  { %9182 = vmatmul.mubr.msk.f32.gmra.mrb[48].mxu0 %vm145_vm1, %v11355_v21  ;;  %8745 = vmatmul.mubr.msk.f32.gmra.mrb[18].mxu1 %vm145_vm1, %v2345_v25  ;;  %v11387_v25 = vld [vmem:[#allocation2 + $0x301] sm:$0xff] }
 0x1e1   :  { %9184 = vmatprep.mubr.msk.f32.mxu0 %vm145_vm1, %v11357_v27  ;;  %8747 = vmatprep.mubr.msk.f32.mxu1 %vm145_vm1, %v2346_v32  ;;  %13401 = vst [vmem:[#allocation3_spill] sm:$0xff] %v11387_v25  ;;  %v2352_v32 = vld [vmem:[#allocation2 + $0x150] sm:$0xff] }
 0x1e4   :  { %9185 = vmatmul.mubr.msk.f32.gmra.mrb[50].mxu0 %vm145_vm1, %v11365_v54  ;;  %8748 = vmatmul.mubr.msk.f32.gmra.mrb[20].mxu1 %vm145_vm1, %v2347_v52  ;;  %v11395_v52 = vld [vmem:[#allocation2 + $0x309] sm:$0xff] }
 0x1e5   :  { %9187 = vmatprep.mubr.msk.f32.mxu0 %vm145_vm1, %v11367_v57  ;;  %8750 = vmatprep.mubr.msk.f32.mxu1 %vm145_vm1, %v2348_v44  ;;  %v2353_v44 = vld [vmem:[#allocation2 + $0x158] sm:$0xff] }
 0x1e8   :  { %9188 = vmatmul.mubr.msk.f32.gmra.mrb[52].mxu0 %vm145_vm1, %v11375_v16  ;;  %8751 = vmatmul.mubr.msk.f32.gmra.mrb[22].mxu1 %vm145_vm1, %v2349_v58  ;;  %v11397_v58 = vld [vmem:[#allocation2 + $0x319] sm:$0xff] }
 0x1e9   :  { %9190 = vmatprep.mubr.msk.f32.mxu0 %vm145_vm1, %v11377_v62  ;;  %8753 = vmatprep.mubr.msk.f32.mxu1 %vm145_vm1, %v2350_v2  ;;  %13402 = vst [vmem:[#allocation4_spill] sm:$0xff] %v11397_v58  ;;  %v2354_v2 = vld [vmem:[#allocation2 + $0x168] sm:$0xff] }
 0x1ec   :  { %9191 = vmatmul.mubr.msk.f32.gmra.mrb[54].mxu0 %vm145_vm1, %v11385_v8  ;;  %8754 = vmatmul.mubr.msk.f32.gmra.mrb[24].mxu1 %vm145_vm1, %v2351_v17  ;;  %v11405_v17 = vld [vmem:[#allocation2 + $0x321] sm:$0xff] }
 0x1ed   :  { %9193 = vmatprep.mubr.msk.f32.mxu0 %vm145_vm1, %v11387_v25  ;;  %8756 = vmatprep.mubr.msk.f32.mxu1 %vm145_vm1, %v2352_v32  ;;  %13403 = vst [vmem:[#allocation5_spill] sm:$0xff] %v11405_v17  ;;  %v2355_v25 = vld [vmem:[#allocation2 + $0x170] sm:$0xff] }
 0x1ee   :  { %v11407_v32 = vld [vmem:[#allocation2 + $0x331] sm:$0xff] }
 0x1f0   :  { %9194 = vmatmul.mubr.msk.f32.gmra.mrb[56].mxu0 %vm145_vm1, %v11395_v52  ;;  %8757 = vmatmul.mubr.msk.f32.gmra.mrb[26].mxu1 %vm145_vm1, %v2353_v44  ;;  %v11416_v44 = vld [vmem:[#allocation2 + $0x339] sm:$0xff] }
 0x1f1   :  { %9196 = vmatprep.mubr.msk.f32.mxu0 %vm145_vm1, %v11397_v58  ;;  %8759 = vmatprep.mubr.msk.f32.mxu1 %vm145_vm1, %v2354_v2  ;;  %13404 = vst [vmem:[#allocation6_spill] sm:$0xff] %v11416_v44  ;;  %v5221_v58 = vld [vmem:[#allocation2 + $0x349] sm:$0xff] }
 0x1f2   :  { %v2358_v2 = vld [vmem:[#allocation2 + $0x1c8] sm:$0xff] }
 0x1f4   :  { %9197 = vmatmul.mubr.msk.f32.gmra.mrb[58].mxu0 %vm145_vm1, %v11405_v17  ;;  %8760 = vmatmul.mubr.msk.f32.gmra.mrb[28].mxu1 %vm145_vm1, %v2355_v25  ;;  %v5222_v25 = vld [vmem:[#allocation2 + $0x351] sm:$0xff] }
 0x1f5   :  { %9199 = vmatprep.mubr.msk.f32.mxu0 %vm145_vm1, %v11407_v32  ;;  %8762 = vmatprep.mubr.msk.f32.mxu1 %vm145_vm1, %v11011_v35  ;;  %v5867_v17 = vld [vmem:[#allocation2 + $0x32] sm:$0xff]  ;;  %v5868_v35 = vld [vmem:[#allocation2 + $0x3a] sm:$0xff] }
 0x1f8   :  { %9200 = vmatmul.mubr.msk.f32.gmra.mrb[60].mxu0 %vm145_vm1, %v11416_v44  ;;  %8763 = vmatmul.mubr.msk.f32.gmra.mrb[30].mxu1 %vm145_vm1, %v11023_v55  ;;  %v5869_v44 = vld [vmem:[#allocation2 + $0x4a] sm:$0xff]  ;;  %v5870_v55 = vld [vmem:[#allocation2 + $0x52] sm:$0xff] }
 0x1f9   :  { %9202 = vmatprep.mubr.msk.f32.mxu0 %vm145_vm1, %v5221_v58  ;;  %8765 = vmatprep.mubr.msk.f32.mxu1 %vm145_vm1, %v2358_v2  ;;  %v5871_v58 = vld [vmem:[#allocation2 + $0x62] sm:$0xff]  ;;  %v5903_v2 = vld [vmem:[#allocation2 + $0x212] sm:$0xff] }
 0x1fc   :  { %9203 = vmatmul.mubr.msk.f32.gmra.mrb[62].mxu0 %vm145_vm1, %v5222_v25  ;;  %8766 = vmatmul.mubr.msk.f32.gmra.mrb[32].mxu1 %vm145_vm1, %v10844_v1  ;;  %v5873_v1 = vld [vmem:[#allocation2 + $0x7a] sm:$0xff]  ;;  %v5905_v25 = vld [vmem:[#allocation2 + $0x22a] sm:$0xff] }
 0x1fd   :  { %9207 = vmatprep.mubr.msk.f32.mxu0 %vm145_vm1, %v5867_v17  ;;  %8768 = vmatprep.mubr.msk.f32.mxu1 %vm145_vm1, %v10846_v36  ;;  %v5872_v36 = vld [vmem:[#allocation2 + $0x6a] sm:$0xff] }
 0x1fe   :  { %v3067_v17 = vld [vmem:[#allocation2 + $0x1d1] sm:$0xff] }
 0x200   :  { %9208 = vmatmul.mubr.msk.f32.vlgmr.msra.gmra.mrb[0].mxu0 %vm145_vm1, %v5868_v35  ;;  %8769 = vmatmul.mubr.msk.f32.gmra.mrb[34].mxu1 %vm145_vm1, %v10861_v38  ;;  %v5874_v38 = vld [vmem:[#allocation2 + $0x82] sm:$0xff]  ;;  %v5925_v35 = vld [vmem:[#allocation2 + $0x31a] sm:$0xff] }
 0x201   :  { %9210 = vmatprep.mubr.msk.f32.mxu0 %vm145_vm1, %v5869_v44  ;;  %8771 = vmatprep.mubr.msk.f32.mxu1 %vm145_vm1, %v10865_v49  ;;  %v5875_v49 = vld [vmem:[#allocation2 + $0x92] sm:$0xff]  ;;  %v5901_v44 = vld [vmem:[#allocation2 + $0x1fa] sm:$0xff] }
 0x204   :  { %9211 = vmatmul.mubr.msk.f32.gmra.mrb[2].mxu0 %vm145_vm1, %v5870_v55  ;;  %8772 = vmatmul.mubr.msk.f32.gmra.mrb[36].mxu1 %vm145_vm1, %v10877_v50  ;;  %v5876_v50 = vld [vmem:[#allocation2 + $0x9a] sm:$0xff]  ;;  %v5927_v55 = vld [vmem:[#allocation2 + $0x332] sm:$0xff] }
 0x205   :  { %9213 = vmatprep.mubr.msk.f32.mxu0 %vm145_vm1, %v5871_v58  ;;  %8774 = vmatprep.mubr.msk.f32.mxu1 %vm145_vm1, %v10879_v59  ;;  %v5877_v59 = vld [vmem:[#allocation2 + $0xaa] sm:$0xff]  ;;  %v5928_v58 = vld [vmem:[#allocation2 + $0x33a] sm:$0xff] }
 0x208   :  { %9214 = vmatmul.mubr.msk.f32.gmra.mrb[4].mxu0 %vm145_vm1, %v5872_v36  ;;  %8775 = vmatmul.mubr.msk.f32.gmra.mrb[38].mxu1 %vm145_vm1, %v10889_v61  ;;  %v5878_v61 = vld [vmem:[#allocation2 + $0xb2] sm:$0xff]  ;;  %v5929_v36 = vld [vmem:[#allocation2 + $0x34a] sm:$0xff] }
 0x209   :  { %9216 = vmatprep.mubr.msk.f32.mxu0 %vm145_vm1, %v5873_v1  ;;  %8777 = vmatprep.mubr.msk.f32.mxu1 %vm145_vm1, %v10891_v28  ;;  %v5879_v28 = vld [vmem:[#allocation2 + $0xc2] sm:$0xff]  ;;  %v5930_v1 = vld [vmem:[#allocation2 + $0x352] sm:$0xff] }
 0x20c   :  { %9217 = vmatmul.mubr.msk.f32.gmra.mrb[6].mxu0 %vm145_vm1, %v5874_v38  ;;  %8778 = vmatmul.mubr.msk.f32.gmra.mrb[40].mxu1 %vm145_vm1, %v10901_v3  ;;  %v5880_v3 = vld [vmem:[#allocation2 + $0xca] sm:$0xff] }
 0x20d   :  { %9219 = vmatprep.mubr.msk.f32.mxu0 %vm145_vm1, %v5875_v49  ;;  %8780 = vmatprep.mubr.msk.f32.mxu1 %vm145_vm1, %v10903_v7  ;;  %v5881_v7 = vld [vmem:[#allocation2 + $0xda] sm:$0xff] }
 0x210   :  { %9220 = vmatmul.mubr.msk.f32.gmra.mrb[8].mxu0 %vm145_vm1, %v5876_v50  ;;  %8781 = vmatmul.mubr.msk.f32.gmra.mrb[42].mxu1 %vm145_vm1, %v10913_v9  ;;  %v5882_v9 = vld [vmem:[#allocation2 + $0xe2] sm:$0xff] }
 0x211   :  { %9222 = vmatprep.mubr.msk.f32.mxu0 %vm145_vm1, %v5877_v59  ;;  %8783 = vmatprep.mubr.msk.f32.mxu1 %vm145_vm1, %v10915_v11  ;;  %v5883_v11 = vld [vmem:[#allocation2 + $0xf2] sm:$0xff] }
 0x214   :  { %9223 = vmatmul.mubr.msk.f32.gmra.mrb[10].mxu0 %vm145_vm1, %v5878_v61  ;;  %8784 = vmatmul.mubr.msk.f32.gmra.mrb[44].mxu1 %vm145_vm1, %v10925_v15  ;;  %v5884_v15 = vld [vmem:[#allocation2 + $0xfa] sm:$0xff] }
 0x215   :  { %9225 = vmatprep.mubr.msk.f32.mxu0 %vm145_vm1, %v5879_v28  ;;  %8786 = vmatprep.mubr.msk.f32.mxu1 %vm145_vm1, %v10927_v20  ;;  %v5885_v20 = vld [vmem:[#allocation2 + $0x10a] sm:$0xff] }
 0x218   :  { %9226 = vmatmul.mubr.msk.f32.gmra.mrb[12].mxu0 %vm145_vm1, %v5880_v3  ;;  %8787 = vmatmul.mubr.msk.f32.gmra.mrb[46].mxu1 %vm145_vm1, %v10937_v24  ;;  %v5886_v24 = vld [vmem:[#allocation2 + $0x112] sm:$0xff] }
 0x219   :  { %9228 = vmatprep.mubr.msk.f32.mxu0 %vm145_vm1, %v5881_v7  ;;  %8789 = vmatprep.mubr.msk.f32.mxu1 %vm145_vm1, %v10939_v29  ;;  %v5887_v29 = vld [vmem:[#allocation2 + $0x122] sm:$0xff] }
 0x21c   :  { %9229 = vmatmul.mubr.msk.f32.gmra.mrb[14].mxu0 %vm145_vm1, %v5882_v9  ;;  %8790 = vmatmul.mubr.msk.f32.gmra.mrb[48].mxu1 %vm145_vm1, %v10949_v33  ;;  %v5888_v33 = vld [vmem:[#allocation2 + $0x12a] sm:$0xff] }
 0x21d   :  { %9231 = vmatprep.mubr.msk.f32.mxu0 %vm145_vm1, %v5883_v11  ;;  %8792 = vmatprep.mubr.msk.f32.mxu1 %vm145_vm1, %v10951_v37  ;;  %v5889_v37 = vld [vmem:[#allocation2 + $0x13a] sm:$0xff] }
 0x220   :  { %9232 = vmatmul.mubr.msk.f32.gmra.mrb[16].mxu0 %vm145_vm1, %v5884_v15  ;;  %8793 = vmatmul.mubr.msk.f32.gmra.mrb[50].mxu1 %vm145_vm1, %v10961_v31  ;;  %v5890_v31 = vld [vmem:[#allocation2 + $0x142] sm:$0xff] }
 0x221   :  { %9234 = vmatprep.mubr.msk.f32.mxu0 %vm145_vm1, %v5885_v20  ;;  %8795 = vmatprep.mubr.msk.f32.mxu1 %vm145_vm1, %v10963_v39  ;;  %v5891_v39 = vld [vmem:[#allocation2 + $0x152] sm:$0xff] }
 0x224   :  { %9235 = vmatmul.mubr.msk.f32.gmra.mrb[18].mxu0 %vm145_vm1, %v5886_v24  ;;  %8796 = vmatmul.mubr.msk.f32.gmra.mrb[52].mxu1 %vm145_vm1, %v10973_v22  ;;  %v5892_v22 = vld [vmem:[#allocation2 + $0x15a] sm:$0xff] }
 0x225   :  { %9237 = vmatprep.mubr.msk.f32.mxu0 %vm145_vm1, %v5887_v29  ;;  %8798 = vmatprep.mubr.msk.f32.mxu1 %vm145_vm1, %v10975_v43  ;;  %v5893_v43 = vld [vmem:[#allocation2 + $0x16a] sm:$0xff] }
 0x228   :  { %9238 = vmatmul.mubr.msk.f32.gmra.mrb[20].mxu0 %vm145_vm1, %v5888_v33  ;;  %8799 = vmatmul.mubr.msk.f32.gmra.mrb[54].mxu1 %vm145_vm1, %v10985_v13  ;;  %v5894_v13 = vld [vmem:[#allocation2 + $0x172] sm:$0xff] }
 0x229   :  { %9240 = vmatprep.mubr.msk.f32.mxu0 %vm145_vm1, %v5889_v37  ;;  %8801 = vmatprep.mubr.msk.f32.mxu1 %vm145_vm1, %v10987_v45  ;;  %v5895_v45 = vld [vmem:[#allocation2 + $0x182] sm:$0xff] }
 0x22c   :  { %9241 = vmatmul.mubr.msk.f32.gmra.mrb[22].mxu0 %vm145_vm1, %v5890_v31  ;;  %8802 = vmatmul.mubr.msk.f32.gmra.mrb[56].mxu1 %vm145_vm1, %v10997_v5  ;;  %v5896_v5 = vld [vmem:[#allocation2 + $0x18a] sm:$0xff] }
 0x22d   :  { %9243 = vmatprep.mubr.msk.f32.mxu0 %vm145_vm1, %v5891_v39  ;;  %8804 = vmatprep.mubr.msk.f32.mxu1 %vm145_vm1, %v10999_v46  ;;  %v5897_v46 = vld [vmem:[#allocation2 + $0x19a] sm:$0xff] }
 0x230   :  { %9244 = vmatmul.mubr.msk.f32.gmra.mrb[24].mxu0 %vm145_vm1, %v5892_v22  ;;  %8805 = vmatmul.mubr.msk.f32.gmra.mrb[58].mxu1 %vm145_vm1, %v11009_v63  ;;  %v3066_v63 = vld [vmem:[#allocation2 + $0x1c9] sm:$0xff] }
 0x231   :  { %9246 = vmatprep.mubr.msk.f32.mxu0 %vm145_vm1, %v5893_v43  ;;  %8807 = vmatprep.mubr.msk.f32.mxu1 %vm145_vm1, %v11013_v47  ;;  %v5898_v47 = vld [vmem:[#allocation2 + $0x1a2] sm:$0xff] }
 0x234   :  { %9247 = vmatmul.mubr.msk.f32.gmra.mrb[26].mxu0 %vm145_vm1, %v5894_v13  ;;  %8808 = vmatmul.mubr.msk.f32.gmra.mrb[60].mxu1 %vm145_vm1, %v11025_v26  ;;  %v5899_v26 = vld [vmem:[#allocation2 + $0x1e2] sm:$0xff] }
 0x235   :  { %9249 = vmatprep.mubr.msk.f32.mxu0 %vm145_vm1, %v5895_v45  ;;  %8810 = vmatprep.mubr.msk.f32.mxu1 %vm145_vm1, %v11152_v40  ;;  %v5900_v40 = vld [vmem:[#allocation2 + $0x1ea] sm:$0xff] }
 0x238   :  { %9250 = vmatmul.mubr.msk.f32.gmra.mrb[28].mxu0 %vm145_vm1, %v5896_v5  ;;  %8811 = vmatmul.mubr.msk.f32.gmra.mrb[62].mxu1 %vm145_vm1, %v11162_v51  ;;  %v5902_v51 = vld [vmem:[#allocation2 + $0x202] sm:$0xff] }
 0x239   :  { %9252 = vmatprep.mubr.msk.f32.mxu0 %vm145_vm1, %v5897_v46  ;;  %8863 = vmatprep.mubr.msk.f32.mxu1 %vm145_vm1, %v3066_v63 }
 0x23c   :  { %9253 = vmatmul.mubr.msk.f32.gmra.mrb[30].mxu0 %vm145_vm1, %v5898_v47  ;;  %8864 = vmatmul.mubr.msk.f32.vlgmr.msra.gmra.mrb[32].mxu1 %vm145_vm1, %v3067_v17 }
 0x23d   :  { %9255 = vmatprep.mubr.msk.f32.mxu0 %vm145_vm1, %v5899_v26  ;;  %8866 = vmatprep.mubr.msk.f32.mxu1 %vm145_vm1, %v11266_v6  ;;  %v5904_v6 = vld [vmem:[#allocation2 + $0x21a] sm:$0xff] }
 0x240   :  { %9256 = vmatmul.mubr.msk.f32.gmra.mrb[32].mxu0 %vm145_vm1, %v5900_v40  ;;  %8867 = vmatmul.mubr.msk.f32.gmra.mrb[34].mxu1 %vm145_vm1, %v11273_v10  ;;  %v5906_v10 = vld [vmem:[#allocation2 + $0x232] sm:$0xff] }
 0x241   :  { %9258 = vmatprep.mubr.msk.f32.mxu0 %vm145_vm1, %v5901_v44  ;;  %8869 = vmatprep.mubr.msk.f32.mxu1 %vm145_vm1, %v11277_v14  ;;  %v5907_v14 = vld [vmem:[#allocation2 + $0x242] sm:$0xff] }
 0x244   :  { %9259 = vmatmul.mubr.msk.f32.gmra.mrb[34].mxu0 %vm145_vm1, %v5902_v51  ;;  %8870 = vmatmul.mubr.msk.f32.gmra.mrb[36].mxu1 %vm145_vm1, %v11285_v19  ;;  %v5908_v19 = vld [vmem:[#allocation2 + $0x24a] sm:$0xff] }
 0x245   :  { %9261 = vmatprep.mubr.msk.f32.mxu0 %vm145_vm1, %v5903_v2  ;;  %8872 = vmatprep.mubr.msk.f32.mxu1 %vm145_vm1, %v11287_v23  ;;  %v5909_v23 = vld [vmem:[#allocation2 + $0x25a] sm:$0xff] }
 0x248   :  { %9262 = vmatmul.mubr.msk.f32.gmra.mrb[36].mxu0 %vm145_vm1, %v5904_v6  ;;  %8873 = vmatmul.mubr.msk.f32.gmra.mrb[38].mxu1 %vm145_vm1, %v11295_v48  ;;  %v5910_v48 = vld [vmem:[#allocation2 + $0x262] sm:$0xff] }
 0x249   :  { %9264 = vmatprep.mubr.msk.f32.mxu0 %vm145_vm1, %v5905_v25  ;;  %8875 = vmatprep.mubr.msk.f32.mxu1 %vm145_vm1, %v11297_v30  ;;  %v5911_v30 = vld [vmem:[#allocation2 + $0x272] sm:$0xff] }
 0x24c   :  { %9265 = vmatmul.mubr.msk.f32.gmra.mrb[38].mxu0 %vm145_vm1, %v5906_v10  ;;  %8876 = vmatmul.mubr.msk.f32.gmra.mrb[40].mxu1 %vm145_vm1, %v11305_v34  ;;  %v5912_v34 = vld [vmem:[#allocation2 + $0x27a] sm:$0xff] }
 0x24d   :  { %9267 = vmatprep.mubr.msk.f32.mxu0 %vm145_vm1, %v5907_v14  ;;  %8878 = vmatprep.mubr.msk.f32.mxu1 %vm145_vm1, %v11307_v41  ;;  %v5913_v41 = vld [vmem:[#allocation2 + $0x28a] sm:$0xff] }
 0x250   :  { %9268 = vmatmul.mubr.msk.f32.gmra.mrb[40].mxu0 %vm145_vm1, %v5908_v19  ;;  %8879 = vmatmul.mubr.msk.f32.gmra.mrb[42].mxu1 %vm145_vm1, %v11315_v18  ;;  %v5914_v18 = vld [vmem:[#allocation2 + $0x292] sm:$0xff] }
 0x251   :  { %9270 = vmatprep.mubr.msk.f32.mxu0 %vm145_vm1, %v5909_v23  ;;  %8881 = vmatprep.mubr.msk.f32.mxu1 %vm145_vm1, %v11317_v42  ;;  %v5915_v42 = vld [vmem:[#allocation2 + $0x2a2] sm:$0xff] }
 0x254   :  { %9271 = vmatmul.mubr.msk.f32.gmra.mrb[42].mxu0 %vm145_vm1, %v5910_v48  ;;  %8882 = vmatmul.mubr.msk.f32.gmra.mrb[44].mxu1 %vm145_vm1, %v11325_v53  ;;  %v5916_v53 = vld [vmem:[#allocation2 + $0x2aa] sm:$0xff] }
 0x255   :  { %9273 = vmatprep.mubr.msk.f32.mxu0 %vm145_vm1, %v5911_v30  ;;  %8884 = vmatprep.mubr.msk.f32.mxu1 %vm145_vm1, %v11327_v56  ;;  %v5917_v56 = vld [vmem:[#allocation2 + $0x2ba] sm:$0xff] }
 0x258   :  { %9274 = vmatmul.mubr.msk.f32.gmra.mrb[44].mxu0 %vm145_vm1, %v5912_v34  ;;  %8885 = vmatmul.mubr.msk.f32.gmra.mrb[46].mxu1 %vm145_vm1, %v11335_v60  ;;  %v5918_v60 = vld [vmem:[#allocation2 + $0x2c2] sm:$0xff] }
 0x259   :  { %9276 = vmatprep.mubr.msk.f32.mxu0 %vm145_vm1, %v5913_v41  ;;  %8887 = vmatprep.mubr.msk.f32.mxu1 %vm145_vm1, %v11337_v0  ;;  %v5919_v0 = vld [vmem:[#allocation2 + $0x2d2] sm:$0xff] }
 0x25c   :  { %9277 = vmatmul.mubr.msk.f32.gmra.mrb[46].mxu0 %vm145_vm1, %v5914_v18  ;;  %8888 = vmatmul.mubr.msk.f32.gmra.mrb[48].mxu1 %vm145_vm1, %v11345_v4  ;;  %v5920_v4 = vld [vmem:[#allocation2 + $0x2da] sm:$0xff] }
 0x25d   :  { %9279 = vmatprep.mubr.msk.f32.mxu0 %vm145_vm1, %v5915_v42  ;;  %8890 = vmatprep.mubr.msk.f32.mxu1 %vm145_vm1, %v11347_v12  ;;  %v5921_v12 = vld [vmem:[#allocation2 + $0x2ea] sm:$0xff] }
 0x260   :  { %9280 = vmatmul.mubr.msk.f32.gmra.mrb[48].mxu0 %vm145_vm1, %v5916_v53  ;;  %8891 = vmatmul.mubr.msk.f32.gmra.mrb[50].mxu1 %vm145_vm1, %v11355_v21  ;;  %v5922_v21 = vld [vmem:[#allocation2 + $0x2f2] sm:$0xff] }
 0x261   :  { %9282 = vmatprep.mubr.msk.f32.mxu0 %vm145_vm1, %v5917_v56  ;;  %8893 = vmatprep.mubr.msk.f32.mxu1 %vm145_vm1, %v11357_v27  ;;  %v5923_v27 = vld [vmem:[#allocation2 + $0x302] sm:$0xff] }
 0x264   :  { %9283 = vmatmul.mubr.msk.f32.gmra.mrb[50].mxu0 %vm145_vm1, %v5918_v60  ;;  %8894 = vmatmul.mubr.msk.f32.gmra.mrb[52].mxu1 %vm145_vm1, %v11365_v54  ;;  %v13405_v54 = vld [vmem:[#allocation3_spill] sm:$0xff] }
 0x265   :  { %9285 = vmatprep.mubr.msk.f32.mxu0 %vm145_vm1, %v5919_v0  ;;  %8896 = vmatprep.mubr.msk.f32.mxu1 %vm145_vm1, %v11367_v57  ;;  %v5924_v57 = vld [vmem:[#allocation2 + $0x30a] sm:$0xff] }
 0x268   :  { %9286 = vmatmul.mubr.msk.f32.gmra.mrb[52].mxu0 %vm145_vm1, %v5920_v4  ;;  %8897 = vmatmul.mubr.msk.f32.gmra.mrb[54].mxu1 %vm145_vm1, %v11375_v16  ;;  %v13406_v16 = vld [vmem:[#allocation4_spill] sm:$0xff] }
 0x269   :  { %9288 = vmatprep.mubr.msk.f32.mxu0 %vm145_vm1, %v5921_v12  ;;  %8899 = vmatprep.mubr.msk.f32.mxu1 %vm145_vm1, %v11377_v62  ;;  %v5926_v62 = vld [vmem:[#allocation2 + $0x322] sm:$0xff] }
 0x26c   :  { %9289 = vmatmul.mubr.msk.f32.gmra.mrb[54].mxu0 %vm145_vm1, %v5922_v21  ;;  %8900 = vmatmul.mubr.msk.f32.gmra.mrb[56].mxu1 %vm145_vm1, %v11385_v8  ;;  %v13407_v8 = vld [vmem:[#allocation5_spill] sm:$0xff] }
 0x26d   :  { %9291 = vmatprep.mubr.msk.f32.mxu0 %vm145_vm1, %v5923_v27  ;;  %8902 = vmatprep.mubr.msk.f32.mxu1 %vm145_vm1, %v13405_v54 }
 0x270   :  { %9292 = vmatmul.mubr.msk.f32.gmra.mrb[56].mxu0 %vm145_vm1, %v5924_v57  ;;  %8903 = vmatmul.mubr.msk.f32.gmra.mrb[58].mxu1 %vm145_vm1, %v11395_v52  ;;  %v13408_v52 = vld [vmem:[#allocation6_spill] sm:$0xff] }
 0x271   :  { %9294 = vmatprep.mubr.msk.f32.mxu0 %vm145_vm1, %v5925_v35  ;;  %8905 = vmatprep.mubr.msk.f32.mxu1 %vm145_vm1, %v13406_v16 }
 0x274   :  { %9295 = vmatmul.mubr.msk.f32.gmra.mrb[58].mxu0 %vm145_vm1, %v5926_v62  ;;  %8906 = vmatmul.mubr.msk.f32.gmra.mrb[60].mxu1 %vm145_vm1, %v13407_v8 }
 0x275   :  { %9297 = vmatprep.mubr.msk.f32.mxu0 %vm145_vm1, %v5927_v55  ;;  %8908 = vmatprep.mubr.msk.f32.mxu1 %vm145_vm1, %v11407_v32 }
 0x278   :  { %9298 = vmatmul.mubr.msk.f32.gmra.mrb[60].mxu0 %vm145_vm1, %v5928_v58  ;;  %8909 = vmatmul.mubr.msk.f32.gmra.mrb[62].mxu1 %vm145_vm1, %v13408_v52 }
 0x279   :  { %9300 = vmatprep.mubr.msk.f32.mxu0 %vm145_vm1, %v5929_v36 }
 0x27c   :  { %9301 = vmatmul.mubr.msk.f32.gmra.mrb[62].mxu0 %vm145_vm1, %v5930_v1 }
 0x28f   :  { %v8719_v38 = vpop.f32.mrb[0].mxu1 }
 0x290   :  { %v2651_v49 = vpop.f32.mrb[1].mxu1 }
 0x293   :  { %v8722_v50 = vpop.f32.mrb[2].mxu1 }
 0x294   :  { %v2661_v59 = vpop.f32.mrb[3].mxu1 }
 0x297   :  { %v8725_v61 = vpop.f32.mrb[4].mxu1 }
 0x298   :  { %v2671_v28 = vpop.f32.mrb[5].mxu1 }
 0x29b   :  { %v8728_v3 = vpop.f32.mrb[6].mxu1 }
 0x29c   :  { %v2681_v32 = vpop.f32.mrb[7].mxu1 }
 0x29f   :  { %v8731_v7 = vpop.f32.mrb[8].mxu1 }
 0x2a0   :  { %v2691_v9 = vpop.f32.mrb[9].mxu1 }
 0x2a3   :  { %v8734_v11 = vpop.f32.mrb[10].mxu1 }
 0x2a4   :  { %v11613_v15 = vpop.f32.mrb[11].mxu1 }
 0x2a7   :  { %v11615_v20 = vpop.f32.mrb[12].mxu1 }
 0x2a8   :  { %v11617_v24 = vpop.f32.mrb[13].mxu1 }
 0x2ab   :  { %v11619_v29 = vpop.f32.mrb[14].mxu1 }
 0x2ac   :  { %v11621_v33 = vpop.f32.mrb[15].mxu1 }
 0x2af   :  { %v11623_v37 = vpop.f32.mrb[16].mxu1 }
 0x2b0   :  { %v11625_v31 = vpop.f32.mrb[17].mxu1 }
 0x2b3   :  { %v11627_v39 = vpop.f32.mrb[18].mxu1 }
 0x2b4   :  { %v11629_v22 = vpop.f32.mrb[19].mxu1 }
 0x2b7   :  { %v11631_v43 = vpop.f32.mrb[20].mxu1 }
 0x2b8   :  { %v11633_v13 = vpop.f32.mrb[21].mxu1 }
 0x2bb   :  { %v11635_v45 = vpop.f32.mrb[22].mxu1 }
 0x2bc   :  { %v11637_v5 = vpop.f32.mrb[23].mxu1 }
 0x2bf   :  { %v11639_v46 = vpop.f32.mrb[24].mxu1 }
 0x2c0   :  { %v11641_v63 = vpop.f32.mrb[25].mxu1 }
 0x2c3   :  { %v11643_v47 = vpop.f32.mrb[26].mxu1 }
 0x2c4   :  { %v11645_v17 = vpop.f32.mrb[27].mxu1 }
 0x2c7   :  { %v11647_v26 = vpop.f32.mrb[28].mxu1 }
 0x2c8   :  { %v11649_v40 = vpop.f32.mrb[29].mxu1 }
 0x2cb   :  { %v11651_v44 = vpop.f32.mrb[30].mxu1 }
 0x2cc   :  { %v11653_v51 = vpop.f32.mrb[31].mxu1 }
 0x2d3   :  { %v9209_v2 = vpop.f32.mrb[0].mxu0 }
 0x2d4   :  { %v11655_v6 = vadd.f32 %v9209_v2, %v8719_v38  ;;  %v6192_v25 = vpop.f32.mrb[1].mxu0 }
 0x2d5   :  { %v11657_v10 = vadd.f32 %v6192_v25, %v2651_v49 }
 0x2d6   :  { %v6577_v14 = vsel %vm6575_vm3, %v11655_v6, 0.0 }
 0x2d7   :  { %v6576_v19 = vsel %vm6575_vm3, %v11657_v10, 0.0  ;;  %v9212_v23 = vpop.f32.mrb[2].mxu0 }
 0x2d8   :  { %v11663_v48 = vadd.f32 %v9212_v23, %v8722_v50  ;;  %v6202_v30 = vpop.f32.mrb[3].mxu0  ;;  %v6578_v41 = vadd.f32 %v6577_v14, %v6576_v19 }
 0x2d9   :  { %v11665_v34 = vadd.f32 %v6202_v30, %v2661_v59 }
 0x2da   :  { %v6581_v0 = vsel %vm6575_vm3, %v11663_v48, 0.0 }
 0x2db   :  { %v6579_v18 = vsel %vm6575_vm3, %v11665_v34, 0.0  ;;  %v9215_v42 = vpop.f32.mrb[4].mxu0 }
 0x2dc   :  { %v6580_v53 = vadd.f32 %v6579_v18, %v6578_v41  ;;  %v11669_v56 = vadd.f32 %v9215_v42, %v8725_v61  ;;  %v6212_v60 = vpop.f32.mrb[5].mxu0 }
 0x2dd   :  { %v11673_v4 = vadd.f32 %v6212_v60, %v2671_v28 }
 0x2de   :  { %v6582_v12 = vadd.f32 %v6581_v0, %v6580_v53  ;;  %v6585_v16 = vsel %vm6575_vm3, %v11669_v56, 0.0 }
 0x2df   :  { %v6583_v21 = vsel %vm6575_vm3, %v11673_v4, 0.0  ;;  %v9218_v27 = vpop.f32.mrb[6].mxu0 }
 0x2e0   :  { %v6584_v54 = vadd.f32 %v6583_v21, %v6582_v12  ;;  %v11677_v57 = vadd.f32 %v9218_v27, %v8728_v3  ;;  %v6222_v35 = vpop.f32.mrb[7].mxu0 }
 0x2e1   :  { %v11681_v62 = vadd.f32 %v6222_v35, %v2681_v32 }
 0x2e2   :  { %v6586_v55 = vadd.f32 %v6585_v16, %v6584_v54  ;;  %v6589_v38 = vsel %vm6575_vm3, %v11677_v57, 0.0 }
 0x2e3   :  { %v6587_v8 = vsel %vm6575_vm3, %v11681_v62, 0.0  ;;  %v9221_v58 = vpop.f32.mrb[8].mxu0 }
 0x2e4   :  { %v6588_v36 = vadd.f32 %v6587_v8, %v6586_v55  ;;  %v11685_v52 = vadd.f32 %v9221_v58, %v8731_v7  ;;  %v6232_v1 = vpop.f32.mrb[9].mxu0 }
 0x2e5   :  { %v11689_v49 = vadd.f32 %v6232_v1, %v2691_v9 }
 0x2e6   :  { %v6590_v50 = vadd.f32 %v6589_v38, %v6588_v36  ;;  %v6593_v2 = vsel %vm6575_vm3, %v11685_v52, 0.0 }
 0x2e7   :  { %v6591_v59 = vsel %vm6575_vm3, %v11689_v49, 0.0  ;;  %v9224_v61 = vpop.f32.mrb[10].mxu0 }
 0x2e8   :  { %v6592_v28 = vadd.f32 %v6591_v59, %v6590_v50  ;;  %v11693_v3 = vadd.f32 %v9224_v61, %v8734_v11  ;;  %v6242_v32 = vpop.f32.mrb[11].mxu0 }
 0x2e9   :  { %v11698_v7 = vadd.f32 %v6242_v32, %v11613_v15 }
 0x2ea   :  { %v6594_v25 = vadd.f32 %v6593_v2, %v6592_v28  ;;  %v6597_v11 = vsel %vm6575_vm3, %v11693_v3, 0.0 }
 0x2eb   :  { %v6595_v9 = vsel %vm6575_vm3, %v11698_v7, 0.0  ;;  %v9227_v14 = vpop.f32.mrb[12].mxu0 }
 0x2ec   :  { %v6596_v19 = vadd.f32 %v6595_v9, %v6594_v25  ;;  %v11703_v23 = vadd.f32 %v9227_v14, %v11615_v20  ;;  %v6252_v30 = vpop.f32.mrb[13].mxu0 }
 0x2ed   :  { %v11708_v41 = vadd.f32 %v6252_v30, %v11617_v24 }
 0x2ee   :  { %v6598_v18 = vadd.f32 %v6597_v11, %v6596_v19  ;;  %v6601_v20 = vsel %vm6575_vm3, %v11703_v23, 0.0 }
 0x2ef   :  { %v6599_v15 = vsel %vm6575_vm3, %v11708_v41, 0.0  ;;  %v9230_v42 = vpop.f32.mrb[14].mxu0 }
 0x2f0   :  { %v6600_v53 = vadd.f32 %v6599_v15, %v6598_v18  ;;  %v11713_v60 = vadd.f32 %v9230_v42, %v11619_v29  ;;  %v6262_v0 = vpop.f32.mrb[15].mxu0 }
 0x2f1   :  { %v11718_v12 = vadd.f32 %v6262_v0, %v11621_v33 }
 0x2f2   :  { %v6602_v21 = vadd.f32 %v6601_v20, %v6600_v53  ;;  %v6605_v29 = vsel %vm6575_vm3, %v11713_v60, 0.0 }
 0x2f3   :  { %v6603_v24 = vsel %vm6575_vm3, %v11718_v12, 0.0  ;;  %v9233_v27 = vpop.f32.mrb[16].mxu0 }
 0x2f4   :  { %v6604_v54 = vadd.f32 %v6603_v24, %v6602_v21  ;;  %v11723_v35 = vadd.f32 %v9233_v27, %v11623_v37  ;;  %v6272_v16 = vpop.f32.mrb[17].mxu0 }
 0x2f5   :  { %v11728_v55 = vadd.f32 %v6272_v16, %v11625_v31 }
 0x2f6   :  { %v6606_v8 = vadd.f32 %v6605_v29, %v6604_v54  ;;  %v6609_v37 = vsel %vm6575_vm3, %v11723_v35, 0.0 }
 0x2f7   :  { %v6607_v33 = vsel %vm6575_vm3, %v11728_v55, 0.0  ;;  %v9236_v58 = vpop.f32.mrb[18].mxu0 }
 0x2f8   :  { %v6608_v36 = vadd.f32 %v6607_v33, %v6606_v8  ;;  %v11733_v1 = vadd.f32 %v9236_v58, %v11627_v39  ;;  %v6282_v38 = vpop.f32.mrb[19].mxu0 }
 0x2f9   :  { %v11738_v50 = vadd.f32 %v6282_v38, %v11629_v22 }
 0x2fa   :  { %v6610_v59 = vadd.f32 %v6609_v37, %v6608_v36  ;;  %v6613_v39 = vsel %vm6575_vm3, %v11733_v1, 0.0 }
 0x2fb   :  { %v6611_v31 = vsel %vm6575_vm3, %v11738_v50, 0.0  ;;  %v9239_v61 = vpop.f32.mrb[20].mxu0 }
 0x2fc   :  { %v6612_v28 = vadd.f32 %v6611_v31, %v6610_v59  ;;  %v11743_v32 = vadd.f32 %v9239_v61, %v11631_v43  ;;  %v6292_v2 = vpop.f32.mrb[21].mxu0 }
 0x2fd   :  { %v11748_v25 = vadd.f32 %v6292_v2, %v11633_v13 }
 0x2fe   :  { %v6614_v9 = vadd.f32 %v6613_v39, %v6612_v28  ;;  %v6617_v43 = vsel %vm6575_vm3, %v11743_v32, 0.0 }
 0x2ff   :  { %v6615_v22 = vsel %vm6575_vm3, %v11748_v25, 0.0  ;;  %v9242_v14 = vpop.f32.mrb[22].mxu0 }
 0x300   :  { %v6616_v19 = vadd.f32 %v6615_v22, %v6614_v9  ;;  %v11753_v30 = vadd.f32 %v9242_v14, %v11635_v45  ;;  %v6302_v11 = vpop.f32.mrb[23].mxu0 }
 0x301   :  { %v11758_v18 = vadd.f32 %v6302_v11, %v11637_v5 }
 0x302   :  { %v6618_v15 = vadd.f32 %v6617_v43, %v6616_v19  ;;  %v6621_v45 = vsel %vm6575_vm3, %v11753_v30, 0.0 }
 0x303   :  { %v6619_v13 = vsel %vm6575_vm3, %v11758_v18, 0.0  ;;  %v9245_v42 = vpop.f32.mrb[24].mxu0 }
 0x304   :  { %v6620_v53 = vadd.f32 %v6619_v13, %v6618_v15  ;;  %v11763_v0 = vadd.f32 %v9245_v42, %v11639_v46  ;;  %v6312_v20 = vpop.f32.mrb[25].mxu0 }
 0x305   :  { %v11768_v21 = vadd.f32 %v6312_v20, %v11641_v63 }
 0x306   :  { %v6622_v24 = vadd.f32 %v6621_v45, %v6620_v53  ;;  %v6625_v46 = vsel %vm6575_vm3, %v11763_v0, 0.0 }
 0x307   :  { %v6623_v5 = vsel %vm6575_vm3, %v11768_v21, 0.0  ;;  %v9248_v27 = vpop.f32.mrb[26].mxu0 }
 0x308   :  { %v6624_v54 = vadd.f32 %v6623_v5, %v6622_v24  ;;  %v11773_v16 = vadd.f32 %v9248_v27, %v11643_v47  ;;  %v6322_v29 = vpop.f32.mrb[27].mxu0 }
 0x309   :  { %v11778_v8 = vadd.f32 %v6322_v29, %v11645_v17 }
 0x30a   :  { %13409 = vst [vmem:[#allocation7_spill] sm:$0xff] %v11773_v16  ;;  %v6626_v33 = vadd.f32 %v6625_v46, %v6624_v54  ;;  %v6629_v47 = vsel %vm6575_vm3, %v11773_v16, 0.0 }
 0x30b   :  { %13410 = vst [vmem:[#allocation8_spill] sm:$0xff] %v11778_v8  ;;  %v6627_v63 = vsel %vm6575_vm3, %v11778_v8, 0.0  ;;  %v9251_v58 = vpop.f32.mrb[28].mxu0 }
 0x30c   :  { %v6628_v36 = vadd.f32 %v6627_v63, %v6626_v33  ;;  %v11783_v38 = vadd.f32 %v9251_v58, %v11647_v26  ;;  %v6332_v37 = vpop.f32.mrb[29].mxu0 }
 0x30d   :  { %v11788_v59 = vadd.f32 %v6332_v37, %v11649_v40 }
 0x30e   :  { %13411 = vst [vmem:[#allocation9_spill] sm:$0xff] %v11783_v38  ;;  %v6630_v31 = vadd.f32 %v6629_v47, %v6628_v36  ;;  %v6633_v22 = vsel %vm6575_vm3, %v11783_v38, 0.0 }
 0x30f   :  { %13412 = vst [vmem:[#allocation10_spill] sm:$0xff] %v11788_v59  ;;  %v6631_v17 = vsel %vm6575_vm3, %v11788_v59, 0.0  ;;  %v9254_v61 = vpop.f32.mrb[30].mxu0  ;;  %v8865_v28 = vpop.f32.mrb[32].mxu1 }
 0x310   :  { %v6632_v2 = vadd.f32 %v6631_v17, %v6630_v31  ;;  %v11793_v39 = vadd.f32 %v9254_v61, %v11651_v44  ;;  %v6342_v9 = vpop.f32.mrb[31].mxu0  ;;  %v3519_v26 = vpop.f32.mrb[33].mxu1 }
 0x311   :  { %v11798_v14 = vadd.f32 %v6342_v9, %v11653_v51 }
 0x312   :  { %13413 = vst [vmem:[#allocation11_spill] sm:$0xff] %v11793_v39  ;;  %v6634_v40 = vadd.f32 %v6633_v22, %v6632_v2  ;;  %v6637_v53 = vsel %vm6575_vm3, %v11793_v39, 0.0 }
 0x313   :  { %13414 = vst [vmem:[#allocation12_spill] sm:$0xff] %v11798_v14  ;;  %v6635_v19 = vsel %vm6575_vm3, %v11798_v14, 0.0  ;;  %v9257_v11 = vpop.f32.mrb[32].mxu0  ;;  %v8868_v43 = vpop.f32.mrb[34].mxu1 }
 0x314   :  { %v6636_v15 = vadd.f32 %v6635_v19, %v6634_v40  ;;  %v11802_v13 = vadd.f32 %v9257_v11, %v8865_v28  ;;  %v6352_v42 = vpop.f32.mrb[33].mxu0  ;;  %v3529_v44 = vpop.f32.mrb[35].mxu1 }
 0x315   :  { %v11806_v20 = vadd.f32 %v6352_v42, %v3519_v26 }
 0x316   :  { %13415 = vst [vmem:[#allocation13_spill] sm:$0xff] %v11802_v13  ;;  %v6638_v45 = vadd.f32 %v6637_v53, %v6636_v15  ;;  %v6641_v33 = vsel %vm6575_vm3, %v11802_v13, 0.0 }
 0x317   :  { %13416 = vst [vmem:[#allocation14_spill] sm:$0xff] %v11806_v20  ;;  %v6639_v51 = vsel %vm6575_vm3, %v11806_v20, 0.0  ;;  %v9260_v24 = vpop.f32.mrb[34].mxu0  ;;  %v8871_v5 = vpop.f32.mrb[36].mxu1 }
 0x318   :  { %v6640_v27 = vadd.f32 %v6639_v51, %v6638_v45  ;;  %v11810_v54 = vadd.f32 %v9260_v24, %v8868_v43  ;;  %v6362_v29 = vpop.f32.mrb[35].mxu0  ;;  %v3539_v46 = vpop.f32.mrb[37].mxu1 }
 0x319   :  { %v11814_v63 = vadd.f32 %v6362_v29, %v3529_v44 }
 0x31a   :  { %13417 = vst [vmem:[#allocation15_spill] sm:$0xff] %v11810_v54  ;;  %v6642_v58 = vadd.f32 %v6641_v33, %v6640_v27  ;;  %v6645_v2 = vsel %vm6575_vm3, %v11810_v54, 0.0 }
 0x31b   :  { %13418 = vst [vmem:[#allocation16_spill] sm:$0xff] %v11814_v63  ;;  %v6643_v36 = vsel %vm6575_vm3, %v11814_v63, 0.0  ;;  %v9263_v37 = vpop.f32.mrb[36].mxu0  ;;  %v8874_v47 = vpop.f32.mrb[38].mxu1 }
 0x31c   :  { %v6644_v31 = vadd.f32 %v6643_v36, %v6642_v58  ;;  %v11818_v17 = vadd.f32 %v9263_v37, %v8871_v5  ;;  %v6372_v61 = vpop.f32.mrb[37].mxu0  ;;  %v3549_v28 = vpop.f32.mrb[39].mxu1 }
 0x31d   :  { %v11822_v9 = vadd.f32 %v6372_v61, %v3539_v46 }
 0x31e   :  { %13419 = vst [vmem:[#allocation17_spill] sm:$0xff] %v11818_v17  ;;  %v6646_v26 = vadd.f32 %v6645_v2, %v6644_v31  ;;  %v6649_v44 = vsel %vm6575_vm3, %v11818_v17, 0.0 }
 0x31f   :  { %13420 = vst [vmem:[#allocation18_spill] sm:$0xff] %v11822_v9  ;;  %v6647_v22 = vsel %vm6575_vm3, %v11822_v9, 0.0  ;;  %v9266_v40 = vpop.f32.mrb[38].mxu0  ;;  %v8877_v19 = vpop.f32.mrb[40].mxu1 }
 0x320   :  { %v6648_v11 = vadd.f32 %v6647_v22, %v6646_v26  ;;  %v11826_v43 = vadd.f32 %v9266_v40, %v8874_v47  ;;  %v6382_v15 = vpop.f32.mrb[39].mxu0  ;;  %v3559_v42 = vpop.f32.mrb[41].mxu1 }
 0x321   :  { %v11830_v53 = vadd.f32 %v6382_v15, %v3549_v28 }
 0x322   :  { %13421 = vst [vmem:[#allocation19_spill] sm:$0xff] %v11826_v43  ;;  %v6650_v45 = vadd.f32 %v6649_v44, %v6648_v11  ;;  %v6653_v58 = vsel %vm6575_vm3, %v11826_v43, 0.0 }
 0x323   :  { %13422 = vst [vmem:[#allocation20_spill] sm:$0xff] %v11830_v53  ;;  %v6651_v51 = vsel %vm6575_vm3, %v11830_v53, 0.0  ;;  %v9269_v24 = vpop.f32.mrb[40].mxu0  ;;  %v8880_v5 = vpop.f32.mrb[42].mxu1 }
 0x324   :  { %v6652_v27 = vadd.f32 %v6651_v51, %v6650_v45  ;;  %v11834_v29 = vadd.f32 %v9269_v24, %v8877_v19  ;;  %v6392_v46 = vpop.f32.mrb[41].mxu0  ;;  %v3569_v33 = vpop.f32.mrb[43].mxu1 }
 0x325   :  { %v11838_v36 = vadd.f32 %v6392_v46, %v3559_v42 }
 0x326   :  { %13423 = vst [vmem:[#allocation21_spill] sm:$0xff] %v11834_v29  ;;  %v6654_v37 = vadd.f32 %v6653_v58, %v6652_v27  ;;  %v6657_v40 = vsel %vm6575_vm3, %v11834_v29, 0.0 }
 0x327   :  { %13424 = vst [vmem:[#allocation22_spill] sm:$0xff] %v11838_v36  ;;  %v6655_v47 = vsel %vm6575_vm3, %v11838_v36, 0.0  ;;  %v9272_v31 = vpop.f32.mrb[42].mxu0  ;;  %v8883_v61 = vpop.f32.mrb[44].mxu1 }
 0x328   :  { %v6656_v28 = vadd.f32 %v6655_v47, %v6654_v37  ;;  %v11842_v2 = vadd.f32 %v9272_v31, %v8880_v5  ;;  %v6402_v26 = vpop.f32.mrb[43].mxu0  ;;  %v3579_v22 = vpop.f32.mrb[45].mxu1 }
 0x329   :  { %v11846_v19 = vadd.f32 %v6402_v26, %v3569_v33 }
 0x32a   :  { %13425 = vst [vmem:[#allocation23_spill] sm:$0xff] %v11842_v2  ;;  %v6658_v11 = vadd.f32 %v6657_v40, %v6656_v28  ;;  %v6661_v5 = vsel %vm6575_vm3, %v11842_v2, 0.0 }
 0x32b   :  { %13426 = vst [vmem:[#allocation24_spill] sm:$0xff] %v11846_v19  ;;  %v6659_v15 = vsel %vm6575_vm3, %v11846_v19, 0.0  ;;  %v9275_v42 = vpop.f32.mrb[44].mxu0  ;;  %v8886_v44 = vpop.f32.mrb[46].mxu1 }
 0x32c   :  { %v6660_v45 = vadd.f32 %v6659_v15, %v6658_v11  ;;  %v11850_v51 = vadd.f32 %v9275_v42, %v8883_v61  ;;  %v6412_v24 = vpop.f32.mrb[45].mxu0  ;;  %v3589_v27 = vpop.f32.mrb[47].mxu1 }
 0x32d   :  { %v11854_v46 = vadd.f32 %v6412_v24, %v3579_v22 }
 0x32e   :  { %13427 = vst [vmem:[#allocation25_spill] sm:$0xff] %v11850_v51  ;;  %v6662_v58 = vadd.f32 %v6661_v5, %v6660_v45  ;;  %v6665_v61 = vsel %vm6575_vm3, %v11850_v51, 0.0 }
 0x32f   :  { %13428 = vst [vmem:[#allocation26_spill] sm:$0xff] %v11854_v46  ;;  %v6663_v33 = vsel %vm6575_vm3, %v11854_v46, 0.0  ;;  %v9278_v37 = vpop.f32.mrb[46].mxu0  ;;  %v8889_v47 = vpop.f32.mrb[48].mxu1 }
 0x330   :  { %v6664_v31 = vadd.f32 %v6663_v33, %v6662_v58  ;;  %v11858_v28 = vadd.f32 %v9278_v37, %v8886_v44  ;;  %v6422_v26 = vpop.f32.mrb[47].mxu0  ;;  %v3599_v40 = vpop.f32.mrb[49].mxu1 }
 0x331   :  { %v11862_v11 = vadd.f32 %v6422_v26, %v3589_v27 }
 0x332   :  { %v6666_v15 = vadd.f32 %v6665_v61, %v6664_v31  ;;  %v6669_v44 = vsel %vm6575_vm3, %v11858_v28, 0.0 }
 0x333   :  { %v6667_v22 = vsel %vm6575_vm3, %v11862_v11, 0.0  ;;  %v9281_v42 = vpop.f32.mrb[48].mxu0  ;;  %v8892_v45 = vpop.f32.mrb[50].mxu1 }
 0x334   :  { %v6668_v24 = vadd.f32 %v6667_v22, %v6666_v15  ;;  %v11866_v5 = vadd.f32 %v9281_v42, %v8889_v47  ;;  %v6432_v46 = vpop.f32.mrb[49].mxu0  ;;  %v3609_v58 = vpop.f32.mrb[51].mxu1 }
 0x335   :  { %v11870_v33 = vadd.f32 %v6432_v46, %v3599_v40 }
 0x336   :  { %v6670_v37 = vadd.f32 %v6669_v44, %v6668_v24  ;;  %v6673_v47 = vsel %vm6575_vm3, %v11866_v5, 0.0 }
 0x337   :  { %v6671_v27 = vsel %vm6575_vm3, %v11870_v33, 0.0  ;;  %v9284_v31 = vpop.f32.mrb[50].mxu0  ;;  %v8895_v26 = vpop.f32.mrb[52].mxu1 }
 0x338   :  { %v6672_v61 = vadd.f32 %v6671_v27, %v6670_v37  ;;  %v11874_v51 = vadd.f32 %v9284_v31, %v8892_v45  ;;  %v6442_v2 = vpop.f32.mrb[51].mxu0  ;;  %v3619_v15 = vpop.f32.mrb[53].mxu1 }
 0x339   :  { %v11878_v22 = vadd.f32 %v6442_v2, %v3609_v58 }
 0x33a   :  { %v6674_v42 = vadd.f32 %v6673_v47, %v6672_v61  ;;  %v6677_v45 = vsel %vm6575_vm3, %v11874_v51, 0.0 }
 0x33b   :  { %v6675_v46 = vsel %vm6575_vm3, %v11878_v22, 0.0  ;;  %v9287_v40 = vpop.f32.mrb[52].mxu0  ;;  %v8898_v24 = vpop.f32.mrb[54].mxu1 }
 0x33c   :  { %v6676_v44 = vadd.f32 %v6675_v46, %v6674_v42  ;;  %v11882_v19 = vadd.f32 %v9287_v40, %v8895_v26  ;;  %v6452_v29 = vpop.f32.mrb[53].mxu0  ;;  %v3629_v37 = vpop.f32.mrb[55].mxu1 }
 0x33d   :  { %v11886_v27 = vadd.f32 %v6452_v29, %v3619_v15 }
 0x33e   :  { %v6678_v31 = vadd.f32 %v6677_v45, %v6676_v44  ;;  %v6681_v26 = vsel %vm6575_vm3, %v11882_v19, 0.0 }
 0x33f   :  { %v6679_v2 = vsel %vm6575_vm3, %v11886_v27, 0.0  ;;  %v9290_v58 = vpop.f32.mrb[54].mxu0  ;;  %v8901_v61 = vpop.f32.mrb[56].mxu1 }
 0x340   :  { %v6680_v47 = vadd.f32 %v6679_v2, %v6678_v31  ;;  %v11890_v36 = vadd.f32 %v9290_v58, %v8898_v24  ;;  %v6462_v43 = vpop.f32.mrb[55].mxu0  ;;  %v3639_v42 = vpop.f32.mrb[57].mxu1 }
 0x341   :  { %v9360_v46 = vadd.f32 %v6462_v43, %v3629_v37 }
 0x342   :  { %v6682_v40 = vadd.f32 %v6681_v26, %v6680_v47  ;;  %v6685_v31 = vsel %vm6575_vm3, %v11890_v36, 0.0 }
 0x343   :  { %v6683_v53 = vsel %vm6575_vm3, %v9360_v46, 0.0  ;;  %v9293_v29 = vpop.f32.mrb[56].mxu0  ;;  %v8904_v15 = vpop.f32.mrb[58].mxu1 }
 0x344   :  { %v6684_v44 = vadd.f32 %v6683_v53, %v6682_v40  ;;  %v9361_v45 = vadd.f32 %v9293_v29, %v8901_v61  ;;  %v6472_v17 = vpop.f32.mrb[57].mxu0  ;;  %v3649_v9 = vpop.f32.mrb[59].mxu1 }
 0x345   :  { %v9362_v24 = vadd.f32 %v6472_v17, %v3639_v42 }
 0x346   :  { %v6686_v2 = vadd.f32 %v6685_v31, %v6684_v44  ;;  %v6689_v26 = vsel %vm6575_vm3, %v9361_v45, 0.0 }
 0x347   :  { %v6687_v58 = vsel %vm6575_vm3, %v9362_v24, 0.0  ;;  %v9296_v54 = vpop.f32.mrb[58].mxu0  ;;  %v8907_v63 = vpop.f32.mrb[60].mxu1 }
 0x348   :  { %v6688_v13 = vadd.f32 %v6687_v58, %v6686_v2  ;;  %v9363_v43 = vadd.f32 %v9296_v54, %v8904_v15  ;;  %v6482_v37 = vpop.f32.mrb[59].mxu0  ;;  %v3659_v47 = vpop.f32.mrb[61].mxu1 }
 0x349   :  { %v9364_v20 = vadd.f32 %v6482_v37, %v3649_v9 }
 0x34a   :  { %v6690_v53 = vadd.f32 %v6689_v26, %v6688_v13  ;;  %v6693_v44 = vsel %vm6575_vm3, %v9363_v43, 0.0 }
 0x34b   :  { %v6691_v61 = vsel %vm6575_vm3, %v9364_v20, 0.0  ;;  %v9299_v40 = vpop.f32.mrb[60].mxu0  ;;  %v8910_v29 = vpop.f32.mrb[62].mxu1 }
 0x34c   :  { %v6692_v39 = vadd.f32 %v6691_v61, %v6690_v53  ;;  %v9365_v14 = vadd.f32 %v9299_v40, %v8907_v63  ;;  %v6492_v17 = vpop.f32.mrb[61].mxu0  ;;  %v3669_v42 = vpop.f32.mrb[63].mxu1 }
 0x34d   :  { %v9366_v31 = vadd.f32 %v6492_v17, %v3659_v47 }
 0x34e   :  { %v6694_v38 = vadd.f32 %v6693_v44, %v6692_v39  ;;  %v6697_v13 = vsel %vm6575_vm3, %v9365_v14, 0.0 }
 0x34f   :  { %v6695_v54 = vsel %vm6575_vm3, %v9366_v31, 0.0  ;;  %v9302_v15 = vpop.f32.mrb[62].mxu0 }
 0x350   :  { %v6696_v2 = vadd.f32 %v6695_v54, %v6694_v38  ;;  %v9367_v58 = vadd.f32 %v9302_v15, %v8910_v29  ;;  %v6502_v59 = vpop.f32.mrb[63].mxu0 }
 0x351   :  { %v9368_v9 = vadd.f32 %v6502_v59, %v3669_v42 }
 0x352   :  { %v6698_v37 = vadd.f32 %v6697_v13, %v6696_v2  ;;  %v6701_v63 = vsel %vm6575_vm3, %v9367_v58, 0.0 }
 0x353   :  { %v6699_v26 = vsel %vm6575_vm3, %v9368_v9, 0.0 }
 0x354   :  { %v6700_v53 = vadd.f32 %v6699_v26, %v6698_v37 }
 0x356   :  { %v6702_v61 = vadd.f32 %v6701_v63, %v6700_v53 }
 0x358   :  { %v6703_v40 = vrot.slane %v6702_v61, 4 }
 0x35a   :  { %v6704_v16 = vadd.f32 %v6703_v40, %v6702_v61 }
 0x35c   :  { %v6705_v47 = vrot.slane %v6704_v16, 2 }
 0x35e   :  { %v6706_v39 = vadd.f32 %v6705_v47, %v6704_v16 }
 0x360   :  { %v6707_v17 = vrot.slane %v6706_v39, 1 }
 0x362   :  { %v6708_v44 = vadd.f32 %v6707_v17, %v6706_v39 }
 0x364   :  { %v11905_v8 = vmul.f32 0.001953125, %v6708_v44 }
 0x366   :  { %v11909_v38 = vsub.f32 %v11862_v11, %v11905_v8  ;;  %v11913_v59 = vsub.f32 %v11858_v28, %v11905_v8  ;;  %v11917_v29 = vsub.f32 %v11870_v33, %v11905_v8  ;;  %v11921_v42 = vsub.f32 %v11866_v5, %v11905_v8 }
 0x367   :  { %v11925_v16 = vsub.f32 %v11878_v22, %v11905_v8  ;;  %v11929_v11 = vsub.f32 %v11874_v51, %v11905_v8  ;;  %v11933_v28 = vsub.f32 %v11886_v27, %v11905_v8  ;;  %v11937_v33 = vsub.f32 %v11882_v19, %v11905_v8 }
 0x368   :  { %v11940_v54 = vsub.f32 %v9360_v46, %v11905_v8  ;;  %v11944_v5 = vsub.f32 %v11890_v36, %v11905_v8  ;;  %v11947_v22 = vsub.f32 %v9362_v24, %v11905_v8  ;;  %v11950_v51 = vsub.f32 %v9361_v45, %v11905_v8 }
 0x369   :  { %v11953_v27 = vsub.f32 %v9364_v20, %v11905_v8  ;;  %v11956_v15 = vsub.f32 %v9363_v43, %v11905_v8  ;;  %v11959_v19 = vsub.f32 %v9366_v31, %v11905_v8  ;;  %v11962_v46 = vsub.f32 %v9365_v14, %v11905_v8 }
 0x36a   :  { %v11965_v36 = vsub.f32 %v9368_v9, %v11905_v8  ;;  %v11968_v24 = vsub.f32 %v9367_v58, %v11905_v8  ;;  %v11972_v45 = vsub.f32 %v11657_v10, %v11905_v8  ;;  %v11976_v20 = vsub.f32 %v11655_v6, %v11905_v8 }
 0x36b   :  { %13429 = vst [vmem:[#allocation27_spill] sm:$0xff] %v11956_v15  ;;  %13430 = vst [vmem:[#allocation28_spill] sm:$0xff] %v11959_v19  ;;  %v11980_v43 = vsub.f32 %v11665_v34, %v11905_v8  ;;  %v11984_v14 = vsub.f32 %v11663_v48, %v11905_v8  ;;  %v11992_v10 = vsub.f32 %v11673_v4, %v11905_v8 }
 0x36c   :  { %13431 = vst [vmem:[#allocation29_spill] sm:$0xff] %v11962_v46  ;;  %13432 = vst [vmem:[#allocation30_spill] sm:$0xff] %v11965_v36  ;;  %v6775_v31 = vmul.f32 %v11972_v45, %v11972_v45  ;;  %v6776_v2 = vmul.f32 %v11976_v20, %v11976_v20  ;;  %v11998_v34 = vsub.f32 %v11669_v56, %v11905_v8 }
 0x36d   :  { %v6777_v6 = vmul.f32 %v11980_v43, %v11980_v43  ;;  %v6778_v48 = vmul.f32 %v11984_v14, %v11984_v14  ;;  %v12006_v37 = vsub.f32 %v11681_v62, %v11905_v8  ;;  %v6779_v4 = vmul.f32 %v11992_v10, %v11992_v10 }
 0x36e   :  { %v6839_v58 = vsel %vm6575_vm3, %v6775_v31, 0.0  ;;  %v6840_v13 = vsel %vm6575_vm3, %v6776_v2, 0.0  ;;  %v12013_v56 = vsub.f32 %v11677_v57, %v11905_v8  ;;  %v6780_v63 = vmul.f32 %v11998_v34, %v11998_v34 }
 0x36f   :  { %v6841_v9 = vadd.f32 %v6840_v13, %v6839_v58  ;;  %v6842_v26 = vsel %vm6575_vm3, %v6777_v6, 0.0  ;;  %v6844_v61 = vsel %vm6575_vm3, %v6778_v48, 0.0  ;;  %v12020_v62 = vsub.f32 %v11689_v49, %v11905_v8 }
 0x370   :  { %v6781_v47 = vmul.f32 %v12006_v37, %v12006_v37  ;;  %v6846_v39 = vsel %vm6575_vm3, %v6779_v4, 0.0  ;;  %v12027_v57 = vsub.f32 %v11685_v52, %v11905_v8  ;;  %v6782_v44 = vmul.f32 %v12013_v56, %v12013_v56 }
 0x371   :  { %v6843_v53 = vadd.f32 %v6842_v26, %v6841_v9  ;;  %v6848_v31 = vsel %vm6575_vm3, %v6780_v63, 0.0  ;;  %v12034_v49 = vsub.f32 %v11698_v7, %v11905_v8  ;;  %v6783_v6 = vmul.f32 %v12020_v62, %v12020_v62 }
 0x372   :  { %v6850_v48 = vsel %vm6575_vm3, %v6781_v47, 0.0  ;;  %v12041_v52 = vsub.f32 %v11693_v3, %v11905_v8  ;;  %v6784_v13 = vmul.f32 %v12027_v57, %v12027_v57  ;;  %v6852_v9 = vsel %vm6575_vm3, %v6782_v44, 0.0 }
 0x373   :  { %v6845_v40 = vadd.f32 %v6844_v61, %v6843_v53  ;;  %v12048_v7 = vsub.f32 %v11708_v41, %v11905_v8  ;;  %v6785_v26 = vmul.f32 %v12034_v49, %v12034_v49  ;;  %v6854_v53 = vsel %vm6575_vm3, %v6783_v6, 0.0 }
 0x374   :  { %v12055_v3 = vsub.f32 %v11703_v23, %v11905_v8  ;;  %v6786_v61 = vmul.f32 %v12041_v52, %v12041_v52  ;;  %v12062_v41 = vsub.f32 %v11718_v12, %v11905_v8  ;;  %v12069_v23 = vsub.f32 %v11713_v60, %v11905_v8 }
 0x375   :  { %v6847_v17 = vadd.f32 %v6846_v39, %v6845_v40  ;;  %v6856_v40 = vsel %vm6575_vm3, %v6784_v13, 0.0  ;;  %v6787_v39 = vmul.f32 %v12048_v7, %v12048_v7  ;;  %v12076_v12 = vsub.f32 %v11728_v55, %v11905_v8 }
 0x376   :  { %v12083_v60 = vsub.f32 %v11723_v35, %v11905_v8  ;;  %v12090_v55 = vsub.f32 %v11738_v50, %v11905_v8  ;;  %v12097_v35 = vsub.f32 %v11733_v1, %v11905_v8  ;;  %v12104_v50 = vsub.f32 %v11748_v25, %v11905_v8 }
 0x377   :  { %v6849_v2 = vadd.f32 %v6848_v31, %v6847_v17  ;;  %v6858_v17 = vsel %vm6575_vm3, %v6785_v26, 0.0  ;;  %v6788_v31 = vmul.f32 %v12055_v3, %v12055_v3  ;;  %v12111_v1 = vsub.f32 %v11743_v32, %v11905_v8 }
 0x378   :  { %v12118_v25 = vsub.f32 %v11758_v18, %v11905_v8  ;;  %v12125_v32 = vsub.f32 %v11753_v30, %v11905_v8  ;;  %v12132_v18 = vsub.f32 %v11768_v21, %v11905_v8  ;;  %v12139_v30 = vsub.f32 %v11763_v0, %v11905_v8 }
 0x379   :  { %v6851_v58 = vadd.f32 %v6850_v48, %v6849_v2  ;;  %v6860_v2 = vsel %vm6575_vm3, %v6786_v61, 0.0  ;;  %v6789_v48 = vmul.f32 %v12062_v41, %v12062_v41 }
 0x37b   :  { %v6853_v4 = vadd.f32 %v6852_v9, %v6851_v58  ;;  %v6862_v58 = vsel %vm6575_vm3, %v6787_v39, 0.0  ;;  %v6790_v9 = vmul.f32 %v12069_v23, %v12069_v23 }
 0x37d   :  { %v6855_v63 = vadd.f32 %v6854_v53, %v6853_v4  ;;  %v6864_v4 = vsel %vm6575_vm3, %v6788_v31, 0.0  ;;  %v6791_v53 = vmul.f32 %v12076_v12, %v12076_v12 }
 0x37f   :  { %v6857_v47 = vadd.f32 %v6856_v40, %v6855_v63  ;;  %v6866_v63 = vsel %vm6575_vm3, %v6789_v48, 0.0  ;;  %v6792_v40 = vmul.f32 %v12083_v60, %v12083_v60 }
 0x381   :  { %v6859_v44 = vadd.f32 %v6858_v17, %v6857_v47  ;;  %v6868_v47 = vsel %vm6575_vm3, %v6790_v9, 0.0  ;;  %v6793_v17 = vmul.f32 %v12090_v55, %v12090_v55 }
 0x383   :  { %v6861_v6 = vadd.f32 %v6860_v2, %v6859_v44  ;;  %v6870_v44 = vsel %vm6575_vm3, %v6791_v53, 0.0  ;;  %v6794_v2 = vmul.f32 %v12097_v35, %v12097_v35 }
 0x385   :  { %v6863_v13 = vadd.f32 %v6862_v58, %v6861_v6  ;;  %v6872_v6 = vsel %vm6575_vm3, %v6792_v40, 0.0  ;;  %v6795_v58 = vmul.f32 %v12104_v50, %v12104_v50 }
 0x387   :  { %v6865_v26 = vadd.f32 %v6864_v4, %v6863_v13  ;;  %v6874_v13 = vsel %vm6575_vm3, %v6793_v17, 0.0  ;;  %v6796_v4 = vmul.f32 %v12111_v1, %v12111_v1 }
 0x389   :  { %v6867_v61 = vadd.f32 %v6866_v63, %v6865_v26  ;;  %v6876_v26 = vsel %vm6575_vm3, %v6794_v2, 0.0  ;;  %v6797_v63 = vmul.f32 %v12118_v25, %v12118_v25 }
 0x38b   :  { %v6869_v39 = vadd.f32 %v6868_v47, %v6867_v61  ;;  %v6878_v61 = vsel %vm6575_vm3, %v6795_v58, 0.0  ;;  %v6798_v47 = vmul.f32 %v12125_v32, %v12125_v32  ;;  %v6882_v2 = vsel %vm6575_vm3, %v6797_v63, 0.0 }
 0x38c   :  { %v6800_v58 = vmul.f32 %v12139_v30, %v12139_v30 }
 0x38d   :  { %v6871_v31 = vadd.f32 %v6870_v44, %v6869_v39  ;;  %v6880_v39 = vsel %vm6575_vm3, %v6796_v4, 0.0  ;;  %v13433_v44 = vld [vmem:[#allocation8_spill] sm:$0xff]  ;;  %v13435_v4 = vld [vmem:[#allocation10_spill] sm:$0xff] }
 0x38e   :  { %v12146_v21 = vsub.f32 %v13433_v44, %v11905_v8 }
 0x38f   :  { %v6873_v48 = vadd.f32 %v6872_v6, %v6871_v31  ;;  %v6799_v31 = vmul.f32 %v12132_v18, %v12132_v18 }
 0x391   :  { %v6875_v9 = vadd.f32 %v6874_v13, %v6873_v48  ;;  %v13434_v48 = vld [vmem:[#allocation7_spill] sm:$0xff]  ;;  %v6884_v13 = vsel %vm6575_vm3, %v6798_v47, 0.0  ;;  %v6886_v63 = vsel %vm6575_vm3, %v6799_v31, 0.0  ;;  %v6888_v47 = vsel %vm6575_vm3, %v6800_v58, 0.0 }
 0x392   :  { %v12153_v0 = vsub.f32 %v13434_v48, %v11905_v8 }
 0x393   :  { %v6877_v53 = vadd.f32 %v6876_v26, %v6875_v9  ;;  %v12160_v26 = vsub.f32 %v13435_v4, %v11905_v8 }
 0x395   :  { %v6879_v40 = vadd.f32 %v6878_v61, %v6877_v53  ;;  %13436 = vst [vmem:[#allocation31_spill] sm:$0xff] %v12160_v26  ;;  %v6801_v53 = vmul.f32 %v12146_v21, %v12146_v21  ;;  %v6803_v48 = vmul.f32 %v12160_v26, %v12160_v26 }
 0x397   :  { %v6881_v17 = vadd.f32 %v6880_v39, %v6879_v40  ;;  %v13437_v40 = vld [vmem:[#allocation9_spill] sm:$0xff]  ;;  %v6890_v31 = vsel %vm6575_vm3, %v6801_v53, 0.0  ;;  %v6894_v53 = vsel %vm6575_vm3, %v6803_v48, 0.0 }
 0x398   :  { %v12167_v39 = vsub.f32 %v13437_v40, %v11905_v8  ;;  %v13443_v40 = vld [vmem:[#allocation14_spill] sm:$0xff] }
 0x399   :  { %v6883_v6 = vadd.f32 %v6882_v2, %v6881_v17  ;;  %v6802_v17 = vmul.f32 %v12153_v0, %v12153_v0  ;;  %v13439_v2 = vld [vmem:[#allocation12_spill] sm:$0xff] }
 0x39a   :  { %13438 = vst [vmem:[#allocation32_spill] sm:$0xff] %v12167_v39 }
 0x39b   :  { %v6885_v9 = vadd.f32 %v6884_v13, %v6883_v6  ;;  %v12174_v6 = vsub.f32 %v13439_v2, %v11905_v8  ;;  %v6892_v58 = vsel %vm6575_vm3, %v6802_v17, 0.0 }
 0x39d   :  { %v6887_v61 = vadd.f32 %v6886_v63, %v6885_v9  ;;  %13440 = vst [vmem:[#allocation33_spill] sm:$0xff] %v12174_v6  ;;  %v13441_v9 = vld [vmem:[#allocation11_spill] sm:$0xff]  ;;  %v6804_v63 = vmul.f32 %v12167_v39, %v12167_v39  ;;  %v6805_v2 = vmul.f32 %v12174_v6, %v12174_v6 }
 0x39e   :  { %v12181_v4 = vsub.f32 %v13441_v9, %v11905_v8 }
 0x39f   :  { %v6889_v44 = vadd.f32 %v6888_v47, %v6887_v61  ;;  %v12188_v47 = vsub.f32 %v13443_v40, %v11905_v8  ;;  %v6896_v17 = vsel %vm6575_vm3, %v6804_v63, 0.0  ;;  %v6898_v48 = vsel %vm6575_vm3, %v6805_v2, 0.0 }
 0x3a0   :  { %13442 = vst [vmem:[#allocation34_spill] sm:$0xff] %v12181_v4  ;;  %v6806_v39 = vmul.f32 %v12181_v4, %v12181_v4 }
 0x3a1   :  { %v6891_v13 = vadd.f32 %v6890_v31, %v6889_v44  ;;  %13444 = vst [vmem:[#allocation35_spill] sm:$0xff] %v12188_v47  ;;  %v13445_v31 = vld [vmem:[#allocation13_spill] sm:$0xff]  ;;  %v6807_v6 = vmul.f32 %v12188_v47, %v12188_v47 }
 0x3a2   :  { %v12195_v9 = vsub.f32 %v13445_v31, %v11905_v8  ;;  %v6900_v63 = vsel %vm6575_vm3, %v6806_v39, 0.0 }
 0x3a3   :  { %v6893_v61 = vadd.f32 %v6892_v58, %v6891_v13  ;;  %v13447_v58 = vld [vmem:[#allocation16_spill] sm:$0xff]  ;;  %v6902_v2 = vsel %vm6575_vm3, %v6807_v6, 0.0 }
 0x3a4   :  { %13446 = vst [vmem:[#allocation3_spill] sm:$0xff] %v12195_v9  ;;  %v12202_v40 = vsub.f32 %v13447_v58, %v11905_v8  ;;  %v6808_v4 = vmul.f32 %v12195_v9, %v12195_v9 }
 0x3a5   :  { %v6895_v44 = vadd.f32 %v6894_v53, %v6893_v61  ;;  %v13449_v53 = vld [vmem:[#allocation15_spill] sm:$0xff] }
 0x3a6   :  { %13448 = vst [vmem:[#allocation4_spill] sm:$0xff] %v12202_v40  ;;  %v12209_v31 = vsub.f32 %v13449_v53, %v11905_v8  ;;  %v6809_v47 = vmul.f32 %v12202_v40, %v12202_v40  ;;  %v6904_v39 = vsel %vm6575_vm3, %v6808_v4, 0.0 }
 0x3a7   :  { %v6897_v13 = vadd.f32 %v6896_v17, %v6895_v44  ;;  %v13451_v17 = vld [vmem:[#allocation18_spill] sm:$0xff] }
 0x3a8   :  { %13450 = vst [vmem:[#allocation5_spill] sm:$0xff] %v12209_v31  ;;  %v12216_v58 = vsub.f32 %v13451_v17, %v11905_v8  ;;  %v6810_v9 = vmul.f32 %v12209_v31, %v12209_v31  ;;  %v6906_v6 = vsel %vm6575_vm3, %v6809_v47, 0.0 }
 0x3a9   :  { %v6899_v61 = vadd.f32 %v6898_v48, %v6897_v13  ;;  %v13453_v48 = vld [vmem:[#allocation17_spill] sm:$0xff] }
 0x3aa   :  { %13452 = vst [vmem:[#allocation6_spill] sm:$0xff] %v12216_v58  ;;  %v12223_v53 = vsub.f32 %v13453_v48, %v11905_v8  ;;  %v6811_v40 = vmul.f32 %v12216_v58, %v12216_v58  ;;  %v6908_v4 = vsel %vm6575_vm3, %v6810_v9, 0.0 }
 0x3ab   :  { %v6901_v44 = vadd.f32 %v6900_v63, %v6899_v61  ;;  %v13455_v63 = vld [vmem:[#allocation20_spill] sm:$0xff] }
 0x3ac   :  { %13454 = vst [vmem:[#allocation8_spill] sm:$0xff] %v12223_v53  ;;  %v12230_v17 = vsub.f32 %v13455_v63, %v11905_v8  ;;  %v6812_v31 = vmul.f32 %v12223_v53, %v12223_v53  ;;  %v6910_v47 = vsel %vm6575_vm3, %v6811_v40, 0.0 }
 0x3ad   :  { %v6903_v13 = vadd.f32 %v6902_v2, %v6901_v44  ;;  %v13457_v2 = vld [vmem:[#allocation19_spill] sm:$0xff] }
 0x3ae   :  { %13456 = vst [vmem:[#allocation7_spill] sm:$0xff] %v12230_v17  ;;  %v12237_v48 = vsub.f32 %v13457_v2, %v11905_v8  ;;  %v6813_v58 = vmul.f32 %v12230_v17, %v12230_v17  ;;  %v6912_v9 = vsel %vm6575_vm3, %v6812_v31, 0.0 }
 0x3af   :  { %v6905_v61 = vadd.f32 %v6904_v39, %v6903_v13  ;;  %v13459_v39 = vld [vmem:[#allocation22_spill] sm:$0xff] }
 0x3b0   :  { %13458 = vst [vmem:[#allocation10_spill] sm:$0xff] %v12237_v48  ;;  %v12244_v63 = vsub.f32 %v13459_v39, %v11905_v8  ;;  %v6814_v53 = vmul.f32 %v12237_v48, %v12237_v48  ;;  %v6914_v40 = vsel %vm6575_vm3, %v6813_v58, 0.0 }
 0x3b1   :  { %v6907_v44 = vadd.f32 %v6906_v6, %v6905_v61  ;;  %v13461_v6 = vld [vmem:[#allocation21_spill] sm:$0xff] }
 0x3b2   :  { %13460 = vst [vmem:[#allocation9_spill] sm:$0xff] %v12244_v63  ;;  %v12251_v2 = vsub.f32 %v13461_v6, %v11905_v8  ;;  %v6815_v17 = vmul.f32 %v12244_v63, %v12244_v63  ;;  %v6916_v31 = vsel %vm6575_vm3, %v6814_v53, 0.0 }
 0x3b3   :  { %v6909_v13 = vadd.f32 %v6908_v4, %v6907_v44  ;;  %v13463_v4 = vld [vmem:[#allocation24_spill] sm:$0xff] }
 0x3b4   :  { %13462 = vst [vmem:[#allocation12_spill] sm:$0xff] %v12251_v2  ;;  %v12258_v39 = vsub.f32 %v13463_v4, %v11905_v8  ;;  %v6816_v48 = vmul.f32 %v12251_v2, %v12251_v2  ;;  %v6918_v58 = vsel %vm6575_vm3, %v6815_v17, 0.0 }
 0x3b5   :  { %v6911_v61 = vadd.f32 %v6910_v47, %v6909_v13  ;;  %v13464_v47 = vld [vmem:[#allocation23_spill] sm:$0xff] }
 0x3b6   :  { %v12265_v6 = vsub.f32 %v13464_v47, %v11905_v8  ;;  %v6817_v63 = vmul.f32 %v12258_v39, %v12258_v39  ;;  %v6920_v53 = vsel %vm6575_vm3, %v6816_v48, 0.0  ;;  %v6822_v48 = vmul.f32 %v11913_v59, %v11913_v59 }
 0x3b7   :  { %v6913_v44 = vadd.f32 %v6912_v9, %v6911_v61  ;;  %v13466_v9 = vld [vmem:[#allocation26_spill] sm:$0xff] }
 0x3b8   :  { %13465 = vst [vmem:[#allocation11_spill] sm:$0xff] %v12265_v6  ;;  %v12272_v4 = vsub.f32 %v13466_v9, %v11905_v8  ;;  %v6818_v2 = vmul.f32 %v12265_v6, %v12265_v6  ;;  %v6922_v9 = vsel %vm6575_vm3, %v6817_v63, 0.0  ;;  %v6823_v63 = vmul.f32 %v11917_v29, %v11917_v29 }
 0x3b9   :  { %v6915_v13 = vadd.f32 %v6914_v40, %v6913_v44  ;;  %v13467_v40 = vld [vmem:[#allocation25_spill] sm:$0xff] }
 0x3ba   :  { %v12279_v47 = vsub.f32 %v13467_v40, %v11905_v8  ;;  %v6821_v8 = vmul.f32 %v11909_v38, %v11909_v38 }
 0x3bb   :  { %v6917_v61 = vadd.f32 %v6916_v31, %v6915_v13  ;;  %v6819_v31 = vmul.f32 %v12272_v4, %v12272_v4 }
 0x3bc   :  { %v6820_v17 = vmul.f32 %v12279_v47, %v12279_v47 }
 0x3bd   :  { %v6919_v44 = vadd.f32 %v6918_v58, %v6917_v61  ;;  %v6924_v61 = vsel %vm6575_vm3, %v6818_v2, 0.0  ;;  %v6926_v40 = vsel %vm6575_vm3, %v6819_v31, 0.0  ;;  %v6932_v2 = vsel %vm6575_vm3, %v6822_v48, 0.0 }
 0x3be   :  { %v6825_v31 = vmul.f32 %v11925_v16, %v11925_v16  ;;  %v6828_v48 = vmul.f32 %v11937_v33, %v11937_v33 }
 0x3bf   :  { %v6921_v13 = vadd.f32 %v6920_v53, %v6919_v44  ;;  %v6928_v44 = vsel %vm6575_vm3, %v6820_v17, 0.0 }
 0x3c1   :  { %v6923_v26 = vadd.f32 %v6922_v9, %v6921_v13  ;;  %v6930_v13 = vsel %vm6575_vm3, %v6821_v8, 0.0  ;;  %v6827_v8 = vmul.f32 %v11933_v28, %v11933_v28 }
 0x3c3   :  { %v6925_v58 = vadd.f32 %v6924_v61, %v6923_v26  ;;  %v6824_v26 = vmul.f32 %v11921_v42, %v11921_v42 }
 0x3c5   :  { %v6927_v6 = vadd.f32 %v6926_v40, %v6925_v58  ;;  %v6934_v58 = vsel %vm6575_vm3, %v6823_v63, 0.0  ;;  %v6936_v17 = vsel %vm6575_vm3, %v6824_v26, 0.0  ;;  %v6829_v63 = vmul.f32 %v11940_v54, %v11940_v54 }
 0x3c6   :  { %v6830_v26 = vmul.f32 %v11944_v5, %v11944_v5 }
 0x3c7   :  { %v6929_v53 = vadd.f32 %v6928_v44, %v6927_v6  ;;  %v6826_v6 = vmul.f32 %v11929_v11, %v11929_v11 }
 0x3c9   :  { %v6931_v9 = vadd.f32 %v6930_v13, %v6929_v53  ;;  %v6938_v53 = vsel %vm6575_vm3, %v6825_v31, 0.0  ;;  %v6831_v31 = vmul.f32 %v11947_v22, %v11947_v22 }
 0x3cb   :  { %v6933_v61 = vadd.f32 %v6932_v2, %v6931_v9  ;;  %v6940_v9 = vsel %vm6575_vm3, %v6826_v6, 0.0  ;;  %v6832_v6 = vmul.f32 %v11950_v51, %v11950_v51 }
 0x3cd   :  { %v6935_v40 = vadd.f32 %v6934_v58, %v6933_v61  ;;  %v6942_v61 = vsel %vm6575_vm3, %v6827_v8, 0.0  ;;  %v6833_v8 = vmul.f32 %v11953_v27, %v11953_v27 }
 0x3cf   :  { %v6937_v44 = vadd.f32 %v6936_v17, %v6935_v40  ;;  %v6944_v40 = vsel %vm6575_vm3, %v6828_v48, 0.0  ;;  %v6834_v48 = vmul.f32 %v11956_v15, %v11956_v15 }
 0x3d1   :  { %v6939_v13 = vadd.f32 %v6938_v53, %v6937_v44  ;;  %v6946_v44 = vsel %vm6575_vm3, %v6829_v63, 0.0  ;;  %v6835_v63 = vmul.f32 %v11959_v19, %v11959_v19 }
 0x3d3   :  { %v6941_v2 = vadd.f32 %v6940_v9, %v6939_v13  ;;  %v6948_v13 = vsel %vm6575_vm3, %v6830_v26, 0.0  ;;  %v6836_v26 = vmul.f32 %v11962_v46, %v11962_v46 }
 0x3d5   :  { %v6943_v58 = vadd.f32 %v6942_v61, %v6941_v2  ;;  %v6950_v2 = vsel %vm6575_vm3, %v6831_v31, 0.0  ;;  %v6837_v31 = vmul.f32 %v11965_v36, %v11965_v36 }
 0x3d7   :  { %v6945_v17 = vadd.f32 %v6944_v40, %v6943_v58  ;;  %v6952_v58 = vsel %vm6575_vm3, %v6832_v6, 0.0  ;;  %v6838_v6 = vmul.f32 %v11968_v24, %v11968_v24 }
 0x3d9   :  { %v6947_v53 = vadd.f32 %v6946_v44, %v6945_v17  ;;  %v6954_v17 = vsel %vm6575_vm3, %v6833_v8, 0.0  ;;  %v6962_v8 = vsel %vm6575_vm3, %v6837_v31, 0.0 }
 0x3db   :  { %v6949_v9 = vadd.f32 %v6948_v13, %v6947_v53  ;;  %v6956_v53 = vsel %vm6575_vm3, %v6834_v48, 0.0 }
 0x3dd   :  { %v6951_v61 = vadd.f32 %v6950_v2, %v6949_v9  ;;  %v6958_v9 = vsel %vm6575_vm3, %v6835_v63, 0.0 }
 0x3df   :  { %v6953_v40 = vadd.f32 %v6952_v58, %v6951_v61  ;;  %v6960_v61 = vsel %vm6575_vm3, %v6836_v26, 0.0 }
 0x3e1   :  { %v6955_v44 = vadd.f32 %v6954_v17, %v6953_v40  ;;  %v6964_v17 = vsel %vm6575_vm3, %v6838_v6, 0.0  ;;  %v13470_v6 = vld [vmem:[#allocation33_spill] sm:$0xff] }
 0x3e3   :  { %v6957_v13 = vadd.f32 %v6956_v53, %v6955_v44 }
 0x3e5   :  { %v6959_v2 = vadd.f32 %v6958_v9, %v6957_v13 }
 0x3e7   :  { %v6961_v58 = vadd.f32 %v6960_v61, %v6959_v2  ;;  %v13469_v2 = vld [vmem:[#allocation32_spill] sm:$0xff]  ;;  %v13471_v61 = vld [vmem:[#allocation34_spill] sm:$0xff] }
 0x3e9   :  { %v6963_v40 = vadd.f32 %v6962_v8, %v6961_v58  ;;  %v13472_v58 = vld [vmem:[#allocation35_spill] sm:$0xff] }
 0x3ea   :  { %v13473_v8 = vld [vmem:[#allocation3_spill] sm:$0xff] }
 0x3eb   :  { %v6965_v46 = vadd.f32 %v6964_v17, %v6963_v40  ;;  %v13474_v17 = vld [vmem:[#allocation4_spill] sm:$0xff] }
 0x3ed   :  { %v6966_v48 = vrot.slane %v6965_v46, 4 }
 0x3ef   :  { %v6967_v44 = vadd.f32 %v6966_v48, %v6965_v46 }
 0x3f1   :  { %v6968_v53 = vrot.slane %v6967_v44, 2 }
 0x3f3   :  { %v6969_v19 = vadd.f32 %v6968_v53, %v6967_v44  ;;  %v13475_v44 = vld [vmem:[#allocation5_spill] sm:$0xff] }
 0x3f5   :  { %v6970_v36 = vrot.slane %v6969_v19, 1 }
 0x3f7   :  { %v6971_v15 = vadd.f32 %v6970_v36, %v6969_v19 }
 0x3f9   :  { %v6972_v63 = vmul.f32 0.001953125, %v6971_v15 }
 0x3fb   :  { %v6973_v13 = vadd.f32 1e-05, %v6972_v63  ;;  %v13477_v63 = vld [vmem:[#allocation6_spill] sm:$0xff] }
 0x3fd   :  { %9818 = vrsqrt.f32 %v6973_v13 }
 0x407   :  { %v12346_v9 = vpop.eup %9818 }
 0x408   :  { %v12350_v26 = vmul.f32 %v12346_v9, %v11972_v45  ;;  %v12354_v31 = vmul.f32 %v12346_v9, %v11976_v20  ;;  %v12358_v46 = vmul.f32 %v12346_v9, %v11980_v43  ;;  %v12362_v19 = vmul.f32 %v12346_v9, %v11984_v14 }
 0x409   :  { %v12366_v15 = vmul.f32 %v12346_v9, %v11992_v10  ;;  %v12370_v36 = vmul.f32 %v12346_v9, %v11998_v34  ;;  %v12374_v45 = vmul.f32 %v12346_v9, %v12006_v37  ;;  %v12378_v20 = vmul.f32 %v12346_v9, %v12013_v56 }
 0x40a   :  { %v12382_v43 = vmul.f32 %v12346_v9, %v12020_v62  ;;  %v12386_v14 = vmul.f32 %v12346_v9, %v12027_v57  ;;  %v12390_v10 = vmul.f32 %v12346_v9, %v12034_v49  ;;  %v12394_v34 = vmul.f32 %v12346_v9, %v12041_v52 }
 0x40b   :  { %v12398_v37 = vmul.f32 %v12346_v9, %v12048_v7  ;;  %v12402_v56 = vmul.f32 %v12346_v9, %v12055_v3  ;;  %v12406_v62 = vmul.f32 %v12346_v9, %v12062_v41  ;;  %v12410_v57 = vmul.f32 %v12346_v9, %v12069_v23 }
 0x40c   :  { %v12414_v49 = vmul.f32 %v12346_v9, %v12076_v12  ;;  %v12418_v52 = vmul.f32 %v12346_v9, %v12083_v60  ;;  %v12422_v7 = vmul.f32 %v12346_v9, %v12090_v55  ;;  %v12426_v3 = vmul.f32 %v12346_v9, %v12097_v35 }
 0x40d   :  { %v12430_v41 = vmul.f32 %v12346_v9, %v12104_v50  ;;  %v12434_v23 = vmul.f32 %v12346_v9, %v12111_v1  ;;  %v12438_v12 = vmul.f32 %v12346_v9, %v12118_v25  ;;  %v12442_v60 = vmul.f32 %v12346_v9, %v12125_v32  ;;  %v13468_v25 = vld [vmem:[#allocation31_spill] sm:$0xff] }
 0x40e   :  { %v12446_v55 = vmul.f32 %v12346_v9, %v12132_v18  ;;  %v12450_v35 = vmul.f32 %v12346_v9, %v12139_v30  ;;  %v12454_v50 = vmul.f32 %v12346_v9, %v12146_v21  ;;  %v12458_v1 = vmul.f32 %v12346_v9, %v12153_v0 }
 0x40f   :  { %v12462_v32 = vmul.f32 %v12346_v9, %v13468_v25  ;;  %v12466_v18 = vmul.f32 %v12346_v9, %v13469_v2  ;;  %v12470_v30 = vmul.f32 %v12346_v9, %v13470_v6  ;;  %v12474_v21 = vmul.f32 %v12346_v9, %v13471_v61  ;;  %v13478_v25 = vld [vmem:[#allocation8_spill] sm:$0xff]  ;;  %v13480_v6 = vld [vmem:[#allocation7_spill] sm:$0xff] }
 0x410   :  { %v12478_v0 = vmul.f32 %v12346_v9, %v13472_v58  ;;  %v12482_v40 = vmul.f32 %v12346_v9, %v13473_v8  ;;  %v12486_v48 = vmul.f32 %v12346_v9, %v13474_v17  ;;  %v12490_v53 = vmul.f32 %v12346_v9, %v13475_v44  ;;  %v13481_v58 = vld [vmem:[#allocation10_spill] sm:$0xff]  ;;  %v13482_v17 = vld [vmem:[#allocation9_spill] sm:$0xff] }
 0x411   :  { %v12494_v13 = vmul.f32 %v12346_v9, %v13477_v63  ;;  %v12498_v2 = vmul.f32 %v12346_v9, %v13478_v25  ;;  %v12502_v61 = vmul.f32 %v12346_v9, %v13480_v6  ;;  %v12506_v8 = vmul.f32 %v12346_v9, %v13481_v58 }
 0x412   :  { %13476 = vst [vmem:[#allocation14_spill] sm:$0xff] %v12490_v53  ;;  %v12510_v44 = vmul.f32 %v12346_v9, %v13482_v17  ;;  %v13483_v53 = vld [vmem:[#allocation12_spill] sm:$0xff]  ;;  %v12518_v25 = vmul.f32 %v12346_v9, %v12258_v39  ;;  %v12526_v58 = vmul.f32 %v12346_v9, %v12272_v4  ;;  %v12530_v17 = vmul.f32 %v12346_v9, %v12279_v47 }
 0x413   :  { %13479 = vst [vmem:[#allocation13_spill] sm:$0xff] %v12498_v2  ;;  %v12514_v63 = vmul.f32 %v12346_v9, %v13483_v53  ;;  %v13484_v2 = vld [vmem:[#allocation11_spill] sm:$0xff]  ;;  %v12534_v53 = vmul.f32 %v12346_v9, %v11909_v38  ;;  %v12538_v39 = vmul.f32 %v12346_v9, %v11913_v59  ;;  %v12546_v4 = vmul.f32 %v12346_v9, %v11921_v42 }
 0x414   :  { %v12522_v6 = vmul.f32 %v12346_v9, %v13484_v2  ;;  %v12542_v2 = vmul.f32 %v12346_v9, %v11917_v29  ;;  %v12550_v47 = vmul.f32 %v12346_v9, %v11925_v16  ;;  %v12554_v38 = vmul.f32 %v12346_v9, %v11929_v11  ;;  %v12575_v11 = vld [vmem:[%s13256_s2] ss:$0 sm:$0xff] }
 0x415   :  { %v12558_v59 = vmul.f32 %v12346_v9, %v11933_v28  ;;  %v12562_v29 = vmul.f32 %v12346_v9, %v11937_v33  ;;  %v12566_v42 = vmul.f32 %v12346_v9, %v11940_v54  ;;  %v12570_v16 = vmul.f32 %v12346_v9, %v11944_v5 }
 0x416   :  { %v12579_v28 = vmul.f32 %v12346_v9, %v11947_v22  ;;  %v12583_v33 = vmul.f32 %v12346_v9, %v11950_v51  ;;  %v12587_v54 = vmul.f32 %v12346_v9, %v11953_v27  ;;  %v12607_v27 = vmul.f32 %v12346_v9, %v11968_v24 }
 0x417   :  { %13485 = vst [vmem:[#allocation16_spill] sm:$0xff] %v12558_v59  ;;  %13486 = vst [vmem:[#allocation15_spill] sm:$0xff] %v12562_v29  ;;  %v13492_v59 = vld [vmem:[#allocation29_spill] sm:$0xff]  ;;  %v12627_v24 = vmul.f32 %v12575_v11, %v12366_v15  ;;  %v12651_v15 = vmul.f32 %v12575_v11, %v12390_v10  ;;  %v12675_v10 = vmul.f32 %v12575_v11, %v12414_v49 }
 0x418   :  { %13487 = vst [vmem:[#allocation18_spill] sm:$0xff] %v12566_v42  ;;  %13488 = vst [vmem:[#allocation17_spill] sm:$0xff] %v12570_v16  ;;  %v13490_v42 = vld [vmem:[#allocation27_spill] sm:$0xff]  ;;  %v13491_v16 = vld [vmem:[#allocation28_spill] sm:$0xff]  ;;  %v12599_v22 = vmul.f32 %v12346_v9, %v13492_v59  ;;  %v12619_v59 = vmul.f32 %v12575_v11, %v12358_v46  ;;  %v12643_v46 = vmul.f32 %v12575_v11, %v12382_v43 }
 0x419   :  { %13489 = vst [vmem:[#allocation20_spill] sm:$0xff] %v12579_v28  ;;  %v12591_v5 = vmul.f32 %v12346_v9, %v13490_v42  ;;  %v12595_v29 = vmul.f32 %v12346_v9, %v13491_v16  ;;  %v13493_v28 = vld [vmem:[#allocation30_spill] sm:$0xff]  ;;  %v12611_v42 = vmul.f32 %v12575_v11, %v12350_v26  ;;  %v12615_v16 = vmul.f32 %v12575_v11, %v12354_v31 }
 0x41a   :  { %v12603_v51 = vmul.f32 %v12346_v9, %v13493_v28  ;;  %v12623_v28 = vmul.f32 %v12575_v11, %v12362_v19  ;;  %v12631_v9 = vmul.f32 %v12575_v11, %v12370_v36  ;;  %v12635_v26 = vmul.f32 %v12575_v11, %v12374_v45 }
 0x41b   :  { %v12639_v31 = vmul.f32 %v12575_v11, %v12378_v20  ;;  %v12647_v19 = vmul.f32 %v12575_v11, %v12386_v14  ;;  %v12655_v36 = vmul.f32 %v12575_v11, %v12394_v34  ;;  %v12659_v45 = vmul.f32 %v12575_v11, %v12398_v37 }
 0x41c   :  { %v12663_v20 = vmul.f32 %v12575_v11, %v12402_v56  ;;  %v12667_v43 = vmul.f32 %v12575_v11, %v12406_v62  ;;  %v12671_v14 = vmul.f32 %v12575_v11, %v12410_v57  ;;  %v12679_v34 = vmul.f32 %v12575_v11, %v12418_v52 }
 0x41d   :  { %v12683_v37 = vmul.f32 %v12575_v11, %v12422_v7  ;;  %v12687_v56 = vmul.f32 %v12575_v11, %v12426_v3  ;;  %v12691_v62 = vmul.f32 %v12575_v11, %v12430_v41  ;;  %v12695_v57 = vmul.f32 %v12575_v11, %v12434_v23 }
 0x41e   :  { %v12699_v49 = vmul.f32 %v12575_v11, %v12438_v12  ;;  %v12703_v52 = vmul.f32 %v12575_v11, %v12442_v60  ;;  %v12707_v7 = vmul.f32 %v12575_v11, %v12446_v55  ;;  %v12711_v3 = vmul.f32 %v12575_v11, %v12450_v35 }
 0x41f   :  { %v12715_v41 = vmul.f32 %v12575_v11, %v12454_v50  ;;  %v12719_v23 = vmul.f32 %v12575_v11, %v12458_v1  ;;  %v12723_v12 = vmul.f32 %v12575_v11, %v12462_v32  ;;  %v12727_v60 = vmul.f32 %v12575_v11, %v12466_v18  ;;  %v13495_v18 = vld [vmem:[#allocation14_spill] sm:$0xff] }
 0x420   :  { %v12731_v55 = vmul.f32 %v12575_v11, %v12470_v30  ;;  %v12735_v35 = vmul.f32 %v12575_v11, %v12474_v21  ;;  %v12739_v50 = vmul.f32 %v12575_v11, %v12478_v0  ;;  %v12743_v1 = vmul.f32 %v12575_v11, %v12482_v40 }
 0x421   :  { %v12747_v32 = vmul.f32 %v12575_v11, %v12486_v48  ;;  %v12751_v30 = vmul.f32 %v12575_v11, %v13495_v18  ;;  %v12755_v21 = vmul.f32 %v12575_v11, %v12494_v13  ;;  %v12763_v40 = vmul.f32 %v12575_v11, %v12502_v61 }
 0x422   :  { %13494 = vst [vmem:[#allocation19_spill] sm:$0xff] %v12735_v35  ;;  %v13496_v35 = vld [vmem:[#allocation13_spill] sm:$0xff]  ;;  %v12767_v48 = vmul.f32 %v12575_v11, %v12506_v8  ;;  %v12771_v18 = vmul.f32 %v12575_v11, %v12510_v44  ;;  %v12775_v13 = vmul.f32 %v12575_v11, %v12514_v63  ;;  %v12783_v61 = vmul.f32 %v12575_v11, %v12522_v6 }
 0x423   :  { %v12759_v0 = vmul.f32 %v12575_v11, %v13496_v35  ;;  %v12779_v35 = vmul.f32 %v12575_v11, %v12518_v25  ;;  %v12787_v8 = vmul.f32 %v12575_v11, %v12526_v58  ;;  %v12791_v44 = vmul.f32 %v12575_v11, %v12530_v17 }
 0x424   :  { %v12795_v63 = vmul.f32 %v12575_v11, %v12534_v53  ;;  %v12799_v25 = vmul.f32 %v12575_v11, %v12538_v39  ;;  %v12803_v6 = vmul.f32 %v12575_v11, %v12542_v2  ;;  %v12807_v58 = vmul.f32 %v12575_v11, %v12546_v4 }
 0x425   :  { %v12811_v17 = vmul.f32 %v12575_v11, %v12550_v47  ;;  %v12815_v53 = vmul.f32 %v12575_v11, %v12554_v38  ;;  %v12836_v38 = vld [vmem:[%s13257_s3] ss:$0 sm:$0xff] }
 0x426   :  { %13497 = vst [vmem:[#allocation22_spill] sm:$0xff] %v12795_v63  ;;  %13498 = vst [vmem:[#allocation21_spill] sm:$0xff] %v12799_v25  ;;  %v13502_v63 = vld [vmem:[#allocation16_spill] sm:$0xff]  ;;  %v13503_v25 = vld [vmem:[#allocation15_spill] sm:$0xff] }
 0x427   :  { %13499 = vst [vmem:[#allocation24_spill] sm:$0xff] %v12803_v6  ;;  %13500 = vst [vmem:[#allocation23_spill] sm:$0xff] %v12807_v58  ;;  %v12819_v39 = vmul.f32 %v12575_v11, %v13502_v63  ;;  %v12823_v2 = vmul.f32 %v12575_v11, %v13503_v25  ;;  %v13504_v6 = vld [vmem:[#allocation18_spill] sm:$0xff]  ;;  %v13505_v58 = vld [vmem:[#allocation17_spill] sm:$0xff]  ;;  %v12844_v25 = vmul.f32 %v12575_v11, %v12583_v33 }
 0x428   :  { %13501 = vst [vmem:[#allocation26_spill] sm:$0xff] %v12815_v53  ;;  %v12827_v4 = vmul.f32 %v12575_v11, %v13504_v6  ;;  %v12831_v47 = vmul.f32 %v12575_v11, %v13505_v58  ;;  %v13507_v53 = vld [vmem:[#allocation20_spill] sm:$0xff]  ;;  %v12848_v6 = vmul.f32 %v12575_v11, %v12587_v54  ;;  %v12852_v58 = vmul.f32 %v12575_v11, %v12591_v5 }
 0x429   :  { %v12840_v63 = vmul.f32 %v12575_v11, %v13507_v53  ;;  %v12860_v53 = vmul.f32 %v12575_v11, %v12599_v22  ;;  %v12864_v33 = vmul.f32 %v12575_v11, %v12603_v51  ;;  %v12868_v54 = vmul.f32 %v12575_v11, %v12607_v27 }
 0x42a   :  { %13506 = vst [vmem:[#allocation25_spill] sm:$0xff] %v12831_v47  ;;  %13508 = vst [vmem:[#allocation31_spill] sm:$0xff] %v12852_v58  ;;  %v12856_v47 = vmul.f32 %v12575_v11, %v12595_v29  ;;  %v7117_v5 = vadd.f32 %v12836_v38, %v12611_v42  ;;  %v7118_v58 = vadd.f32 %v12836_v38, %v12615_v16 }
 0x42b   :  { %13509 = vst [vmem:[#allocation32_spill] sm:$0xff] %v12864_v33  ;;  %v7119_v29 = vadd.f32 %v12836_v38, %v12619_v59  ;;  %v7120_v22 = vadd.f32 %v12836_v38, %v12623_v28  ;;  %v7121_v51 = vadd.f32 %v12836_v38, %v12627_v24  ;;  %v7122_v33 = vadd.f32 %v12836_v38, %v12631_v9 }
 0x42c   :  { %v7123_v11 = vadd.f32 %v12836_v38, %v12635_v26  ;;  %v7124_v27 = vadd.f32 %v12836_v38, %v12639_v31  ;;  %v7125_v42 = vadd.f32 %v12836_v38, %v12643_v46  ;;  %v7126_v16 = vadd.f32 %v12836_v38, %v12647_v19  ;;  %7181 = vst.msk [vmem:[%s13258_s4] sm:$0xff] %vm6575_vm3, %v7117_v5 }
 0x42d   :  { %v7127_v59 = vadd.f32 %v12836_v38, %v12651_v15  ;;  %v7128_v28 = vadd.f32 %v12836_v38, %v12655_v36  ;;  %7182 = vst.msk [vmem:[%s13258_s4 + $0x8] sm:$0xff] %vm6575_vm3, %v7118_v58  ;;  %7183 = vst.msk [vmem:[%s13258_s4 + $0x10] sm:$0xff] %vm6575_vm3, %v7119_v29  ;;  %v7129_v24 = vadd.f32 %v12836_v38, %v12659_v45 }
 0x42e   :  { %7184 = vst.msk [vmem:[%s13258_s4 + $0x18] sm:$0xff] %vm6575_vm3, %v7120_v22  ;;  %v7130_v9 = vadd.f32 %v12836_v38, %v12663_v20  ;;  %v7131_v26 = vadd.f32 %v12836_v38, %v12667_v43  ;;  %v7132_v31 = vadd.f32 %v12836_v38, %v12671_v14  ;;  %7185 = vst.msk [vmem:[%s13258_s4 + $0x20] sm:$0xff] %vm6575_vm3, %v7121_v51  ;;  %v13514_v58 = vld [vmem:[#allocation23_spill] sm:$0xff] }
 0x42f   :  { %7186 = vst.msk [vmem:[%s13258_s4 + $0x28] sm:$0xff] %vm6575_vm3, %v7122_v33  ;;  %7187 = vst.msk [vmem:[%s13258_s4 + $0x30] sm:$0xff] %vm6575_vm3, %v7123_v11  ;;  %v7133_v46 = vadd.f32 %v12836_v38, %v12675_v10  ;;  %v7134_v19 = vadd.f32 %v12836_v38, %v12679_v34  ;;  %v7135_v15 = vadd.f32 %v12836_v38, %v12683_v37  ;;  %v13515_v29 = vld [vmem:[#allocation26_spill] sm:$0xff] }
 0x430   :  { %7188 = vst.msk [vmem:[%s13258_s4 + $0x38] sm:$0xff] %vm6575_vm3, %v7124_v27  ;;  %v7136_v36 = vadd.f32 %v12836_v38, %v12687_v56  ;;  %7189 = vst.msk [vmem:[%s13258_s4 + $0x40] sm:$0xff] %vm6575_vm3, %v7125_v42  ;;  %v7137_v45 = vadd.f32 %v12836_v38, %v12691_v62  ;;  %v7138_v20 = vadd.f32 %v12836_v38, %v12695_v57 }
 0x431   :  { %7190 = vst.msk [vmem:[%s13258_s4 + $0x48] sm:$0xff] %vm6575_vm3, %v7126_v16  ;;  %7191 = vst.msk [vmem:[%s13258_s4 + $0x50] sm:$0xff] %vm6575_vm3, %v7127_v59  ;;  %v7139_v43 = vadd.f32 %v12836_v38, %v12699_v49  ;;  %v7140_v14 = vadd.f32 %v12836_v38, %v12703_v52  ;;  %v7141_v10 = vadd.f32 %v12836_v38, %v12707_v7  ;;  %v13510_v52 = vld [vmem:[#allocation19_spill] sm:$0xff]  ;;  %v13516_v27 = vld [vmem:[#allocation25_spill] sm:$0xff] }
 0x432   :  { %7192 = vst.msk [vmem:[%s13258_s4 + $0x58] sm:$0xff] %vm6575_vm3, %v7128_v28  ;;  %7193 = vst.msk [vmem:[%s13258_s4 + $0x60] sm:$0xff] %vm6575_vm3, %v7129_v24  ;;  %v7142_v34 = vadd.f32 %v12836_v38, %v12711_v3  ;;  %v7143_v37 = vadd.f32 %v12836_v38, %v12715_v41  ;;  %v7144_v56 = vadd.f32 %v12836_v38, %v12719_v23  ;;  %v13517_v16 = vld [vmem:[#allocation31_spill] sm:$0xff] }
 0x433   :  { %7194 = vst.msk [vmem:[%s13258_s4 + $0x68] sm:$0xff] %vm6575_vm3, %v7130_v9  ;;  %7195 = vst.msk [vmem:[%s13258_s4 + $0x70] sm:$0xff] %vm6575_vm3, %v7131_v26  ;;  %v7145_v62 = vadd.f32 %v12836_v38, %v12723_v12  ;;  %v7146_v57 = vadd.f32 %v12836_v38, %v12727_v60  ;;  %v7147_v49 = vadd.f32 %v12836_v38, %v12731_v55 }
 0x434   :  { %7196 = vst.msk [vmem:[%s13258_s4 + $0x78] sm:$0xff] %vm6575_vm3, %v7132_v31  ;;  %7197 = vst.msk [vmem:[%s13258_s4 + $0x80] sm:$0xff] %vm6575_vm3, %v7133_v46  ;;  %v7148_v7 = vadd.f32 %v12836_v38, %v13510_v52  ;;  %v7149_v3 = vadd.f32 %v12836_v38, %v12739_v50  ;;  %v7150_v41 = vadd.f32 %v12836_v38, %v12743_v1 }
 0x435   :  { %7198 = vst.msk [vmem:[%s13258_s4 + $0x88] sm:$0xff] %vm6575_vm3, %v7134_v19  ;;  %7199 = vst.msk [vmem:[%s13258_s4 + $0x90] sm:$0xff] %vm6575_vm3, %v7135_v15  ;;  %v7151_v23 = vadd.f32 %v12836_v38, %v12747_v32  ;;  %v7152_v12 = vadd.f32 %v12836_v38, %v12751_v30  ;;  %v7153_v60 = vadd.f32 %v12836_v38, %v12755_v21 }
 0x436   :  { %7200 = vst.msk [vmem:[%s13258_s4 + $0x98] sm:$0xff] %vm6575_vm3, %v7136_v36  ;;  %7201 = vst.msk [vmem:[%s13258_s4 + $0xa0] sm:$0xff] %vm6575_vm3, %v7137_v45  ;;  %v7154_v55 = vadd.f32 %v12836_v38, %v12759_v0  ;;  %v7155_v50 = vadd.f32 %v12836_v38, %v12763_v40  ;;  %v7156_v1 = vadd.f32 %v12836_v38, %v12767_v48 }
 0x437   :  { %7202 = vst.msk [vmem:[%s13258_s4 + $0xa8] sm:$0xff] %vm6575_vm3, %v7138_v20  ;;  %7203 = vst.msk [vmem:[%s13258_s4 + $0xb0] sm:$0xff] %vm6575_vm3, %v7139_v43  ;;  %v7157_v32 = vadd.f32 %v12836_v38, %v12771_v18  ;;  %v7158_v30 = vadd.f32 %v12836_v38, %v12775_v13  ;;  %v7159_v21 = vadd.f32 %v12836_v38, %v12779_v35  ;;  %v13511_v18 = vld [vmem:[#allocation22_spill] sm:$0xff]  ;;  %v13512_v35 = vld [vmem:[#allocation21_spill] sm:$0xff] }
 0x438   :  { %7204 = vst.msk [vmem:[%s13258_s4 + $0xb8] sm:$0xff] %vm6575_vm3, %v7140_v14  ;;  %7205 = vst.msk [vmem:[%s13258_s4 + $0xc0] sm:$0xff] %vm6575_vm3, %v7141_v10  ;;  %v7160_v0 = vadd.f32 %v12836_v38, %v12783_v61  ;;  %v7161_v40 = vadd.f32 %v12836_v38, %v12787_v8  ;;  %v7162_v48 = vadd.f32 %v12836_v38, %v12791_v44  ;;  %v13513_v8 = vld [vmem:[#allocation24_spill] sm:$0xff] }
 0x439   :  { %7206 = vst.msk [vmem:[%s13258_s4 + $0xc8] sm:$0xff] %vm6575_vm3, %v7142_v34  ;;  %7207 = vst.msk [vmem:[%s13258_s4 + $0xd0] sm:$0xff] %vm6575_vm3, %v7143_v37  ;;  %v7163_v13 = vadd.f32 %v12836_v38, %v13511_v18  ;;  %v7164_v61 = vadd.f32 %v12836_v38, %v13512_v35  ;;  %v7165_v44 = vadd.f32 %v12836_v38, %v13513_v8 }
 0x43a   :  { %7208 = vst.msk [vmem:[%s13258_s4 + $0xd8] sm:$0xff] %vm6575_vm3, %v7144_v56  ;;  %7209 = vst.msk [vmem:[%s13258_s4 + $0xe0] sm:$0xff] %vm6575_vm3, %v7145_v62  ;;  %v7166_v33 = vadd.f32 %v12836_v38, %v13514_v58  ;;  %v7167_v5 = vadd.f32 %v12836_v38, %v12811_v17  ;;  %v7168_v22 = vadd.f32 %v12836_v38, %v13515_v29 }
 0x43b   :  { %7210 = vst.msk [vmem:[%s13258_s4 + $0xe8] sm:$0xff] %vm6575_vm3, %v7146_v57  ;;  %7211 = vst.msk [vmem:[%s13258_s4 + $0xf0] sm:$0xff] %vm6575_vm3, %v7147_v49  ;;  %v7169_v17 = vadd.f32 %v12836_v38, %v12819_v39  ;;  %v7170_v51 = vadd.f32 %v12836_v38, %v12823_v2  ;;  %v7171_v11 = vadd.f32 %v12836_v38, %v12827_v4 }
 0x43c   :  { %7212 = vst.msk [vmem:[%s13258_s4 + $0xf8] sm:$0xff] %vm6575_vm3, %v7148_v7  ;;  %7213 = vst.msk [vmem:[%s13258_s4 + $0x100] sm:$0xff] %vm6575_vm3, %v7149_v3  ;;  %v7172_v42 = vadd.f32 %v12836_v38, %v13516_v27  ;;  %v7173_v39 = vadd.f32 %v12836_v38, %v12840_v63  ;;  %v7174_v2 = vadd.f32 %v12836_v38, %v12844_v25 }
 0x43d   :  { %7214 = vst.msk [vmem:[%s13258_s4 + $0x108] sm:$0xff] %vm6575_vm3, %v7150_v41  ;;  %7215 = vst.msk [vmem:[%s13258_s4 + $0x110] sm:$0xff] %vm6575_vm3, %v7151_v23  ;;  %v7175_v4 = vadd.f32 %v12836_v38, %v12848_v6  ;;  %v7176_v59 = vadd.f32 %v12836_v38, %v13517_v16  ;;  %v7177_v63 = vadd.f32 %v12836_v38, %v12856_v47  ;;  %v13518_v6 = vld [vmem:[#allocation32_spill] sm:$0xff] }
 0x43e   :  { %7216 = vst.msk [vmem:[%s13258_s4 + $0x118] sm:$0xff] %vm6575_vm3, %v7152_v12  ;;  %7217 = vst.msk [vmem:[%s13258_s4 + $0x120] sm:$0xff] %vm6575_vm3, %v7153_v60  ;;  %v7178_v25 = vadd.f32 %v12836_v38, %v12860_v53  ;;  %v7179_v28 = vadd.f32 %v12836_v38, %v13518_v6  ;;  %v7180_v24 = vadd.f32 %v12836_v38, %v12868_v54 }
 0x43f   :  { %7218 = vst.msk [vmem:[%s13258_s4 + $0x128] sm:$0xff] %vm6575_vm3, %v7154_v55  ;;  %7219 = vst.msk [vmem:[%s13258_s4 + $0x130] sm:$0xff] %vm6575_vm3, %v7155_v50 }
 0x440   :  { %7220 = vst.msk [vmem:[%s13258_s4 + $0x138] sm:$0xff] %vm6575_vm3, %v7156_v1  ;;  %7221 = vst.msk [vmem:[%s13258_s4 + $0x140] sm:$0xff] %vm6575_vm3, %v7157_v32 }
 0x441   :  { %7222 = vst.msk [vmem:[%s13258_s4 + $0x148] sm:$0xff] %vm6575_vm3, %v7158_v30  ;;  %7223 = vst.msk [vmem:[%s13258_s4 + $0x150] sm:$0xff] %vm6575_vm3, %v7159_v21 }
 0x442   :  { %7224 = vst.msk [vmem:[%s13258_s4 + $0x158] sm:$0xff] %vm6575_vm3, %v7160_v0  ;;  %7225 = vst.msk [vmem:[%s13258_s4 + $0x160] sm:$0xff] %vm6575_vm3, %v7161_v40 }
 0x443   :  { %7226 = vst.msk [vmem:[%s13258_s4 + $0x168] sm:$0xff] %vm6575_vm3, %v7162_v48  ;;  %7227 = vst.msk [vmem:[%s13258_s4 + $0x170] sm:$0xff] %vm6575_vm3, %v7163_v13 }
 0x444   :  { %7228 = vst.msk [vmem:[%s13258_s4 + $0x178] sm:$0xff] %vm6575_vm3, %v7164_v61  ;;  %7229 = vst.msk [vmem:[%s13258_s4 + $0x180] sm:$0xff] %vm6575_vm3, %v7165_v44 }
 0x445   :  { %7230 = vst.msk [vmem:[%s13258_s4 + $0x188] sm:$0xff] %vm6575_vm3, %v7166_v33  ;;  %7231 = vst.msk [vmem:[%s13258_s4 + $0x190] sm:$0xff] %vm6575_vm3, %v7167_v5 }
 0x446   :  { %7232 = vst.msk [vmem:[%s13258_s4 + $0x198] sm:$0xff] %vm6575_vm3, %v7168_v22  ;;  %7233 = vst.msk [vmem:[%s13258_s4 + $0x1a0] sm:$0xff] %vm6575_vm3, %v7169_v17 }
 0x447   :  { %7234 = vst.msk [vmem:[%s13258_s4 + $0x1a8] sm:$0xff] %vm6575_vm3, %v7170_v51  ;;  %7235 = vst.msk [vmem:[%s13258_s4 + $0x1b0] sm:$0xff] %vm6575_vm3, %v7171_v11 }
 0x448   :  { %7236 = vst.msk [vmem:[%s13258_s4 + $0x1b8] sm:$0xff] %vm6575_vm3, %v7172_v42  ;;  %7237 = vst.msk [vmem:[%s13258_s4 + $0x1c0] sm:$0xff] %vm6575_vm3, %v7173_v39 }
 0x449   :  { %7238 = vst.msk [vmem:[%s13258_s4 + $0x1c8] sm:$0xff] %vm6575_vm3, %v7174_v2  ;;  %7239 = vst.msk [vmem:[%s13258_s4 + $0x1d0] sm:$0xff] %vm6575_vm3, %v7175_v4 }
 0x44a   :  { %7240 = vst.msk [vmem:[%s13258_s4 + $0x1d8] sm:$0xff] %vm6575_vm3, %v7176_v59  ;;  %7241 = vst.msk [vmem:[%s13258_s4 + $0x1e0] sm:$0xff] %vm6575_vm3, %v7177_v63 }
 0x44b   :  { %7242 = vst.msk [vmem:[%s13258_s4 + $0x1e8] sm:$0xff] %vm6575_vm3, %v7178_v25  ;;  %7243 = vst.msk [vmem:[%s13258_s4 + $0x1f0] sm:$0xff] %vm6575_vm3, %v7179_v28 }
 0x44c   :  { %7244 = vst.msk [vmem:[%s13258_s4 + $0x1f8] sm:$0xff] %vm6575_vm3, %v7180_v24 }

</bundles_post_ra>
